<compile_context>
chip_gen: v5e
topology: v5e:2x2
jax: 0.10.0
libtpu: 0.0.40
codegen_flags: <defaults>
</compile_context>

<pallas_src>
import functools

import jax
import jax.numpy as jnp
from jax.experimental import pallas as pl
from jax.experimental.pallas import tpu as pltpu

_PRECISION = jax.lax.Precision.HIGHEST


# ----------------------------------------------------------------------------
# Host-side weight folding: collapse the 7 convolutions into 11 tap matrices.
# ----------------------------------------------------------------------------
def _fold_weights(params):
    w111, w331, w113, wsec, wthr, wres, wrelu = params
    cout, cin = w111.shape

    wr1 = wrelu[:, :cout]            # reluconv block acting on the sec/conv331 path
    wr2 = wrelu[:, cout:2 * cout]    # ... on the thr/conv113 path
    wr3 = wrelu[:, 2 * cout:]        # ... on the res_conv111 path

    a_mat = jnp.einsum('pq,qo->po', wr1, wsec, precision=_PRECISION)
    b_mat = jnp.einsum('pq,qo->po', wr2, wthr, precision=_PRECISION)

    # 3x3 (D,H) taps: wr1 @ wsec @ w331[...,kd,kh] @ w111     -> (3, 3, Cout, Cin)
    kdh = jnp.einsum('po,oikl,ic->klpc', a_mat, w331[..., 0], w111,
                     precision=_PRECISION)
    # 1x1x3 (W) taps:  wr2 @ wthr @ w113[...,kw] @ w111       -> (3, Cout, Cin)
    kw_ = jnp.einsum('po,oik,ic->kpc', b_mat, w113[:, :, 0, 0, :], w111,
                     precision=_PRECISION)
    # residual 1x1x1 path: wr3 @ wres                         -> (Cout, Cin)
    kpt = jnp.einsum('pq,qc->pc', wr3, wres, precision=_PRECISION)

    center = kdh[1, 1] + kw_[1] + kpt
    taps = jnp.concatenate(
        [kdh.reshape(9, cout, cin).at[4].set(center), kw_[0:1], kw_[2:3]],
        axis=0)                                               # (11, Cout, Cin)
    return taps


# ----------------------------------------------------------------------------
# Pallas kernel: one (batch, D-block) tile per grid step.
# ----------------------------------------------------------------------------
def wrrb_kernel(x_ref, xprev_ref, xnext_ref, taps_ref, masks_ref, out_ref,
                wsh_ref, wsw_ref, *, row_w, plane_hw, d_tile):
    c_in = x_ref.shape[0]
    w = row_w
    hw = plane_hw
    td = d_tile

    d_blk = pl.program_id(1)
    n_blk = pl.num_programs(1)
    # Zero the halo plane contribution at the global D boundaries.
    prev_scale = jnp.where(d_blk == 0, 0.0, 1.0).astype(jnp.float32)
    next_scale = jnp.where(d_blk == n_blk - 1, 0.0, 1.0).astype(jnp.float32)

    # Zero the padded borders of the shift workspaces (interiors are rewritten).
    wsh_ref[:, 0:w] = jnp.zeros((c_in, w), jnp.float32)
    wsh_ref[:, w + hw:hw + 2 * w] = jnp.zeros((c_in, w), jnp.float32)
    wsw_ref[:, 0:1] = jnp.zeros((c_in, 1), jnp.float32)
    wsw_ref[:, hw + 1:hw + 2] = jnp.zeros((c_in, 1), jnp.float32)

    mask_wlo = masks_ref[0:1, :]   # 0 where w == 0     (suppress row wrap, tap w-1)
    mask_whi = masks_ref[1:2, :]   # 0 where w == W - 1 (suppress row wrap, tap w+1)

    for i in range(td):            # static unroll over the D planes of this block
        if i == 0:
            p_prev = xprev_ref[...].astype(jnp.float32) * prev_scale
        else:
            p_prev = x_ref[:, (i - 1) * hw:i * hw].astype(jnp.float32)
        p_cur = x_ref[:, i * hw:(i + 1) * hw].astype(jnp.float32)
        if i == td - 1:
            p_next = xnext_ref[...].astype(jnp.float32) * next_scale
        else:
            p_next = x_ref[:, (i + 1) * hw:(i + 2) * hw].astype(jnp.float32)

        acc = jnp.zeros((out_ref.shape[0], hw), jnp.float32)

        # 3x3 (D,H) stencil: kd picks the source plane, kh the H shift
        # (implemented as a contiguous slice of the H-padded flat workspace).
        for kd, plane in ((0, p_prev), (1, p_cur), (2, p_next)):
            wsh_ref[:, w:w + hw] = plane
            for kh in range(3):
                slab = wsh_ref[:, kh * w:kh * w + hw]
                acc = acc + jnp.dot(taps_ref[kd * 3 + kh], slab,
                                    preferred_element_type=jnp.float32)

        # Off-center 1x1x3 (W) taps: flat shift by +/-1 with row-wrap masking.
        wsw_ref[:, 1:hw + 1] = p_cur
        acc = acc + mask_wlo * jnp.dot(taps_ref[9], wsw_ref[:, 0:hw],
                                       preferred_element_type=jnp.float32)
        acc = acc + mask_whi * jnp.dot(taps_ref[10], wsw_ref[:, 2:hw + 2],
                                       preferred_element_type=jnp.float32)

        out_ref[:, i * hw:(i + 1) * hw] = (
            p_cur + jnp.maximum(acc, 0.0)).astype(out_ref.dtype)


# ----------------------------------------------------------------------------
# Wrapper
# ----------------------------------------------------------------------------
def wrrb_forward(x, params, *, d_tile=8):
    """x: (N, Cin, D, H, W) float32, PyTorch NCDHW layout.  Returns same layout."""
    n, c, d, h, w = x.shape
    w111 = params[0]
    cout = w111.shape[0]
    if cout != c:
        raise ValueError("WRRB residual add requires inchannel == outchannel")
    if d % d_tile != 0:
        raise ValueError("D must be divisible by d_tile")
    hw = h * w
    if hw % 128 != 0:
        # TODO(synk): pad H*W to a lane multiple for arbitrary spatial sizes;
        # also consider streaming activations as bf16 on v6e/v7x.
        raise ValueError("H*W must be a multiple of 128 for lane-dense blocks")

    taps = _fold_weights(params)                               # (11, Cout, Cin)
    col = jnp.arange(hw, dtype=jnp.int32) % w
    masks = jnp.stack([col != 0, col != (w - 1)]).astype(jnp.float32)  # (2, HW)

    xf = x.reshape(n, c, d * hw)                               # free reshape
    nd = d // d_tile

    kernel = functools.partial(wrrb_kernel, row_w=w, plane_hw=hw, d_tile=d_tile)

    in_specs = [
        # main D-block of planes
        pl.BlockSpec((None, c, d_tile * hw), lambda bn, bd: (bn, 0, bd)),
        # D-halo plane before the block (clamped at the first plane)
        pl.BlockSpec((None, c, hw),
                     lambda bn, bd: (bn, 0, jnp.maximum(bd * d_tile - 1, 0))),
        # D-halo plane after the block (clamped at the last plane)
        pl.BlockSpec((None, c, hw),
                     lambda bn, bd: (bn, 0, jnp.minimum((bd + 1) * d_tile, d - 1))),
        # folded tap matrices and boundary masks (small, fully resident)
        pl.BlockSpec((11, cout, c), lambda bn, bd: (0, 0, 0)),
        pl.BlockSpec((2, hw), lambda bn, bd: (0, 0)),
    ]
    out_specs = pl.BlockSpec((None, cout, d_tile * hw), lambda bn, bd: (bn, 0, bd))

    out = pl.pallas_call(
        kernel,
        out_shape=jax.ShapeDtypeStruct((n, cout, d * hw), x.dtype),
        grid_spec=pltpu.PrefetchScalarGridSpec(
            num_scalar_prefetch=0,
            grid=(n, nd),
            in_specs=in_specs,
            out_specs=out_specs,
            scratch_shapes=[
                pltpu.VMEM((c, hw + 2 * w), jnp.float32),   # H-shift workspace
                pltpu.VMEM((c, hw + 2), jnp.float32),       # W-shift workspace
            ],
        ),
        compiler_params=pltpu.CompilerParams(
            dimension_semantics=("parallel", "arbitrary"),
            vmem_limit_bytes=32 * 1024 * 1024,
        ),
    )(xf, xf, xf, taps, masks)

    return out.reshape(n, cout, d, h, w)


# ----------------------------------------------------------------------------
# Plain-JAX reference mirroring the PyTorch forward (for verification).
# ----------------------------------------------------------------------------
def wrrb_reference(x, params):
    w111, w331, w113, wsec, wthr, wres, wrelu = params
    n, cin, d, h, w = x.shape

    def pw(v, wm):  # 1x1x1 conv, wm: (Cout, Cin)
        return jnp.einsum('ncdhw,oc->nodhw', v, wm, precision=_PRECISION)

    def conv331(v, wm):  # wm: (Cout, Cin, 3, 3, 1), pad (1,1,0)
        vp = jnp.pad(v, ((0, 0), (0, 0), (1, 1), (1, 1), (0, 0)))
        out = jnp.zeros((n, wm.shape[0], d, h, w), v.dtype)
        for kd in range(3):
            for kh in range(3):
                out = out + jnp.einsum('ncdhw,oc->nodhw',
                                       vp[:, :, kd:kd + d, kh:kh + h, :],
                                       wm[:, :, kd, kh, 0], precision=_PRECISION)
        return out

    def conv113(v, wm):  # wm: (Cout, Cin, 1, 1, 3), pad (0,0,1)
        vp = jnp.pad(v, ((0, 0), (0, 0), (0, 0), (0, 0), (1, 1)))
        out = jnp.zeros((n, wm.shape[0], d, h, w), v.dtype)
        for kw in range(3):
            out = out + jnp.einsum('ncdhw,oc->nodhw',
                                   vp[:, :, :, :, kw:kw + w],
                                   wm[:, :, 0, 0, kw], precision=_PRECISION)
        return out

    y = pw(x, w111)
    branch2 = jnp.concatenate([pw(conv331(y, w331), wsec),
                               pw(conv113(y, w113), wthr)], axis=1)
    branch3 = pw(x, wres)
    xcat = jnp.concatenate([branch2, branch3], axis=1)
    return x + jax.nn.relu(pw(xcat, wrelu))


if __name__ == "__main__":
    # Small shapes consistent with the module (in == out channels for the residual).
    N, C, D, H, W = 2, 8, 16, 16, 16

    key = jax.random.PRNGKey(0)
    ks = jax.random.split(key, 8)
    s = 0.1
    w111 = jax.random.normal(ks[0], (C, C), jnp.float32) * s          # conv111
    w331 = jax.random.normal(ks[1], (C, C, 3, 3, 1), jnp.float32) * s  # conv331
    w113 = jax.random.normal(ks[2], (C, C, 1, 1, 3), jnp.float32) * s  # conv113
    wsec = jax.random.normal(ks[3], (C, C), jnp.float32) * s           # sec_conv111
    wthr = jax.random.normal(ks[4], (C, C), jnp.float32) * s           # thr_conv111
    wres = jax.random.normal(ks[5], (C, C), jnp.float32) * s           # res_conv111
    wrelu = jax.random.normal(ks[6], (C, 3 * C), jnp.float32) * s      # reluconv
    params = (w111, w331, w113, wsec, wthr, wres, wrelu)

    x = jax.random.normal(ks[7], (N, C, D, H, W), jnp.float32)

    out = jax.block_until_ready(wrrb_forward(x, params, d_tile=8))
    ref = jax.block_until_ready(wrrb_reference(x, params))

    assert out.shape == (N, C, D, H, W), out.shape
    if not jnp.allclose(out, ref, rtol=1e-3, atol=1e-3):
        max_err = float(jnp.max(jnp.abs(out - ref)))
        raise AssertionError(f"Pallas WRRB output mismatch, max abs err = {max_err}")

    print("KERNEL_OK")
</pallas_src>

<mosaic_0001>
module attributes {stable_mosaic.version = 11 : i64} {
  func.func @wrrb_kernel(%arg0: i32, %arg1: i32, %arg2: memref<1x8x2048xf32, #tpu.memory_space<vmem>>, %arg3: memref<1x8x256xf32, #tpu.memory_space<vmem>>, %arg4: memref<1x8x256xf32, #tpu.memory_space<vmem>>, %arg5: memref<11x8x8xf32, #tpu.memory_space<vmem>>, %arg6: memref<2x256xf32, #tpu.memory_space<vmem>>, %arg7: memref<1x8x2048xf32, #tpu.memory_space<vmem>>, %arg8: memref<8x288xf32, #tpu.memory_space<vmem>>, %arg9: memref<8x258xf32, #tpu.memory_space<vmem>>) attributes {dimension_semantics = [#tpu.dimension_semantics<parallel>, #tpu.dimension_semantics<arbitrary>], iteration_bounds = array<i64: 2, 2>, scalar_prefetch = 0 : i64, scratch_operands = 2 : i64, tpu.core_type = #tpu.core_type<tc>, window_params = [{transform_indices = @transform_0, window_bounds = array<i64: 1, 8, 2048>}, {transform_indices = @transform_1, window_bounds = array<i64: 1, 8, 256>}, {transform_indices = @transform_2, window_bounds = array<i64: 1, 8, 256>}, {pipeline_mode = #tpu.pipeline_mode<synchronous>, transform_indices = @transform_3, window_bounds = array<i64: 11, 8, 8>}, {pipeline_mode = #tpu.pipeline_mode<synchronous>, transform_indices = @transform_4, window_bounds = array<i64: 2, 256>}, {transform_indices = @transform_5, window_bounds = array<i64: 1, 8, 2048>}]} {
    %c0_i32 = arith.constant 0 : i32
    %0 = arith.cmpi eq, %arg1, %c0_i32 : i32
    %cst = arith.constant 0.000000e+00 : f32
    %cst_0 = arith.constant 1.000000e+00 : f32
    %1 = arith.select %0, %cst, %cst_0 : f32
    %c1_i32 = arith.constant 1 : i32
    %2 = arith.cmpi eq, %arg1, %c1_i32 : i32
    %cst_1 = arith.constant 0.000000e+00 : f32
    %cst_2 = arith.constant 1.000000e+00 : f32
    %3 = arith.select %2, %cst_1, %cst_2 : f32
    %cst_3 = arith.constant 0.000000e+00 : f32
    %4 = vector.broadcast %cst_3 : f32 to vector<8x16xf32>
    %c0 = arith.constant 0 : index
    %c0_4 = arith.constant 0 : index
    %5 = vector.load %arg8[%c0, %c0_4] : memref<8x288xf32, #tpu.memory_space<vmem>>, vector<8x16xf32>
    tpu.vector_store %arg8[%c0, %c0_4], %4 {strides = array<i32>} : memref<8x288xf32, #tpu.memory_space<vmem>>, vector<8x16xf32>,
    %cst_5 = arith.constant 0.000000e+00 : f32
    %6 = vector.broadcast %cst_5 : f32 to vector<8x16xf32>
    %c0_6 = arith.constant 0 : index
    %c272 = arith.constant 272 : index
    %7 = vector.load %arg8[%c0_6, %c272] : memref<8x288xf32, #tpu.memory_space<vmem>>, vector<8x16xf32>
    tpu.vector_store %arg8[%c0_6, %c272], %6 {strides = array<i32>} : memref<8x288xf32, #tpu.memory_space<vmem>>, vector<8x16xf32>,
    %cst_7 = arith.constant 0.000000e+00 : f32
    %8 = vector.broadcast %cst_7 : f32 to vector<8x1xf32>
    %c0_8 = arith.constant 0 : index
    %c0_9 = arith.constant 0 : index
    %9 = vector.load %arg9[%c0_8, %c0_9] : memref<8x258xf32, #tpu.memory_space<vmem>>, vector<8x1xf32>
    tpu.vector_store %arg9[%c0_8, %c0_9], %8 {strides = array<i32>} : memref<8x258xf32, #tpu.memory_space<vmem>>, vector<8x1xf32>,
    %cst_10 = arith.constant 0.000000e+00 : f32
    %10 = vector.broadcast %cst_10 : f32 to vector<8x1xf32>
    %c0_11 = arith.constant 0 : index
    %c257 = arith.constant 257 : index
    %11 = vector.load %arg9[%c0_11, %c257] : memref<8x258xf32, #tpu.memory_space<vmem>>, vector<8x1xf32>
    tpu.vector_store %arg9[%c0_11, %c257], %10 {strides = array<i32>} : memref<8x258xf32, #tpu.memory_space<vmem>>, vector<8x1xf32>,
    %c0_12 = arith.constant 0 : index
    %c0_13 = arith.constant 0 : index
    %12 = vector.load %arg6[%c0_12, %c0_13] : memref<2x256xf32, #tpu.memory_space<vmem>>, vector<1x256xf32>
    %c1 = arith.constant 1 : index
    %c0_14 = arith.constant 0 : index
    %13 = vector.load %arg6[%c1, %c0_14] : memref<2x256xf32, #tpu.memory_space<vmem>>, vector<1x256xf32>
    %c0_15 = arith.constant 0 : index
    %c0_16 = arith.constant 0 : index
    %c0_17 = arith.constant 0 : index
    %14 = vector.load %arg3[%c0_15, %c0_16, %c0_17] : memref<1x8x256xf32, #tpu.memory_space<vmem>>, vector<1x8x256xf32>
    %15 = vector.shape_cast %14 : vector<1x8x256xf32> to vector<8x256xf32>
    %16 = vector.broadcast %1 : f32 to vector<8x256xf32>
    %17 = arith.mulf %15, %16 : vector<8x256xf32>
    %c0_18 = arith.constant 0 : index
    %c0_19 = arith.constant 0 : index
    %c0_20 = arith.constant 0 : index
    %18 = vector.load %arg2[%c0_18, %c0_19, %c0_20] : memref<1x8x2048xf32, #tpu.memory_space<vmem>>, vector<1x8x256xf32>
    %19 = vector.shape_cast %18 : vector<1x8x256xf32> to vector<8x256xf32>
    %c0_21 = arith.constant 0 : index
    %c0_22 = arith.constant 0 : index
    %c256 = arith.constant 256 : index
    %20 = vector.load %arg2[%c0_21, %c0_22, %c256] : memref<1x8x2048xf32, #tpu.memory_space<vmem>>, vector<1x8x256xf32>
    %21 = vector.shape_cast %20 : vector<1x8x256xf32> to vector<8x256xf32>
    %cst_23 = arith.constant 0.000000e+00 : f32
    %22 = vector.broadcast %cst_23 : f32 to vector<8x256xf32>
    %c0_24 = arith.constant 0 : index
    %c16 = arith.constant 16 : index
    %23 = vector.load %arg8[%c0_24, %c16] : memref<8x288xf32, #tpu.memory_space<vmem>>, vector<8x256xf32>
    tpu.vector_store %arg8[%c0_24, %c16], %17 {strides = array<i32>} : memref<8x288xf32, #tpu.memory_space<vmem>>, vector<8x256xf32>,
    %c0_25 = arith.constant 0 : index
    %c0_26 = arith.constant 0 : index
    %24 = vector.load %arg8[%c0_25, %c0_26] : memref<8x288xf32, #tpu.memory_space<vmem>>, vector<8x256xf32>
    %c0_27 = arith.constant 0 : index
    %c0_28 = arith.constant 0 : index
    %c0_29 = arith.constant 0 : index
    %25 = vector.load %arg5[%c0_27, %c0_28, %c0_29] : memref<11x8x8xf32, #tpu.memory_space<vmem>>, vector<1x8x8xf32>
    %26 = vector.shape_cast %25 : vector<1x8x8xf32> to vector<8x8xf32>
    %cst_30 = arith.constant dense<0.000000e+00> : vector<8x256xf32>
    %27 = tpu.matmul %26, %24, %cst_30 {dimension_numbers = #tpu.dot_dimension_numbers<[1], [0], [0], [1], [0, 0, 1, 1], [], []>} : vector<8x8xf32>, vector<8x256xf32>, vector<8x256xf32> -> vector<8x256xf32>
    %28 = arith.addf %22, %27 : vector<8x256xf32>
    %c0_31 = arith.constant 0 : index
    %c16_32 = arith.constant 16 : index
    %29 = vector.load %arg8[%c0_31, %c16_32] : memref<8x288xf32, #tpu.memory_space<vmem>>, vector<8x256xf32>
    %c1_33 = arith.constant 1 : index
    %c0_34 = arith.constant 0 : index
    %c0_35 = arith.constant 0 : index
    %30 = vector.load %arg5[%c1_33, %c0_34, %c0_35] : memref<11x8x8xf32, #tpu.memory_space<vmem>>, vector<1x8x8xf32>
    %31 = vector.shape_cast %30 : vector<1x8x8xf32> to vector<8x8xf32>
    %cst_36 = arith.constant dense<0.000000e+00> : vector<8x256xf32>
    %32 = tpu.matmul %31, %29, %cst_36 {dimension_numbers = #tpu.dot_dimension_numbers<[1], [0], [0], [1], [0, 0, 1, 1], [], []>} : vector<8x8xf32>, vector<8x256xf32>, vector<8x256xf32> -> vector<8x256xf32>
    %33 = arith.addf %28, %32 : vector<8x256xf32>
    %c0_37 = arith.constant 0 : index
    %c32 = arith.constant 32 : index
    %34 = vector.load %arg8[%c0_37, %c32] : memref<8x288xf32, #tpu.memory_space<vmem>>, vector<8x256xf32>
    %c2 = arith.constant 2 : index
    %c0_38 = arith.constant 0 : index
    %c0_39 = arith.constant 0 : index
    %35 = vector.load %arg5[%c2, %c0_38, %c0_39] : memref<11x8x8xf32, #tpu.memory_space<vmem>>, vector<1x8x8xf32>
    %36 = vector.shape_cast %35 : vector<1x8x8xf32> to vector<8x8xf32>
    %cst_40 = arith.constant dense<0.000000e+00> : vector<8x256xf32>
    %37 = tpu.matmul %36, %34, %cst_40 {dimension_numbers = #tpu.dot_dimension_numbers<[1], [0], [0], [1], [0, 0, 1, 1], [], []>} : vector<8x8xf32>, vector<8x256xf32>, vector<8x256xf32> -> vector<8x256xf32>
    %38 = arith.addf %33, %37 : vector<8x256xf32>
    %c0_41 = arith.constant 0 : index
    %c16_42 = arith.constant 16 : index
    %39 = vector.load %arg8[%c0_41, %c16_42] : memref<8x288xf32, #tpu.memory_space<vmem>>, vector<8x256xf32>
    tpu.vector_store %arg8[%c0_41, %c16_42], %19 {strides = array<i32>} : memref<8x288xf32, #tpu.memory_space<vmem>>, vector<8x256xf32>,
    %c0_43 = arith.constant 0 : index
    %c0_44 = arith.constant 0 : index
    %40 = vector.load %arg8[%c0_43, %c0_44] : memref<8x288xf32, #tpu.memory_space<vmem>>, vector<8x256xf32>
    %c3 = arith.constant 3 : index
    %c0_45 = arith.constant 0 : index
    %c0_46 = arith.constant 0 : index
    %41 = vector.load %arg5[%c3, %c0_45, %c0_46] : memref<11x8x8xf32, #tpu.memory_space<vmem>>, vector<1x8x8xf32>
    %42 = vector.shape_cast %41 : vector<1x8x8xf32> to vector<8x8xf32>
    %cst_47 = arith.constant dense<0.000000e+00> : vector<8x256xf32>
    %43 = tpu.matmul %42, %40, %cst_47 {dimension_numbers = #tpu.dot_dimension_numbers<[1], [0], [0], [1], [0, 0, 1, 1], [], []>} : vector<8x8xf32>, vector<8x256xf32>, vector<8x256xf32> -> vector<8x256xf32>
    %44 = arith.addf %38, %43 : vector<8x256xf32>
    %c0_48 = arith.constant 0 : index
    %c16_49 = arith.constant 16 : index
    %45 = vector.load %arg8[%c0_48, %c16_49] : memref<8x288xf32, #tpu.memory_space<vmem>>, vector<8x256xf32>
    %c4 = arith.constant 4 : index
    %c0_50 = arith.constant 0 : index
    %c0_51 = arith.constant 0 : index
    %46 = vector.load %arg5[%c4, %c0_50, %c0_51] : memref<11x8x8xf32, #tpu.memory_space<vmem>>, vector<1x8x8xf32>
    %47 = vector.shape_cast %46 : vector<1x8x8xf32> to vector<8x8xf32>
    %cst_52 = arith.constant dense<0.000000e+00> : vector<8x256xf32>
    %48 = tpu.matmul %47, %45, %cst_52 {dimension_numbers = #tpu.dot_dimension_numbers<[1], [0], [0], [1], [0, 0, 1, 1], [], []>} : vector<8x8xf32>, vector<8x256xf32>, vector<8x256xf32> -> vector<8x256xf32>
    %49 = arith.addf %44, %48 : vector<8x256xf32>
    %c0_53 = arith.constant 0 : index
    %c32_54 = arith.constant 32 : index
    %50 = vector.load %arg8[%c0_53, %c32_54] : memref<8x288xf32, #tpu.memory_space<vmem>>, vector<8x256xf32>
    %c5 = arith.constant 5 : index
    %c0_55 = arith.constant 0 : index
    %c0_56 = arith.constant 0 : index
    %51 = vector.load %arg5[%c5, %c0_55, %c0_56] : memref<11x8x8xf32, #tpu.memory_space<vmem>>, vector<1x8x8xf32>
    %52 = vector.shape_cast %51 : vector<1x8x8xf32> to vector<8x8xf32>
    %cst_57 = arith.constant dense<0.000000e+00> : vector<8x256xf32>
    %53 = tpu.matmul %52, %50, %cst_57 {dimension_numbers = #tpu.dot_dimension_numbers<[1], [0], [0], [1], [0, 0, 1, 1], [], []>} : vector<8x8xf32>, vector<8x256xf32>, vector<8x256xf32> -> vector<8x256xf32>
    %54 = arith.addf %49, %53 : vector<8x256xf32>
    %c0_58 = arith.constant 0 : index
    %c16_59 = arith.constant 16 : index
    %55 = vector.load %arg8[%c0_58, %c16_59] : memref<8x288xf32, #tpu.memory_space<vmem>>, vector<8x256xf32>
    tpu.vector_store %arg8[%c0_58, %c16_59], %21 {strides = array<i32>} : memref<8x288xf32, #tpu.memory_space<vmem>>, vector<8x256xf32>,
    %c0_60 = arith.constant 0 : index
    %c0_61 = arith.constant 0 : index
    %56 = vector.load %arg8[%c0_60, %c0_61] : memref<8x288xf32, #tpu.memory_space<vmem>>, vector<8x256xf32>
    %c6 = arith.constant 6 : index
    %c0_62 = arith.constant 0 : index
    %c0_63 = arith.constant 0 : index
    %57 = vector.load %arg5[%c6, %c0_62, %c0_63] : memref<11x8x8xf32, #tpu.memory_space<vmem>>, vector<1x8x8xf32>
    %58 = vector.shape_cast %57 : vector<1x8x8xf32> to vector<8x8xf32>
    %cst_64 = arith.constant dense<0.000000e+00> : vector<8x256xf32>
    %59 = tpu.matmul %58, %56, %cst_64 {dimension_numbers = #tpu.dot_dimension_numbers<[1], [0], [0], [1], [0, 0, 1, 1], [], []>} : vector<8x8xf32>, vector<8x256xf32>, vector<8x256xf32> -> vector<8x256xf32>
    %60 = arith.addf %54, %59 : vector<8x256xf32>
    %c0_65 = arith.constant 0 : index
    %c16_66 = arith.constant 16 : index
    %61 = vector.load %arg8[%c0_65, %c16_66] : memref<8x288xf32, #tpu.memory_space<vmem>>, vector<8x256xf32>
    %c7 = arith.constant 7 : index
    %c0_67 = arith.constant 0 : index
    %c0_68 = arith.constant 0 : index
    %62 = vector.load %arg5[%c7, %c0_67, %c0_68] : memref<11x8x8xf32, #tpu.memory_space<vmem>>, vector<1x8x8xf32>
    %63 = vector.shape_cast %62 : vector<1x8x8xf32> to vector<8x8xf32>
    %cst_69 = arith.constant dense<0.000000e+00> : vector<8x256xf32>
    %64 = tpu.matmul %63, %61, %cst_69 {dimension_numbers = #tpu.dot_dimension_numbers<[1], [0], [0], [1], [0, 0, 1, 1], [], []>} : vector<8x8xf32>, vector<8x256xf32>, vector<8x256xf32> -> vector<8x256xf32>
    %65 = arith.addf %60, %64 : vector<8x256xf32>
    %c0_70 = arith.constant 0 : index
    %c32_71 = arith.constant 32 : index
    %66 = vector.load %arg8[%c0_70, %c32_71] : memref<8x288xf32, #tpu.memory_space<vmem>>, vector<8x256xf32>
    %c8 = arith.constant 8 : index
    %c0_72 = arith.constant 0 : index
    %c0_73 = arith.constant 0 : index
    %67 = vector.load %arg5[%c8, %c0_72, %c0_73] : memref<11x8x8xf32, #tpu.memory_space<vmem>>, vector<1x8x8xf32>
    %68 = vector.shape_cast %67 : vector<1x8x8xf32> to vector<8x8xf32>
    %cst_74 = arith.constant dense<0.000000e+00> : vector<8x256xf32>
    %69 = tpu.matmul %68, %66, %cst_74 {dimension_numbers = #tpu.dot_dimension_numbers<[1], [0], [0], [1], [0, 0, 1, 1], [], []>} : vector<8x8xf32>, vector<8x256xf32>, vector<8x256xf32> -> vector<8x256xf32>
    %70 = arith.addf %65, %69 : vector<8x256xf32>
    %c0_75 = arith.constant 0 : index
    %c1_76 = arith.constant 1 : index
    %71 = vector.load %arg9[%c0_75, %c1_76] : memref<8x258xf32, #tpu.memory_space<vmem>>, vector<8x256xf32>
    tpu.vector_store %arg9[%c0_75, %c1_76], %19 {strides = array<i32>} : memref<8x258xf32, #tpu.memory_space<vmem>>, vector<8x256xf32>,
    %c9 = arith.constant 9 : index
    %c0_77 = arith.constant 0 : index
    %c0_78 = arith.constant 0 : index
    %72 = vector.load %arg5[%c9, %c0_77, %c0_78] : memref<11x8x8xf32, #tpu.memory_space<vmem>>, vector<1x8x8xf32>
    %73 = vector.shape_cast %72 : vector<1x8x8xf32> to vector<8x8xf32>
    %c0_79 = arith.constant 0 : index
    %c0_80 = arith.constant 0 : index
    %74 = vector.load %arg9[%c0_79, %c0_80] : memref<8x258xf32, #tpu.memory_space<vmem>>, vector<8x256xf32>
    %cst_81 = arith.constant dense<0.000000e+00> : vector<8x256xf32>
    %75 = tpu.matmul %73, %74, %cst_81 {dimension_numbers = #tpu.dot_dimension_numbers<[1], [0], [0], [1], [0, 0, 1, 1], [], []>} : vector<8x8xf32>, vector<8x256xf32>, vector<8x256xf32> -> vector<8x256xf32>
    %76 = vector.broadcast %12 : vector<1x256xf32> to vector<8x256xf32>
    %77 = arith.mulf %76, %75 : vector<8x256xf32>
    %78 = arith.addf %70, %77 : vector<8x256xf32>
    %c10 = arith.constant 10 : index
    %c0_82 = arith.constant 0 : index
    %c0_83 = arith.constant 0 : index
    %79 = vector.load %arg5[%c10, %c0_82, %c0_83] : memref<11x8x8xf32, #tpu.memory_space<vmem>>, vector<1x8x8xf32>
    %80 = vector.shape_cast %79 : vector<1x8x8xf32> to vector<8x8xf32>
    %c0_84 = arith.constant 0 : index
    %c2_85 = arith.constant 2 : index
    %81 = vector.load %arg9[%c0_84, %c2_85] : memref<8x258xf32, #tpu.memory_space<vmem>>, vector<8x256xf32>
    %cst_86 = arith.constant dense<0.000000e+00> : vector<8x256xf32>
    %82 = tpu.matmul %80, %81, %cst_86 {dimension_numbers = #tpu.dot_dimension_numbers<[1], [0], [0], [1], [0, 0, 1, 1], [], []>} : vector<8x8xf32>, vector<8x256xf32>, vector<8x256xf32> -> vector<8x256xf32>
    %83 = vector.broadcast %13 : vector<1x256xf32> to vector<8x256xf32>
    %84 = arith.mulf %83, %82 : vector<8x256xf32>
    %85 = arith.addf %78, %84 : vector<8x256xf32>
    %cst_87 = arith.constant 0.000000e+00 : f32
    %86 = vector.broadcast %cst_87 : f32 to vector<8x256xf32>
    %87 = arith.maximumf %85, %86 : vector<8x256xf32>
    %88 = arith.addf %19, %87 : vector<8x256xf32>
    %c0_88 = arith.constant 0 : index
    %c0_89 = arith.constant 0 : index
    %c0_90 = arith.constant 0 : index
    %89 = vector.load %arg7[%c0_88, %c0_89, %c0_90] : memref<1x8x2048xf32, #tpu.memory_space<vmem>>, vector<1x8x256xf32>
    %90 = vector.shape_cast %89 : vector<1x8x256xf32> to vector<8x256xf32>
    %91 = vector.shape_cast %88 : vector<8x256xf32> to vector<1x8x256xf32>
    tpu.vector_store %arg7[%c0_88, %c0_89, %c0_90], %91 {strides = array<i32>} : memref<1x8x2048xf32, #tpu.memory_space<vmem>>, vector<1x8x256xf32>,
    %c0_91 = arith.constant 0 : index
    %c0_92 = arith.constant 0 : index
    %c0_93 = arith.constant 0 : index
    %92 = vector.load %arg2[%c0_91, %c0_92, %c0_93] : memref<1x8x2048xf32, #tpu.memory_space<vmem>>, vector<1x8x256xf32>
    %93 = vector.shape_cast %92 : vector<1x8x256xf32> to vector<8x256xf32>
    %c0_94 = arith.constant 0 : index
    %c0_95 = arith.constant 0 : index
    %c256_96 = arith.constant 256 : index
    %94 = vector.load %arg2[%c0_94, %c0_95, %c256_96] : memref<1x8x2048xf32, #tpu.memory_space<vmem>>, vector<1x8x256xf32>
    %95 = vector.shape_cast %94 : vector<1x8x256xf32> to vector<8x256xf32>
    %c0_97 = arith.constant 0 : index
    %c0_98 = arith.constant 0 : index
    %c512 = arith.constant 512 : index
    %96 = vector.load %arg2[%c0_97, %c0_98, %c512] : memref<1x8x2048xf32, #tpu.memory_space<vmem>>, vector<1x8x256xf32>
    %97 = vector.shape_cast %96 : vector<1x8x256xf32> to vector<8x256xf32>
    %cst_99 = arith.constant 0.000000e+00 : f32
    %98 = vector.broadcast %cst_99 : f32 to vector<8x256xf32>
    %c0_100 = arith.constant 0 : index
    %c16_101 = arith.constant 16 : index
    %99 = vector.load %arg8[%c0_100, %c16_101] : memref<8x288xf32, #tpu.memory_space<vmem>>, vector<8x256xf32>
    tpu.vector_store %arg8[%c0_100, %c16_101], %93 {strides = array<i32>} : memref<8x288xf32, #tpu.memory_space<vmem>>, vector<8x256xf32>,
    %c0_102 = arith.constant 0 : index
    %c0_103 = arith.constant 0 : index
    %100 = vector.load %arg8[%c0_102, %c0_103] : memref<8x288xf32, #tpu.memory_space<vmem>>, vector<8x256xf32>
    %c0_104 = arith.constant 0 : index
    %c0_105 = arith.constant 0 : index
    %c0_106 = arith.constant 0 : index
    %101 = vector.load %arg5[%c0_104, %c0_105, %c0_106] : memref<11x8x8xf32, #tpu.memory_space<vmem>>, vector<1x8x8xf32>
    %102 = vector.shape_cast %101 : vector<1x8x8xf32> to vector<8x8xf32>
    %cst_107 = arith.constant dense<0.000000e+00> : vector<8x256xf32>
    %103 = tpu.matmul %102, %100, %cst_107 {dimension_numbers = #tpu.dot_dimension_numbers<[1], [0], [0], [1], [0, 0, 1, 1], [], []>} : vector<8x8xf32>, vector<8x256xf32>, vector<8x256xf32> -> vector<8x256xf32>
    %104 = arith.addf %98, %103 : vector<8x256xf32>
    %c0_108 = arith.constant 0 : index
    %c16_109 = arith.constant 16 : index
    %105 = vector.load %arg8[%c0_108, %c16_109] : memref<8x288xf32, #tpu.memory_space<vmem>>, vector<8x256xf32>
    %c1_110 = arith.constant 1 : index
    %c0_111 = arith.constant 0 : index
    %c0_112 = arith.constant 0 : index
    %106 = vector.load %arg5[%c1_110, %c0_111, %c0_112] : memref<11x8x8xf32, #tpu.memory_space<vmem>>, vector<1x8x8xf32>
    %107 = vector.shape_cast %106 : vector<1x8x8xf32> to vector<8x8xf32>
    %cst_113 = arith.constant dense<0.000000e+00> : vector<8x256xf32>
    %108 = tpu.matmul %107, %105, %cst_113 {dimension_numbers = #tpu.dot_dimension_numbers<[1], [0], [0], [1], [0, 0, 1, 1], [], []>} : vector<8x8xf32>, vector<8x256xf32>, vector<8x256xf32> -> vector<8x256xf32>
    %109 = arith.addf %104, %108 : vector<8x256xf32>
    %c0_114 = arith.constant 0 : index
    %c32_115 = arith.constant 32 : index
    %110 = vector.load %arg8[%c0_114, %c32_115] : memref<8x288xf32, #tpu.memory_space<vmem>>, vector<8x256xf32>
    %c2_116 = arith.constant 2 : index
    %c0_117 = arith.constant 0 : index
    %c0_118 = arith.constant 0 : index
    %111 = vector.load %arg5[%c2_116, %c0_117, %c0_118] : memref<11x8x8xf32, #tpu.memory_space<vmem>>, vector<1x8x8xf32>
    %112 = vector.shape_cast %111 : vector<1x8x8xf32> to vector<8x8xf32>
    %cst_119 = arith.constant dense<0.000000e+00> : vector<8x256xf32>
    %113 = tpu.matmul %112, %110, %cst_119 {dimension_numbers = #tpu.dot_dimension_numbers<[1], [0], [0], [1], [0, 0, 1, 1], [], []>} : vector<8x8xf32>, vector<8x256xf32>, vector<8x256xf32> -> vector<8x256xf32>
    %114 = arith.addf %109, %113 : vector<8x256xf32>
    %c0_120 = arith.constant 0 : index
    %c16_121 = arith.constant 16 : index
    %115 = vector.load %arg8[%c0_120, %c16_121] : memref<8x288xf32, #tpu.memory_space<vmem>>, vector<8x256xf32>
    tpu.vector_store %arg8[%c0_120, %c16_121], %95 {strides = array<i32>} : memref<8x288xf32, #tpu.memory_space<vmem>>, vector<8x256xf32>,
    %c0_122 = arith.constant 0 : index
    %c0_123 = arith.constant 0 : index
    %116 = vector.load %arg8[%c0_122, %c0_123] : memref<8x288xf32, #tpu.memory_space<vmem>>, vector<8x256xf32>
    %c3_124 = arith.constant 3 : index
    %c0_125 = arith.constant 0 : index
    %c0_126 = arith.constant 0 : index
    %117 = vector.load %arg5[%c3_124, %c0_125, %c0_126] : memref<11x8x8xf32, #tpu.memory_space<vmem>>, vector<1x8x8xf32>
    %118 = vector.shape_cast %117 : vector<1x8x8xf32> to vector<8x8xf32>
    %cst_127 = arith.constant dense<0.000000e+00> : vector<8x256xf32>
    %119 = tpu.matmul %118, %116, %cst_127 {dimension_numbers = #tpu.dot_dimension_numbers<[1], [0], [0], [1], [0, 0, 1, 1], [], []>} : vector<8x8xf32>, vector<8x256xf32>, vector<8x256xf32> -> vector<8x256xf32>
    %120 = arith.addf %114, %119 : vector<8x256xf32>
    %c0_128 = arith.constant 0 : index
    %c16_129 = arith.constant 16 : index
    %121 = vector.load %arg8[%c0_128, %c16_129] : memref<8x288xf32, #tpu.memory_space<vmem>>, vector<8x256xf32>
    %c4_130 = arith.constant 4 : index
    %c0_131 = arith.constant 0 : index
    %c0_132 = arith.constant 0 : index
    %122 = vector.load %arg5[%c4_130, %c0_131, %c0_132] : memref<11x8x8xf32, #tpu.memory_space<vmem>>, vector<1x8x8xf32>
    %123 = vector.shape_cast %122 : vector<1x8x8xf32> to vector<8x8xf32>
    %cst_133 = arith.constant dense<0.000000e+00> : vector<8x256xf32>
    %124 = tpu.matmul %123, %121, %cst_133 {dimension_numbers = #tpu.dot_dimension_numbers<[1], [0], [0], [1], [0, 0, 1, 1], [], []>} : vector<8x8xf32>, vector<8x256xf32>, vector<8x256xf32> -> vector<8x256xf32>
    %125 = arith.addf %120, %124 : vector<8x256xf32>
    %c0_134 = arith.constant 0 : index
    %c32_135 = arith.constant 32 : index
    %126 = vector.load %arg8[%c0_134, %c32_135] : memref<8x288xf32, #tpu.memory_space<vmem>>, vector<8x256xf32>
    %c5_136 = arith.constant 5 : index
    %c0_137 = arith.constant 0 : index
    %c0_138 = arith.constant 0 : index
    %127 = vector.load %arg5[%c5_136, %c0_137, %c0_138] : memref<11x8x8xf32, #tpu.memory_space<vmem>>, vector<1x8x8xf32>
    %128 = vector.shape_cast %127 : vector<1x8x8xf32> to vector<8x8xf32>
    %cst_139 = arith.constant dense<0.000000e+00> : vector<8x256xf32>
    %129 = tpu.matmul %128, %126, %cst_139 {dimension_numbers = #tpu.dot_dimension_numbers<[1], [0], [0], [1], [0, 0, 1, 1], [], []>} : vector<8x8xf32>, vector<8x256xf32>, vector<8x256xf32> -> vector<8x256xf32>
    %130 = arith.addf %125, %129 : vector<8x256xf32>
    %c0_140 = arith.constant 0 : index
    %c16_141 = arith.constant 16 : index
    %131 = vector.load %arg8[%c0_140, %c16_141] : memref<8x288xf32, #tpu.memory_space<vmem>>, vector<8x256xf32>
    tpu.vector_store %arg8[%c0_140, %c16_141], %97 {strides = array<i32>} : memref<8x288xf32, #tpu.memory_space<vmem>>, vector<8x256xf32>,
    %c0_142 = arith.constant 0 : index
    %c0_143 = arith.constant 0 : index
    %132 = vector.load %arg8[%c0_142, %c0_143] : memref<8x288xf32, #tpu.memory_space<vmem>>, vector<8x256xf32>
    %c6_144 = arith.constant 6 : index
    %c0_145 = arith.constant 0 : index
    %c0_146 = arith.constant 0 : index
    %133 = vector.load %arg5[%c6_144, %c0_145, %c0_146] : memref<11x8x8xf32, #tpu.memory_space<vmem>>, vector<1x8x8xf32>
    %134 = vector.shape_cast %133 : vector<1x8x8xf32> to vector<8x8xf32>
    %cst_147 = arith.constant dense<0.000000e+00> : vector<8x256xf32>
    %135 = tpu.matmul %134, %132, %cst_147 {dimension_numbers = #tpu.dot_dimension_numbers<[1], [0], [0], [1], [0, 0, 1, 1], [], []>} : vector<8x8xf32>, vector<8x256xf32>, vector<8x256xf32> -> vector<8x256xf32>
    %136 = arith.addf %130, %135 : vector<8x256xf32>
    %c0_148 = arith.constant 0 : index
    %c16_149 = arith.constant 16 : index
    %137 = vector.load %arg8[%c0_148, %c16_149] : memref<8x288xf32, #tpu.memory_space<vmem>>, vector<8x256xf32>
    %c7_150 = arith.constant 7 : index
    %c0_151 = arith.constant 0 : index
    %c0_152 = arith.constant 0 : index
    %138 = vector.load %arg5[%c7_150, %c0_151, %c0_152] : memref<11x8x8xf32, #tpu.memory_space<vmem>>, vector<1x8x8xf32>
    %139 = vector.shape_cast %138 : vector<1x8x8xf32> to vector<8x8xf32>
    %cst_153 = arith.constant dense<0.000000e+00> : vector<8x256xf32>
    %140 = tpu.matmul %139, %137, %cst_153 {dimension_numbers = #tpu.dot_dimension_numbers<[1], [0], [0], [1], [0, 0, 1, 1], [], []>} : vector<8x8xf32>, vector<8x256xf32>, vector<8x256xf32> -> vector<8x256xf32>
    %141 = arith.addf %136, %140 : vector<8x256xf32>
    %c0_154 = arith.constant 0 : index
    %c32_155 = arith.constant 32 : index
    %142 = vector.load %arg8[%c0_154, %c32_155] : memref<8x288xf32, #tpu.memory_space<vmem>>, vector<8x256xf32>
    %c8_156 = arith.constant 8 : index
    %c0_157 = arith.constant 0 : index
    %c0_158 = arith.constant 0 : index
    %143 = vector.load %arg5[%c8_156, %c0_157, %c0_158] : memref<11x8x8xf32, #tpu.memory_space<vmem>>, vector<1x8x8xf32>
    %144 = vector.shape_cast %143 : vector<1x8x8xf32> to vector<8x8xf32>
    %cst_159 = arith.constant dense<0.000000e+00> : vector<8x256xf32>
    %145 = tpu.matmul %144, %142, %cst_159 {dimension_numbers = #tpu.dot_dimension_numbers<[1], [0], [0], [1], [0, 0, 1, 1], [], []>} : vector<8x8xf32>, vector<8x256xf32>, vector<8x256xf32> -> vector<8x256xf32>
    %146 = arith.addf %141, %145 : vector<8x256xf32>
    %c0_160 = arith.constant 0 : index
    %c1_161 = arith.constant 1 : index
    %147 = vector.load %arg9[%c0_160, %c1_161] : memref<8x258xf32, #tpu.memory_space<vmem>>, vector<8x256xf32>
    tpu.vector_store %arg9[%c0_160, %c1_161], %95 {strides = array<i32>} : memref<8x258xf32, #tpu.memory_space<vmem>>, vector<8x256xf32>,
    %c9_162 = arith.constant 9 : index
    %c0_163 = arith.constant 0 : index
    %c0_164 = arith.constant 0 : index
    %148 = vector.load %arg5[%c9_162, %c0_163, %c0_164] : memref<11x8x8xf32, #tpu.memory_space<vmem>>, vector<1x8x8xf32>
    %149 = vector.shape_cast %148 : vector<1x8x8xf32> to vector<8x8xf32>
    %c0_165 = arith.constant 0 : index
    %c0_166 = arith.constant 0 : index
    %150 = vector.load %arg9[%c0_165, %c0_166] : memref<8x258xf32, #tpu.memory_space<vmem>>, vector<8x256xf32>
    %cst_167 = arith.constant dense<0.000000e+00> : vector<8x256xf32>
    %151 = tpu.matmul %149, %150, %cst_167 {dimension_numbers = #tpu.dot_dimension_numbers<[1], [0], [0], [1], [0, 0, 1, 1], [], []>} : vector<8x8xf32>, vector<8x256xf32>, vector<8x256xf32> -> vector<8x256xf32>
    %152 = vector.broadcast %12 : vector<1x256xf32> to vector<8x256xf32>
    %153 = arith.mulf %152, %151 : vector<8x256xf32>
    %154 = arith.addf %146, %153 : vector<8x256xf32>
    %c10_168 = arith.constant 10 : index
    %c0_169 = arith.constant 0 : index
    %c0_170 = arith.constant 0 : index
    %155 = vector.load %arg5[%c10_168, %c0_169, %c0_170] : memref<11x8x8xf32, #tpu.memory_space<vmem>>, vector<1x8x8xf32>
    %156 = vector.shape_cast %155 : vector<1x8x8xf32> to vector<8x8xf32>
    %c0_171 = arith.constant 0 : index
    %c2_172 = arith.constant 2 : index
    %157 = vector.load %arg9[%c0_171, %c2_172] : memref<8x258xf32, #tpu.memory_space<vmem>>, vector<8x256xf32>
    %cst_173 = arith.constant dense<0.000000e+00> : vector<8x256xf32>
    %158 = tpu.matmul %156, %157, %cst_173 {dimension_numbers = #tpu.dot_dimension_numbers<[1], [0], [0], [1], [0, 0, 1, 1], [], []>} : vector<8x8xf32>, vector<8x256xf32>, vector<8x256xf32> -> vector<8x256xf32>
    %159 = vector.broadcast %13 : vector<1x256xf32> to vector<8x256xf32>
    %160 = arith.mulf %159, %158 : vector<8x256xf32>
    %161 = arith.addf %154, %160 : vector<8x256xf32>
    %cst_174 = arith.constant 0.000000e+00 : f32
    %162 = vector.broadcast %cst_174 : f32 to vector<8x256xf32>
    %163 = arith.maximumf %161, %162 : vector<8x256xf32>
    %164 = arith.addf %95, %163 : vector<8x256xf32>
    %c0_175 = arith.constant 0 : index
    %c0_176 = arith.constant 0 : index
    %c256_177 = arith.constant 256 : index
    %165 = vector.load %arg7[%c0_175, %c0_176, %c256_177] : memref<1x8x2048xf32, #tpu.memory_space<vmem>>, vector<1x8x256xf32>
    %166 = vector.shape_cast %165 : vector<1x8x256xf32> to vector<8x256xf32>
    %167 = vector.shape_cast %164 : vector<8x256xf32> to vector<1x8x256xf32>
    tpu.vector_store %arg7[%c0_175, %c0_176, %c256_177], %167 {strides = array<i32>} : memref<1x8x2048xf32, #tpu.memory_space<vmem>>, vector<1x8x256xf32>,
    %c0_178 = arith.constant 0 : index
    %c0_179 = arith.constant 0 : index
    %c256_180 = arith.constant 256 : index
    %168 = vector.load %arg2[%c0_178, %c0_179, %c256_180] : memref<1x8x2048xf32, #tpu.memory_space<vmem>>, vector<1x8x256xf32>
    %169 = vector.shape_cast %168 : vector<1x8x256xf32> to vector<8x256xf32>
    %c0_181 = arith.constant 0 : index
    %c0_182 = arith.constant 0 : index
    %c512_183 = arith.constant 512 : index
    %170 = vector.load %arg2[%c0_181, %c0_182, %c512_183] : memref<1x8x2048xf32, #tpu.memory_space<vmem>>, vector<1x8x256xf32>
    %171 = vector.shape_cast %170 : vector<1x8x256xf32> to vector<8x256xf32>
    %c0_184 = arith.constant 0 : index
    %c0_185 = arith.constant 0 : index
    %c768 = arith.constant 768 : index
    %172 = vector.load %arg2[%c0_184, %c0_185, %c768] : memref<1x8x2048xf32, #tpu.memory_space<vmem>>, vector<1x8x256xf32>
    %173 = vector.shape_cast %172 : vector<1x8x256xf32> to vector<8x256xf32>
    %cst_186 = arith.constant 0.000000e+00 : f32
    %174 = vector.broadcast %cst_186 : f32 to vector<8x256xf32>
    %c0_187 = arith.constant 0 : index
    %c16_188 = arith.constant 16 : index
    %175 = vector.load %arg8[%c0_187, %c16_188] : memref<8x288xf32, #tpu.memory_space<vmem>>, vector<8x256xf32>
    tpu.vector_store %arg8[%c0_187, %c16_188], %169 {strides = array<i32>} : memref<8x288xf32, #tpu.memory_space<vmem>>, vector<8x256xf32>,
    %c0_189 = arith.constant 0 : index
    %c0_190 = arith.constant 0 : index
    %176 = vector.load %arg8[%c0_189, %c0_190] : memref<8x288xf32, #tpu.memory_space<vmem>>, vector<8x256xf32>
    %c0_191 = arith.constant 0 : index
    %c0_192 = arith.constant 0 : index
    %c0_193 = arith.constant 0 : index
    %177 = vector.load %arg5[%c0_191, %c0_192, %c0_193] : memref<11x8x8xf32, #tpu.memory_space<vmem>>, vector<1x8x8xf32>
    %178 = vector.shape_cast %177 : vector<1x8x8xf32> to vector<8x8xf32>
    %cst_194 = arith.constant dense<0.000000e+00> : vector<8x256xf32>
    %179 = tpu.matmul %178, %176, %cst_194 {dimension_numbers = #tpu.dot_dimension_numbers<[1], [0], [0], [1], [0, 0, 1, 1], [], []>} : vector<8x8xf32>, vector<8x256xf32>, vector<8x256xf32> -> vector<8x256xf32>
    %180 = arith.addf %174, %179 : vector<8x256xf32>
    %c0_195 = arith.constant 0 : index
    %c16_196 = arith.constant 16 : index
    %181 = vector.load %arg8[%c0_195, %c16_196] : memref<8x288xf32, #tpu.memory_space<vmem>>, vector<8x256xf32>
    %c1_197 = arith.constant 1 : index
    %c0_198 = arith.constant 0 : index
    %c0_199 = arith.constant 0 : index
    %182 = vector.load %arg5[%c1_197, %c0_198, %c0_199] : memref<11x8x8xf32, #tpu.memory_space<vmem>>, vector<1x8x8xf32>
    %183 = vector.shape_cast %182 : vector<1x8x8xf32> to vector<8x8xf32>
    %cst_200 = arith.constant dense<0.000000e+00> : vector<8x256xf32>
    %184 = tpu.matmul %183, %181, %cst_200 {dimension_numbers = #tpu.dot_dimension_numbers<[1], [0], [0], [1], [0, 0, 1, 1], [], []>} : vector<8x8xf32>, vector<8x256xf32>, vector<8x256xf32> -> vector<8x256xf32>
    %185 = arith.addf %180, %184 : vector<8x256xf32>
    %c0_201 = arith.constant 0 : index
    %c32_202 = arith.constant 32 : index
    %186 = vector.load %arg8[%c0_201, %c32_202] : memref<8x288xf32, #tpu.memory_space<vmem>>, vector<8x256xf32>
    %c2_203 = arith.constant 2 : index
    %c0_204 = arith.constant 0 : index
    %c0_205 = arith.constant 0 : index
    %187 = vector.load %arg5[%c2_203, %c0_204, %c0_205] : memref<11x8x8xf32, #tpu.memory_space<vmem>>, vector<1x8x8xf32>
    %188 = vector.shape_cast %187 : vector<1x8x8xf32> to vector<8x8xf32>
    %cst_206 = arith.constant dense<0.000000e+00> : vector<8x256xf32>
    %189 = tpu.matmul %188, %186, %cst_206 {dimension_numbers = #tpu.dot_dimension_numbers<[1], [0], [0], [1], [0, 0, 1, 1], [], []>} : vector<8x8xf32>, vector<8x256xf32>, vector<8x256xf32> -> vector<8x256xf32>
    %190 = arith.addf %185, %189 : vector<8x256xf32>
    %c0_207 = arith.constant 0 : index
    %c16_208 = arith.constant 16 : index
    %191 = vector.load %arg8[%c0_207, %c16_208] : memref<8x288xf32, #tpu.memory_space<vmem>>, vector<8x256xf32>
    tpu.vector_store %arg8[%c0_207, %c16_208], %171 {strides = array<i32>} : memref<8x288xf32, #tpu.memory_space<vmem>>, vector<8x256xf32>,
    %c0_209 = arith.constant 0 : index
    %c0_210 = arith.constant 0 : index
    %192 = vector.load %arg8[%c0_209, %c0_210] : memref<8x288xf32, #tpu.memory_space<vmem>>, vector<8x256xf32>
    %c3_211 = arith.constant 3 : index
    %c0_212 = arith.constant 0 : index
    %c0_213 = arith.constant 0 : index
    %193 = vector.load %arg5[%c3_211, %c0_212, %c0_213] : memref<11x8x8xf32, #tpu.memory_space<vmem>>, vector<1x8x8xf32>
    %194 = vector.shape_cast %193 : vector<1x8x8xf32> to vector<8x8xf32>
    %cst_214 = arith.constant dense<0.000000e+00> : vector<8x256xf32>
    %195 = tpu.matmul %194, %192, %cst_214 {dimension_numbers = #tpu.dot_dimension_numbers<[1], [0], [0], [1], [0, 0, 1, 1], [], []>} : vector<8x8xf32>, vector<8x256xf32>, vector<8x256xf32> -> vector<8x256xf32>
    %196 = arith.addf %190, %195 : vector<8x256xf32>
    %c0_215 = arith.constant 0 : index
    %c16_216 = arith.constant 16 : index
    %197 = vector.load %arg8[%c0_215, %c16_216] : memref<8x288xf32, #tpu.memory_space<vmem>>, vector<8x256xf32>
    %c4_217 = arith.constant 4 : index
    %c0_218 = arith.constant 0 : index
    %c0_219 = arith.constant 0 : index
    %198 = vector.load %arg5[%c4_217, %c0_218, %c0_219] : memref<11x8x8xf32, #tpu.memory_space<vmem>>, vector<1x8x8xf32>
    %199 = vector.shape_cast %198 : vector<1x8x8xf32> to vector<8x8xf32>
    %cst_220 = arith.constant dense<0.000000e+00> : vector<8x256xf32>
    %200 = tpu.matmul %199, %197, %cst_220 {dimension_numbers = #tpu.dot_dimension_numbers<[1], [0], [0], [1], [0, 0, 1, 1], [], []>} : vector<8x8xf32>, vector<8x256xf32>, vector<8x256xf32> -> vector<8x256xf32>
    %201 = arith.addf %196, %200 : vector<8x256xf32>
    %c0_221 = arith.constant 0 : index
    %c32_222 = arith.constant 32 : index
    %202 = vector.load %arg8[%c0_221, %c32_222] : memref<8x288xf32, #tpu.memory_space<vmem>>, vector<8x256xf32>
    %c5_223 = arith.constant 5 : index
    %c0_224 = arith.constant 0 : index
    %c0_225 = arith.constant 0 : index
    %203 = vector.load %arg5[%c5_223, %c0_224, %c0_225] : memref<11x8x8xf32, #tpu.memory_space<vmem>>, vector<1x8x8xf32>
    %204 = vector.shape_cast %203 : vector<1x8x8xf32> to vector<8x8xf32>
    %cst_226 = arith.constant dense<0.000000e+00> : vector<8x256xf32>
    %205 = tpu.matmul %204, %202, %cst_226 {dimension_numbers = #tpu.dot_dimension_numbers<[1], [0], [0], [1], [0, 0, 1, 1], [], []>} : vector<8x8xf32>, vector<8x256xf32>, vector<8x256xf32> -> vector<8x256xf32>
    %206 = arith.addf %201, %205 : vector<8x256xf32>
    %c0_227 = arith.constant 0 : index
    %c16_228 = arith.constant 16 : index
    %207 = vector.load %arg8[%c0_227, %c16_228] : memref<8x288xf32, #tpu.memory_space<vmem>>, vector<8x256xf32>
    tpu.vector_store %arg8[%c0_227, %c16_228], %173 {strides = array<i32>} : memref<8x288xf32, #tpu.memory_space<vmem>>, vector<8x256xf32>,
    %c0_229 = arith.constant 0 : index
    %c0_230 = arith.constant 0 : index
    %208 = vector.load %arg8[%c0_229, %c0_230] : memref<8x288xf32, #tpu.memory_space<vmem>>, vector<8x256xf32>
    %c6_231 = arith.constant 6 : index
    %c0_232 = arith.constant 0 : index
    %c0_233 = arith.constant 0 : index
    %209 = vector.load %arg5[%c6_231, %c0_232, %c0_233] : memref<11x8x8xf32, #tpu.memory_space<vmem>>, vector<1x8x8xf32>
    %210 = vector.shape_cast %209 : vector<1x8x8xf32> to vector<8x8xf32>
    %cst_234 = arith.constant dense<0.000000e+00> : vector<8x256xf32>
    %211 = tpu.matmul %210, %208, %cst_234 {dimension_numbers = #tpu.dot_dimension_numbers<[1], [0], [0], [1], [0, 0, 1, 1], [], []>} : vector<8x8xf32>, vector<8x256xf32>, vector<8x256xf32> -> vector<8x256xf32>
    %212 = arith.addf %206, %211 : vector<8x256xf32>
    %c0_235 = arith.constant 0 : index
    %c16_236 = arith.constant 16 : index
    %213 = vector.load %arg8[%c0_235, %c16_236] : memref<8x288xf32, #tpu.memory_space<vmem>>, vector<8x256xf32>
    %c7_237 = arith.constant 7 : index
    %c0_238 = arith.constant 0 : index
    %c0_239 = arith.constant 0 : index
    %214 = vector.load %arg5[%c7_237, %c0_238, %c0_239] : memref<11x8x8xf32, #tpu.memory_space<vmem>>, vector<1x8x8xf32>
    %215 = vector.shape_cast %214 : vector<1x8x8xf32> to vector<8x8xf32>
    %cst_240 = arith.constant dense<0.000000e+00> : vector<8x256xf32>
    %216 = tpu.matmul %215, %213, %cst_240 {dimension_numbers = #tpu.dot_dimension_numbers<[1], [0], [0], [1], [0, 0, 1, 1], [], []>} : vector<8x8xf32>, vector<8x256xf32>, vector<8x256xf32> -> vector<8x256xf32>
    %217 = arith.addf %212, %216 : vector<8x256xf32>
    %c0_241 = arith.constant 0 : index
    %c32_242 = arith.constant 32 : index
    %218 = vector.load %arg8[%c0_241, %c32_242] : memref<8x288xf32, #tpu.memory_space<vmem>>, vector<8x256xf32>
    %c8_243 = arith.constant 8 : index
    %c0_244 = arith.constant 0 : index
    %c0_245 = arith.constant 0 : index
    %219 = vector.load %arg5[%c8_243, %c0_244, %c0_245] : memref<11x8x8xf32, #tpu.memory_space<vmem>>, vector<1x8x8xf32>
    %220 = vector.shape_cast %219 : vector<1x8x8xf32> to vector<8x8xf32>
    %cst_246 = arith.constant dense<0.000000e+00> : vector<8x256xf32>
    %221 = tpu.matmul %220, %218, %cst_246 {dimension_numbers = #tpu.dot_dimension_numbers<[1], [0], [0], [1], [0, 0, 1, 1], [], []>} : vector<8x8xf32>, vector<8x256xf32>, vector<8x256xf32> -> vector<8x256xf32>
    %222 = arith.addf %217, %221 : vector<8x256xf32>
    %c0_247 = arith.constant 0 : index
    %c1_248 = arith.constant 1 : index
    %223 = vector.load %arg9[%c0_247, %c1_248] : memref<8x258xf32, #tpu.memory_space<vmem>>, vector<8x256xf32>
    tpu.vector_store %arg9[%c0_247, %c1_248], %171 {strides = array<i32>} : memref<8x258xf32, #tpu.memory_space<vmem>>, vector<8x256xf32>,
    %c9_249 = arith.constant 9 : index
    %c0_250 = arith.constant 0 : index
    %c0_251 = arith.constant 0 : index
    %224 = vector.load %arg5[%c9_249, %c0_250, %c0_251] : memref<11x8x8xf32, #tpu.memory_space<vmem>>, vector<1x8x8xf32>
    %225 = vector.shape_cast %224 : vector<1x8x8xf32> to vector<8x8xf32>
    %c0_252 = arith.constant 0 : index
    %c0_253 = arith.constant 0 : index
    %226 = vector.load %arg9[%c0_252, %c0_253] : memref<8x258xf32, #tpu.memory_space<vmem>>, vector<8x256xf32>
    %cst_254 = arith.constant dense<0.000000e+00> : vector<8x256xf32>
    %227 = tpu.matmul %225, %226, %cst_254 {dimension_numbers = #tpu.dot_dimension_numbers<[1], [0], [0], [1], [0, 0, 1, 1], [], []>} : vector<8x8xf32>, vector<8x256xf32>, vector<8x256xf32> -> vector<8x256xf32>
    %228 = vector.broadcast %12 : vector<1x256xf32> to vector<8x256xf32>
    %229 = arith.mulf %228, %227 : vector<8x256xf32>
    %230 = arith.addf %222, %229 : vector<8x256xf32>
    %c10_255 = arith.constant 10 : index
    %c0_256 = arith.constant 0 : index
    %c0_257 = arith.constant 0 : index
    %231 = vector.load %arg5[%c10_255, %c0_256, %c0_257] : memref<11x8x8xf32, #tpu.memory_space<vmem>>, vector<1x8x8xf32>
    %232 = vector.shape_cast %231 : vector<1x8x8xf32> to vector<8x8xf32>
    %c0_258 = arith.constant 0 : index
    %c2_259 = arith.constant 2 : index
    %233 = vector.load %arg9[%c0_258, %c2_259] : memref<8x258xf32, #tpu.memory_space<vmem>>, vector<8x256xf32>
    %cst_260 = arith.constant dense<0.000000e+00> : vector<8x256xf32>
    %234 = tpu.matmul %232, %233, %cst_260 {dimension_numbers = #tpu.dot_dimension_numbers<[1], [0], [0], [1], [0, 0, 1, 1], [], []>} : vector<8x8xf32>, vector<8x256xf32>, vector<8x256xf32> -> vector<8x256xf32>
    %235 = vector.broadcast %13 : vector<1x256xf32> to vector<8x256xf32>
    %236 = arith.mulf %235, %234 : vector<8x256xf32>
    %237 = arith.addf %230, %236 : vector<8x256xf32>
    %cst_261 = arith.constant 0.000000e+00 : f32
    %238 = vector.broadcast %cst_261 : f32 to vector<8x256xf32>
    %239 = arith.maximumf %237, %238 : vector<8x256xf32>
    %240 = arith.addf %171, %239 : vector<8x256xf32>
    %c0_262 = arith.constant 0 : index
    %c0_263 = arith.constant 0 : index
    %c512_264 = arith.constant 512 : index
    %241 = vector.load %arg7[%c0_262, %c0_263, %c512_264] : memref<1x8x2048xf32, #tpu.memory_space<vmem>>, vector<1x8x256xf32>
    %242 = vector.shape_cast %241 : vector<1x8x256xf32> to vector<8x256xf32>
    %243 = vector.shape_cast %240 : vector<8x256xf32> to vector<1x8x256xf32>
    tpu.vector_store %arg7[%c0_262, %c0_263, %c512_264], %243 {strides = array<i32>} : memref<1x8x2048xf32, #tpu.memory_space<vmem>>, vector<1x8x256xf32>,
    %c0_265 = arith.constant 0 : index
    %c0_266 = arith.constant 0 : index
    %c512_267 = arith.constant 512 : index
    %244 = vector.load %arg2[%c0_265, %c0_266, %c512_267] : memref<1x8x2048xf32, #tpu.memory_space<vmem>>, vector<1x8x256xf32>
    %245 = vector.shape_cast %244 : vector<1x8x256xf32> to vector<8x256xf32>
    %c0_268 = arith.constant 0 : index
    %c0_269 = arith.constant 0 : index
    %c768_270 = arith.constant 768 : index
    %246 = vector.load %arg2[%c0_268, %c0_269, %c768_270] : memref<1x8x2048xf32, #tpu.memory_space<vmem>>, vector<1x8x256xf32>
    %247 = vector.shape_cast %246 : vector<1x8x256xf32> to vector<8x256xf32>
    %c0_271 = arith.constant 0 : index
    %c0_272 = arith.constant 0 : index
    %c1024 = arith.constant 1024 : index
    %248 = vector.load %arg2[%c0_271, %c0_272, %c1024] : memref<1x8x2048xf32, #tpu.memory_space<vmem>>, vector<1x8x256xf32>
    %249 = vector.shape_cast %248 : vector<1x8x256xf32> to vector<8x256xf32>
    %cst_273 = arith.constant 0.000000e+00 : f32
    %250 = vector.broadcast %cst_273 : f32 to vector<8x256xf32>
    %c0_274 = arith.constant 0 : index
    %c16_275 = arith.constant 16 : index
    %251 = vector.load %arg8[%c0_274, %c16_275] : memref<8x288xf32, #tpu.memory_space<vmem>>, vector<8x256xf32>
    tpu.vector_store %arg8[%c0_274, %c16_275], %245 {strides = array<i32>} : memref<8x288xf32, #tpu.memory_space<vmem>>, vector<8x256xf32>,
    %c0_276 = arith.constant 0 : index
    %c0_277 = arith.constant 0 : index
    %252 = vector.load %arg8[%c0_276, %c0_277] : memref<8x288xf32, #tpu.memory_space<vmem>>, vector<8x256xf32>
    %c0_278 = arith.constant 0 : index
    %c0_279 = arith.constant 0 : index
    %c0_280 = arith.constant 0 : index
    %253 = vector.load %arg5[%c0_278, %c0_279, %c0_280] : memref<11x8x8xf32, #tpu.memory_space<vmem>>, vector<1x8x8xf32>
    %254 = vector.shape_cast %253 : vector<1x8x8xf32> to vector<8x8xf32>
    %cst_281 = arith.constant dense<0.000000e+00> : vector<8x256xf32>
    %255 = tpu.matmul %254, %252, %cst_281 {dimension_numbers = #tpu.dot_dimension_numbers<[1], [0], [0], [1], [0, 0, 1, 1], [], []>} : vector<8x8xf32>, vector<8x256xf32>, vector<8x256xf32> -> vector<8x256xf32>
    %256 = arith.addf %250, %255 : vector<8x256xf32>
    %c0_282 = arith.constant 0 : index
    %c16_283 = arith.constant 16 : index
    %257 = vector.load %arg8[%c0_282, %c16_283] : memref<8x288xf32, #tpu.memory_space<vmem>>, vector<8x256xf32>
    %c1_284 = arith.constant 1 : index
    %c0_285 = arith.constant 0 : index
    %c0_286 = arith.constant 0 : index
    %258 = vector.load %arg5[%c1_284, %c0_285, %c0_286] : memref<11x8x8xf32, #tpu.memory_space<vmem>>, vector<1x8x8xf32>
    %259 = vector.shape_cast %258 : vector<1x8x8xf32> to vector<8x8xf32>
    %cst_287 = arith.constant dense<0.000000e+00> : vector<8x256xf32>
    %260 = tpu.matmul %259, %257, %cst_287 {dimension_numbers = #tpu.dot_dimension_numbers<[1], [0], [0], [1], [0, 0, 1, 1], [], []>} : vector<8x8xf32>, vector<8x256xf32>, vector<8x256xf32> -> vector<8x256xf32>
    %261 = arith.addf %256, %260 : vector<8x256xf32>
    %c0_288 = arith.constant 0 : index
    %c32_289 = arith.constant 32 : index
    %262 = vector.load %arg8[%c0_288, %c32_289] : memref<8x288xf32, #tpu.memory_space<vmem>>, vector<8x256xf32>
    %c2_290 = arith.constant 2 : index
    %c0_291 = arith.constant 0 : index
    %c0_292 = arith.constant 0 : index
    %263 = vector.load %arg5[%c2_290, %c0_291, %c0_292] : memref<11x8x8xf32, #tpu.memory_space<vmem>>, vector<1x8x8xf32>
    %264 = vector.shape_cast %263 : vector<1x8x8xf32> to vector<8x8xf32>
    %cst_293 = arith.constant dense<0.000000e+00> : vector<8x256xf32>
    %265 = tpu.matmul %264, %262, %cst_293 {dimension_numbers = #tpu.dot_dimension_numbers<[1], [0], [0], [1], [0, 0, 1, 1], [], []>} : vector<8x8xf32>, vector<8x256xf32>, vector<8x256xf32> -> vector<8x256xf32>
    %266 = arith.addf %261, %265 : vector<8x256xf32>
    %c0_294 = arith.constant 0 : index
    %c16_295 = arith.constant 16 : index
    %267 = vector.load %arg8[%c0_294, %c16_295] : memref<8x288xf32, #tpu.memory_space<vmem>>, vector<8x256xf32>
    tpu.vector_store %arg8[%c0_294, %c16_295], %247 {strides = array<i32>} : memref<8x288xf32, #tpu.memory_space<vmem>>, vector<8x256xf32>,
    %c0_296 = arith.constant 0 : index
    %c0_297 = arith.constant 0 : index
    %268 = vector.load %arg8[%c0_296, %c0_297] : memref<8x288xf32, #tpu.memory_space<vmem>>, vector<8x256xf32>
    %c3_298 = arith.constant 3 : index
    %c0_299 = arith.constant 0 : index
    %c0_300 = arith.constant 0 : index
    %269 = vector.load %arg5[%c3_298, %c0_299, %c0_300] : memref<11x8x8xf32, #tpu.memory_space<vmem>>, vector<1x8x8xf32>
    %270 = vector.shape_cast %269 : vector<1x8x8xf32> to vector<8x8xf32>
    %cst_301 = arith.constant dense<0.000000e+00> : vector<8x256xf32>
    %271 = tpu.matmul %270, %268, %cst_301 {dimension_numbers = #tpu.dot_dimension_numbers<[1], [0], [0], [1], [0, 0, 1, 1], [], []>} : vector<8x8xf32>, vector<8x256xf32>, vector<8x256xf32> -> vector<8x256xf32>
    %272 = arith.addf %266, %271 : vector<8x256xf32>
    %c0_302 = arith.constant 0 : index
    %c16_303 = arith.constant 16 : index
    %273 = vector.load %arg8[%c0_302, %c16_303] : memref<8x288xf32, #tpu.memory_space<vmem>>, vector<8x256xf32>
    %c4_304 = arith.constant 4 : index
    %c0_305 = arith.constant 0 : index
    %c0_306 = arith.constant 0 : index
    %274 = vector.load %arg5[%c4_304, %c0_305, %c0_306] : memref<11x8x8xf32, #tpu.memory_space<vmem>>, vector<1x8x8xf32>
    %275 = vector.shape_cast %274 : vector<1x8x8xf32> to vector<8x8xf32>
    %cst_307 = arith.constant dense<0.000000e+00> : vector<8x256xf32>
    %276 = tpu.matmul %275, %273, %cst_307 {dimension_numbers = #tpu.dot_dimension_numbers<[1], [0], [0], [1], [0, 0, 1, 1], [], []>} : vector<8x8xf32>, vector<8x256xf32>, vector<8x256xf32> -> vector<8x256xf32>
    %277 = arith.addf %272, %276 : vector<8x256xf32>
    %c0_308 = arith.constant 0 : index
    %c32_309 = arith.constant 32 : index
    %278 = vector.load %arg8[%c0_308, %c32_309] : memref<8x288xf32, #tpu.memory_space<vmem>>, vector<8x256xf32>
    %c5_310 = arith.constant 5 : index
    %c0_311 = arith.constant 0 : index
    %c0_312 = arith.constant 0 : index
    %279 = vector.load %arg5[%c5_310, %c0_311, %c0_312] : memref<11x8x8xf32, #tpu.memory_space<vmem>>, vector<1x8x8xf32>
    %280 = vector.shape_cast %279 : vector<1x8x8xf32> to vector<8x8xf32>
    %cst_313 = arith.constant dense<0.000000e+00> : vector<8x256xf32>
    %281 = tpu.matmul %280, %278, %cst_313 {dimension_numbers = #tpu.dot_dimension_numbers<[1], [0], [0], [1], [0, 0, 1, 1], [], []>} : vector<8x8xf32>, vector<8x256xf32>, vector<8x256xf32> -> vector<8x256xf32>
    %282 = arith.addf %277, %281 : vector<8x256xf32>
    %c0_314 = arith.constant 0 : index
    %c16_315 = arith.constant 16 : index
    %283 = vector.load %arg8[%c0_314, %c16_315] : memref<8x288xf32, #tpu.memory_space<vmem>>, vector<8x256xf32>
    tpu.vector_store %arg8[%c0_314, %c16_315], %249 {strides = array<i32>} : memref<8x288xf32, #tpu.memory_space<vmem>>, vector<8x256xf32>,
    %c0_316 = arith.constant 0 : index
    %c0_317 = arith.constant 0 : index
    %284 = vector.load %arg8[%c0_316, %c0_317] : memref<8x288xf32, #tpu.memory_space<vmem>>, vector<8x256xf32>
    %c6_318 = arith.constant 6 : index
    %c0_319 = arith.constant 0 : index
    %c0_320 = arith.constant 0 : index
    %285 = vector.load %arg5[%c6_318, %c0_319, %c0_320] : memref<11x8x8xf32, #tpu.memory_space<vmem>>, vector<1x8x8xf32>
    %286 = vector.shape_cast %285 : vector<1x8x8xf32> to vector<8x8xf32>
    %cst_321 = arith.constant dense<0.000000e+00> : vector<8x256xf32>
    %287 = tpu.matmul %286, %284, %cst_321 {dimension_numbers = #tpu.dot_dimension_numbers<[1], [0], [0], [1], [0, 0, 1, 1], [], []>} : vector<8x8xf32>, vector<8x256xf32>, vector<8x256xf32> -> vector<8x256xf32>
    %288 = arith.addf %282, %287 : vector<8x256xf32>
    %c0_322 = arith.constant 0 : index
    %c16_323 = arith.constant 16 : index
    %289 = vector.load %arg8[%c0_322, %c16_323] : memref<8x288xf32, #tpu.memory_space<vmem>>, vector<8x256xf32>
    %c7_324 = arith.constant 7 : index
    %c0_325 = arith.constant 0 : index
    %c0_326 = arith.constant 0 : index
    %290 = vector.load %arg5[%c7_324, %c0_325, %c0_326] : memref<11x8x8xf32, #tpu.memory_space<vmem>>, vector<1x8x8xf32>
    %291 = vector.shape_cast %290 : vector<1x8x8xf32> to vector<8x8xf32>
    %cst_327 = arith.constant dense<0.000000e+00> : vector<8x256xf32>
    %292 = tpu.matmul %291, %289, %cst_327 {dimension_numbers = #tpu.dot_dimension_numbers<[1], [0], [0], [1], [0, 0, 1, 1], [], []>} : vector<8x8xf32>, vector<8x256xf32>, vector<8x256xf32> -> vector<8x256xf32>
    %293 = arith.addf %288, %292 : vector<8x256xf32>
    %c0_328 = arith.constant 0 : index
    %c32_329 = arith.constant 32 : index
    %294 = vector.load %arg8[%c0_328, %c32_329] : memref<8x288xf32, #tpu.memory_space<vmem>>, vector<8x256xf32>
    %c8_330 = arith.constant 8 : index
    %c0_331 = arith.constant 0 : index
    %c0_332 = arith.constant 0 : index
    %295 = vector.load %arg5[%c8_330, %c0_331, %c0_332] : memref<11x8x8xf32, #tpu.memory_space<vmem>>, vector<1x8x8xf32>
    %296 = vector.shape_cast %295 : vector<1x8x8xf32> to vector<8x8xf32>
    %cst_333 = arith.constant dense<0.000000e+00> : vector<8x256xf32>
    %297 = tpu.matmul %296, %294, %cst_333 {dimension_numbers = #tpu.dot_dimension_numbers<[1], [0], [0], [1], [0, 0, 1, 1], [], []>} : vector<8x8xf32>, vector<8x256xf32>, vector<8x256xf32> -> vector<8x256xf32>
    %298 = arith.addf %293, %297 : vector<8x256xf32>
    %c0_334 = arith.constant 0 : index
    %c1_335 = arith.constant 1 : index
    %299 = vector.load %arg9[%c0_334, %c1_335] : memref<8x258xf32, #tpu.memory_space<vmem>>, vector<8x256xf32>
    tpu.vector_store %arg9[%c0_334, %c1_335], %247 {strides = array<i32>} : memref<8x258xf32, #tpu.memory_space<vmem>>, vector<8x256xf32>,
    %c9_336 = arith.constant 9 : index
    %c0_337 = arith.constant 0 : index
    %c0_338 = arith.constant 0 : index
    %300 = vector.load %arg5[%c9_336, %c0_337, %c0_338] : memref<11x8x8xf32, #tpu.memory_space<vmem>>, vector<1x8x8xf32>
    %301 = vector.shape_cast %300 : vector<1x8x8xf32> to vector<8x8xf32>
    %c0_339 = arith.constant 0 : index
    %c0_340 = arith.constant 0 : index
    %302 = vector.load %arg9[%c0_339, %c0_340] : memref<8x258xf32, #tpu.memory_space<vmem>>, vector<8x256xf32>
    %cst_341 = arith.constant dense<0.000000e+00> : vector<8x256xf32>
    %303 = tpu.matmul %301, %302, %cst_341 {dimension_numbers = #tpu.dot_dimension_numbers<[1], [0], [0], [1], [0, 0, 1, 1], [], []>} : vector<8x8xf32>, vector<8x256xf32>, vector<8x256xf32> -> vector<8x256xf32>
    %304 = vector.broadcast %12 : vector<1x256xf32> to vector<8x256xf32>
    %305 = arith.mulf %304, %303 : vector<8x256xf32>
    %306 = arith.addf %298, %305 : vector<8x256xf32>
    %c10_342 = arith.constant 10 : index
    %c0_343 = arith.constant 0 : index
    %c0_344 = arith.constant 0 : index
    %307 = vector.load %arg5[%c10_342, %c0_343, %c0_344] : memref<11x8x8xf32, #tpu.memory_space<vmem>>, vector<1x8x8xf32>
    %308 = vector.shape_cast %307 : vector<1x8x8xf32> to vector<8x8xf32>
    %c0_345 = arith.constant 0 : index
    %c2_346 = arith.constant 2 : index
    %309 = vector.load %arg9[%c0_345, %c2_346] : memref<8x258xf32, #tpu.memory_space<vmem>>, vector<8x256xf32>
    %cst_347 = arith.constant dense<0.000000e+00> : vector<8x256xf32>
    %310 = tpu.matmul %308, %309, %cst_347 {dimension_numbers = #tpu.dot_dimension_numbers<[1], [0], [0], [1], [0, 0, 1, 1], [], []>} : vector<8x8xf32>, vector<8x256xf32>, vector<8x256xf32> -> vector<8x256xf32>
    %311 = vector.broadcast %13 : vector<1x256xf32> to vector<8x256xf32>
    %312 = arith.mulf %311, %310 : vector<8x256xf32>
    %313 = arith.addf %306, %312 : vector<8x256xf32>
    %cst_348 = arith.constant 0.000000e+00 : f32
    %314 = vector.broadcast %cst_348 : f32 to vector<8x256xf32>
    %315 = arith.maximumf %313, %314 : vector<8x256xf32>
    %316 = arith.addf %247, %315 : vector<8x256xf32>
    %c0_349 = arith.constant 0 : index
    %c0_350 = arith.constant 0 : index
    %c768_351 = arith.constant 768 : index
    %317 = vector.load %arg7[%c0_349, %c0_350, %c768_351] : memref<1x8x2048xf32, #tpu.memory_space<vmem>>, vector<1x8x256xf32>
    %318 = vector.shape_cast %317 : vector<1x8x256xf32> to vector<8x256xf32>
    %319 = vector.shape_cast %316 : vector<8x256xf32> to vector<1x8x256xf32>
    tpu.vector_store %arg7[%c0_349, %c0_350, %c768_351], %319 {strides = array<i32>} : memref<1x8x2048xf32, #tpu.memory_space<vmem>>, vector<1x8x256xf32>,
    %c0_352 = arith.constant 0 : index
    %c0_353 = arith.constant 0 : index
    %c768_354 = arith.constant 768 : index
    %320 = vector.load %arg2[%c0_352, %c0_353, %c768_354] : memref<1x8x2048xf32, #tpu.memory_space<vmem>>, vector<1x8x256xf32>
    %321 = vector.shape_cast %320 : vector<1x8x256xf32> to vector<8x256xf32>
    %c0_355 = arith.constant 0 : index
    %c0_356 = arith.constant 0 : index
    %c1024_357 = arith.constant 1024 : index
    %322 = vector.load %arg2[%c0_355, %c0_356, %c1024_357] : memref<1x8x2048xf32, #tpu.memory_space<vmem>>, vector<1x8x256xf32>
    %323 = vector.shape_cast %322 : vector<1x8x256xf32> to vector<8x256xf32>
    %c0_358 = arith.constant 0 : index
    %c0_359 = arith.constant 0 : index
    %c1280 = arith.constant 1280 : index
    %324 = vector.load %arg2[%c0_358, %c0_359, %c1280] : memref<1x8x2048xf32, #tpu.memory_space<vmem>>, vector<1x8x256xf32>
    %325 = vector.shape_cast %324 : vector<1x8x256xf32> to vector<8x256xf32>
    %cst_360 = arith.constant 0.000000e+00 : f32
    %326 = vector.broadcast %cst_360 : f32 to vector<8x256xf32>
    %c0_361 = arith.constant 0 : index
    %c16_362 = arith.constant 16 : index
    %327 = vector.load %arg8[%c0_361, %c16_362] : memref<8x288xf32, #tpu.memory_space<vmem>>, vector<8x256xf32>
    tpu.vector_store %arg8[%c0_361, %c16_362], %321 {strides = array<i32>} : memref<8x288xf32, #tpu.memory_space<vmem>>, vector<8x256xf32>,
    %c0_363 = arith.constant 0 : index
    %c0_364 = arith.constant 0 : index
    %328 = vector.load %arg8[%c0_363, %c0_364] : memref<8x288xf32, #tpu.memory_space<vmem>>, vector<8x256xf32>
    %c0_365 = arith.constant 0 : index
    %c0_366 = arith.constant 0 : index
    %c0_367 = arith.constant 0 : index
    %329 = vector.load %arg5[%c0_365, %c0_366, %c0_367] : memref<11x8x8xf32, #tpu.memory_space<vmem>>, vector<1x8x8xf32>
    %330 = vector.shape_cast %329 : vector<1x8x8xf32> to vector<8x8xf32>
    %cst_368 = arith.constant dense<0.000000e+00> : vector<8x256xf32>
    %331 = tpu.matmul %330, %328, %cst_368 {dimension_numbers = #tpu.dot_dimension_numbers<[1], [0], [0], [1], [0, 0, 1, 1], [], []>} : vector<8x8xf32>, vector<8x256xf32>, vector<8x256xf32> -> vector<8x256xf32>
    %332 = arith.addf %326, %331 : vector<8x256xf32>
    %c0_369 = arith.constant 0 : index
    %c16_370 = arith.constant 16 : index
    %333 = vector.load %arg8[%c0_369, %c16_370] : memref<8x288xf32, #tpu.memory_space<vmem>>, vector<8x256xf32>
    %c1_371 = arith.constant 1 : index
    %c0_372 = arith.constant 0 : index
    %c0_373 = arith.constant 0 : index
    %334 = vector.load %arg5[%c1_371, %c0_372, %c0_373] : memref<11x8x8xf32, #tpu.memory_space<vmem>>, vector<1x8x8xf32>
    %335 = vector.shape_cast %334 : vector<1x8x8xf32> to vector<8x8xf32>
    %cst_374 = arith.constant dense<0.000000e+00> : vector<8x256xf32>
    %336 = tpu.matmul %335, %333, %cst_374 {dimension_numbers = #tpu.dot_dimension_numbers<[1], [0], [0], [1], [0, 0, 1, 1], [], []>} : vector<8x8xf32>, vector<8x256xf32>, vector<8x256xf32> -> vector<8x256xf32>
    %337 = arith.addf %332, %336 : vector<8x256xf32>
    %c0_375 = arith.constant 0 : index
    %c32_376 = arith.constant 32 : index
    %338 = vector.load %arg8[%c0_375, %c32_376] : memref<8x288xf32, #tpu.memory_space<vmem>>, vector<8x256xf32>
    %c2_377 = arith.constant 2 : index
    %c0_378 = arith.constant 0 : index
    %c0_379 = arith.constant 0 : index
    %339 = vector.load %arg5[%c2_377, %c0_378, %c0_379] : memref<11x8x8xf32, #tpu.memory_space<vmem>>, vector<1x8x8xf32>
    %340 = vector.shape_cast %339 : vector<1x8x8xf32> to vector<8x8xf32>
    %cst_380 = arith.constant dense<0.000000e+00> : vector<8x256xf32>
    %341 = tpu.matmul %340, %338, %cst_380 {dimension_numbers = #tpu.dot_dimension_numbers<[1], [0], [0], [1], [0, 0, 1, 1], [], []>} : vector<8x8xf32>, vector<8x256xf32>, vector<8x256xf32> -> vector<8x256xf32>
    %342 = arith.addf %337, %341 : vector<8x256xf32>
    %c0_381 = arith.constant 0 : index
    %c16_382 = arith.constant 16 : index
    %343 = vector.load %arg8[%c0_381, %c16_382] : memref<8x288xf32, #tpu.memory_space<vmem>>, vector<8x256xf32>
    tpu.vector_store %arg8[%c0_381, %c16_382], %323 {strides = array<i32>} : memref<8x288xf32, #tpu.memory_space<vmem>>, vector<8x256xf32>,
    %c0_383 = arith.constant 0 : index
    %c0_384 = arith.constant 0 : index
    %344 = vector.load %arg8[%c0_383, %c0_384] : memref<8x288xf32, #tpu.memory_space<vmem>>, vector<8x256xf32>
    %c3_385 = arith.constant 3 : index
    %c0_386 = arith.constant 0 : index
    %c0_387 = arith.constant 0 : index
    %345 = vector.load %arg5[%c3_385, %c0_386, %c0_387] : memref<11x8x8xf32, #tpu.memory_space<vmem>>, vector<1x8x8xf32>
    %346 = vector.shape_cast %345 : vector<1x8x8xf32> to vector<8x8xf32>
    %cst_388 = arith.constant dense<0.000000e+00> : vector<8x256xf32>
    %347 = tpu.matmul %346, %344, %cst_388 {dimension_numbers = #tpu.dot_dimension_numbers<[1], [0], [0], [1], [0, 0, 1, 1], [], []>} : vector<8x8xf32>, vector<8x256xf32>, vector<8x256xf32> -> vector<8x256xf32>
    %348 = arith.addf %342, %347 : vector<8x256xf32>
    %c0_389 = arith.constant 0 : index
    %c16_390 = arith.constant 16 : index
    %349 = vector.load %arg8[%c0_389, %c16_390] : memref<8x288xf32, #tpu.memory_space<vmem>>, vector<8x256xf32>
    %c4_391 = arith.constant 4 : index
    %c0_392 = arith.constant 0 : index
    %c0_393 = arith.constant 0 : index
    %350 = vector.load %arg5[%c4_391, %c0_392, %c0_393] : memref<11x8x8xf32, #tpu.memory_space<vmem>>, vector<1x8x8xf32>
    %351 = vector.shape_cast %350 : vector<1x8x8xf32> to vector<8x8xf32>
    %cst_394 = arith.constant dense<0.000000e+00> : vector<8x256xf32>
    %352 = tpu.matmul %351, %349, %cst_394 {dimension_numbers = #tpu.dot_dimension_numbers<[1], [0], [0], [1], [0, 0, 1, 1], [], []>} : vector<8x8xf32>, vector<8x256xf32>, vector<8x256xf32> -> vector<8x256xf32>
    %353 = arith.addf %348, %352 : vector<8x256xf32>
    %c0_395 = arith.constant 0 : index
    %c32_396 = arith.constant 32 : index
    %354 = vector.load %arg8[%c0_395, %c32_396] : memref<8x288xf32, #tpu.memory_space<vmem>>, vector<8x256xf32>
    %c5_397 = arith.constant 5 : index
    %c0_398 = arith.constant 0 : index
    %c0_399 = arith.constant 0 : index
    %355 = vector.load %arg5[%c5_397, %c0_398, %c0_399] : memref<11x8x8xf32, #tpu.memory_space<vmem>>, vector<1x8x8xf32>
    %356 = vector.shape_cast %355 : vector<1x8x8xf32> to vector<8x8xf32>
    %cst_400 = arith.constant dense<0.000000e+00> : vector<8x256xf32>
    %357 = tpu.matmul %356, %354, %cst_400 {dimension_numbers = #tpu.dot_dimension_numbers<[1], [0], [0], [1], [0, 0, 1, 1], [], []>} : vector<8x8xf32>, vector<8x256xf32>, vector<8x256xf32> -> vector<8x256xf32>
    %358 = arith.addf %353, %357 : vector<8x256xf32>
    %c0_401 = arith.constant 0 : index
    %c16_402 = arith.constant 16 : index
    %359 = vector.load %arg8[%c0_401, %c16_402] : memref<8x288xf32, #tpu.memory_space<vmem>>, vector<8x256xf32>
    tpu.vector_store %arg8[%c0_401, %c16_402], %325 {strides = array<i32>} : memref<8x288xf32, #tpu.memory_space<vmem>>, vector<8x256xf32>,
    %c0_403 = arith.constant 0 : index
    %c0_404 = arith.constant 0 : index
    %360 = vector.load %arg8[%c0_403, %c0_404] : memref<8x288xf32, #tpu.memory_space<vmem>>, vector<8x256xf32>
    %c6_405 = arith.constant 6 : index
    %c0_406 = arith.constant 0 : index
    %c0_407 = arith.constant 0 : index
    %361 = vector.load %arg5[%c6_405, %c0_406, %c0_407] : memref<11x8x8xf32, #tpu.memory_space<vmem>>, vector<1x8x8xf32>
    %362 = vector.shape_cast %361 : vector<1x8x8xf32> to vector<8x8xf32>
    %cst_408 = arith.constant dense<0.000000e+00> : vector<8x256xf32>
    %363 = tpu.matmul %362, %360, %cst_408 {dimension_numbers = #tpu.dot_dimension_numbers<[1], [0], [0], [1], [0, 0, 1, 1], [], []>} : vector<8x8xf32>, vector<8x256xf32>, vector<8x256xf32> -> vector<8x256xf32>
    %364 = arith.addf %358, %363 : vector<8x256xf32>
    %c0_409 = arith.constant 0 : index
    %c16_410 = arith.constant 16 : index
    %365 = vector.load %arg8[%c0_409, %c16_410] : memref<8x288xf32, #tpu.memory_space<vmem>>, vector<8x256xf32>
    %c7_411 = arith.constant 7 : index
    %c0_412 = arith.constant 0 : index
    %c0_413 = arith.constant 0 : index
    %366 = vector.load %arg5[%c7_411, %c0_412, %c0_413] : memref<11x8x8xf32, #tpu.memory_space<vmem>>, vector<1x8x8xf32>
    %367 = vector.shape_cast %366 : vector<1x8x8xf32> to vector<8x8xf32>
    %cst_414 = arith.constant dense<0.000000e+00> : vector<8x256xf32>
    %368 = tpu.matmul %367, %365, %cst_414 {dimension_numbers = #tpu.dot_dimension_numbers<[1], [0], [0], [1], [0, 0, 1, 1], [], []>} : vector<8x8xf32>, vector<8x256xf32>, vector<8x256xf32> -> vector<8x256xf32>
    %369 = arith.addf %364, %368 : vector<8x256xf32>
    %c0_415 = arith.constant 0 : index
    %c32_416 = arith.constant 32 : index
    %370 = vector.load %arg8[%c0_415, %c32_416] : memref<8x288xf32, #tpu.memory_space<vmem>>, vector<8x256xf32>
    %c8_417 = arith.constant 8 : index
    %c0_418 = arith.constant 0 : index
    %c0_419 = arith.constant 0 : index
    %371 = vector.load %arg5[%c8_417, %c0_418, %c0_419] : memref<11x8x8xf32, #tpu.memory_space<vmem>>, vector<1x8x8xf32>
    %372 = vector.shape_cast %371 : vector<1x8x8xf32> to vector<8x8xf32>
    %cst_420 = arith.constant dense<0.000000e+00> : vector<8x256xf32>
    %373 = tpu.matmul %372, %370, %cst_420 {dimension_numbers = #tpu.dot_dimension_numbers<[1], [0], [0], [1], [0, 0, 1, 1], [], []>} : vector<8x8xf32>, vector<8x256xf32>, vector<8x256xf32> -> vector<8x256xf32>
    %374 = arith.addf %369, %373 : vector<8x256xf32>
    %c0_421 = arith.constant 0 : index
    %c1_422 = arith.constant 1 : index
    %375 = vector.load %arg9[%c0_421, %c1_422] : memref<8x258xf32, #tpu.memory_space<vmem>>, vector<8x256xf32>
    tpu.vector_store %arg9[%c0_421, %c1_422], %323 {strides = array<i32>} : memref<8x258xf32, #tpu.memory_space<vmem>>, vector<8x256xf32>,
    %c9_423 = arith.constant 9 : index
    %c0_424 = arith.constant 0 : index
    %c0_425 = arith.constant 0 : index
    %376 = vector.load %arg5[%c9_423, %c0_424, %c0_425] : memref<11x8x8xf32, #tpu.memory_space<vmem>>, vector<1x8x8xf32>
    %377 = vector.shape_cast %376 : vector<1x8x8xf32> to vector<8x8xf32>
    %c0_426 = arith.constant 0 : index
    %c0_427 = arith.constant 0 : index
    %378 = vector.load %arg9[%c0_426, %c0_427] : memref<8x258xf32, #tpu.memory_space<vmem>>, vector<8x256xf32>
    %cst_428 = arith.constant dense<0.000000e+00> : vector<8x256xf32>
    %379 = tpu.matmul %377, %378, %cst_428 {dimension_numbers = #tpu.dot_dimension_numbers<[1], [0], [0], [1], [0, 0, 1, 1], [], []>} : vector<8x8xf32>, vector<8x256xf32>, vector<8x256xf32> -> vector<8x256xf32>
    %380 = vector.broadcast %12 : vector<1x256xf32> to vector<8x256xf32>
    %381 = arith.mulf %380, %379 : vector<8x256xf32>
    %382 = arith.addf %374, %381 : vector<8x256xf32>
    %c10_429 = arith.constant 10 : index
    %c0_430 = arith.constant 0 : index
    %c0_431 = arith.constant 0 : index
    %383 = vector.load %arg5[%c10_429, %c0_430, %c0_431] : memref<11x8x8xf32, #tpu.memory_space<vmem>>, vector<1x8x8xf32>
    %384 = vector.shape_cast %383 : vector<1x8x8xf32> to vector<8x8xf32>
    %c0_432 = arith.constant 0 : index
    %c2_433 = arith.constant 2 : index
    %385 = vector.load %arg9[%c0_432, %c2_433] : memref<8x258xf32, #tpu.memory_space<vmem>>, vector<8x256xf32>
    %cst_434 = arith.constant dense<0.000000e+00> : vector<8x256xf32>
    %386 = tpu.matmul %384, %385, %cst_434 {dimension_numbers = #tpu.dot_dimension_numbers<[1], [0], [0], [1], [0, 0, 1, 1], [], []>} : vector<8x8xf32>, vector<8x256xf32>, vector<8x256xf32> -> vector<8x256xf32>
    %387 = vector.broadcast %13 : vector<1x256xf32> to vector<8x256xf32>
    %388 = arith.mulf %387, %386 : vector<8x256xf32>
    %389 = arith.addf %382, %388 : vector<8x256xf32>
    %cst_435 = arith.constant 0.000000e+00 : f32
    %390 = vector.broadcast %cst_435 : f32 to vector<8x256xf32>
    %391 = arith.maximumf %389, %390 : vector<8x256xf32>
    %392 = arith.addf %323, %391 : vector<8x256xf32>
    %c0_436 = arith.constant 0 : index
    %c0_437 = arith.constant 0 : index
    %c1024_438 = arith.constant 1024 : index
    %393 = vector.load %arg7[%c0_436, %c0_437, %c1024_438] : memref<1x8x2048xf32, #tpu.memory_space<vmem>>, vector<1x8x256xf32>
    %394 = vector.shape_cast %393 : vector<1x8x256xf32> to vector<8x256xf32>
    %395 = vector.shape_cast %392 : vector<8x256xf32> to vector<1x8x256xf32>
    tpu.vector_store %arg7[%c0_436, %c0_437, %c1024_438], %395 {strides = array<i32>} : memref<1x8x2048xf32, #tpu.memory_space<vmem>>, vector<1x8x256xf32>,
    %c0_439 = arith.constant 0 : index
    %c0_440 = arith.constant 0 : index
    %c1024_441 = arith.constant 1024 : index
    %396 = vector.load %arg2[%c0_439, %c0_440, %c1024_441] : memref<1x8x2048xf32, #tpu.memory_space<vmem>>, vector<1x8x256xf32>
    %397 = vector.shape_cast %396 : vector<1x8x256xf32> to vector<8x256xf32>
    %c0_442 = arith.constant 0 : index
    %c0_443 = arith.constant 0 : index
    %c1280_444 = arith.constant 1280 : index
    %398 = vector.load %arg2[%c0_442, %c0_443, %c1280_444] : memref<1x8x2048xf32, #tpu.memory_space<vmem>>, vector<1x8x256xf32>
    %399 = vector.shape_cast %398 : vector<1x8x256xf32> to vector<8x256xf32>
    %c0_445 = arith.constant 0 : index
    %c0_446 = arith.constant 0 : index
    %c1536 = arith.constant 1536 : index
    %400 = vector.load %arg2[%c0_445, %c0_446, %c1536] : memref<1x8x2048xf32, #tpu.memory_space<vmem>>, vector<1x8x256xf32>
    %401 = vector.shape_cast %400 : vector<1x8x256xf32> to vector<8x256xf32>
    %cst_447 = arith.constant 0.000000e+00 : f32
    %402 = vector.broadcast %cst_447 : f32 to vector<8x256xf32>
    %c0_448 = arith.constant 0 : index
    %c16_449 = arith.constant 16 : index
    %403 = vector.load %arg8[%c0_448, %c16_449] : memref<8x288xf32, #tpu.memory_space<vmem>>, vector<8x256xf32>
    tpu.vector_store %arg8[%c0_448, %c16_449], %397 {strides = array<i32>} : memref<8x288xf32, #tpu.memory_space<vmem>>, vector<8x256xf32>,
    %c0_450 = arith.constant 0 : index
    %c0_451 = arith.constant 0 : index
    %404 = vector.load %arg8[%c0_450, %c0_451] : memref<8x288xf32, #tpu.memory_space<vmem>>, vector<8x256xf32>
    %c0_452 = arith.constant 0 : index
    %c0_453 = arith.constant 0 : index
    %c0_454 = arith.constant 0 : index
    %405 = vector.load %arg5[%c0_452, %c0_453, %c0_454] : memref<11x8x8xf32, #tpu.memory_space<vmem>>, vector<1x8x8xf32>
    %406 = vector.shape_cast %405 : vector<1x8x8xf32> to vector<8x8xf32>
    %cst_455 = arith.constant dense<0.000000e+00> : vector<8x256xf32>
    %407 = tpu.matmul %406, %404, %cst_455 {dimension_numbers = #tpu.dot_dimension_numbers<[1], [0], [0], [1], [0, 0, 1, 1], [], []>} : vector<8x8xf32>, vector<8x256xf32>, vector<8x256xf32> -> vector<8x256xf32>
    %408 = arith.addf %402, %407 : vector<8x256xf32>
    %c0_456 = arith.constant 0 : index
    %c16_457 = arith.constant 16 : index
    %409 = vector.load %arg8[%c0_456, %c16_457] : memref<8x288xf32, #tpu.memory_space<vmem>>, vector<8x256xf32>
    %c1_458 = arith.constant 1 : index
    %c0_459 = arith.constant 0 : index
    %c0_460 = arith.constant 0 : index
    %410 = vector.load %arg5[%c1_458, %c0_459, %c0_460] : memref<11x8x8xf32, #tpu.memory_space<vmem>>, vector<1x8x8xf32>
    %411 = vector.shape_cast %410 : vector<1x8x8xf32> to vector<8x8xf32>
    %cst_461 = arith.constant dense<0.000000e+00> : vector<8x256xf32>
    %412 = tpu.matmul %411, %409, %cst_461 {dimension_numbers = #tpu.dot_dimension_numbers<[1], [0], [0], [1], [0, 0, 1, 1], [], []>} : vector<8x8xf32>, vector<8x256xf32>, vector<8x256xf32> -> vector<8x256xf32>
    %413 = arith.addf %408, %412 : vector<8x256xf32>
    %c0_462 = arith.constant 0 : index
    %c32_463 = arith.constant 32 : index
    %414 = vector.load %arg8[%c0_462, %c32_463] : memref<8x288xf32, #tpu.memory_space<vmem>>, vector<8x256xf32>
    %c2_464 = arith.constant 2 : index
    %c0_465 = arith.constant 0 : index
    %c0_466 = arith.constant 0 : index
    %415 = vector.load %arg5[%c2_464, %c0_465, %c0_466] : memref<11x8x8xf32, #tpu.memory_space<vmem>>, vector<1x8x8xf32>
    %416 = vector.shape_cast %415 : vector<1x8x8xf32> to vector<8x8xf32>
    %cst_467 = arith.constant dense<0.000000e+00> : vector<8x256xf32>
    %417 = tpu.matmul %416, %414, %cst_467 {dimension_numbers = #tpu.dot_dimension_numbers<[1], [0], [0], [1], [0, 0, 1, 1], [], []>} : vector<8x8xf32>, vector<8x256xf32>, vector<8x256xf32> -> vector<8x256xf32>
    %418 = arith.addf %413, %417 : vector<8x256xf32>
    %c0_468 = arith.constant 0 : index
    %c16_469 = arith.constant 16 : index
    %419 = vector.load %arg8[%c0_468, %c16_469] : memref<8x288xf32, #tpu.memory_space<vmem>>, vector<8x256xf32>
    tpu.vector_store %arg8[%c0_468, %c16_469], %399 {strides = array<i32>} : memref<8x288xf32, #tpu.memory_space<vmem>>, vector<8x256xf32>,
    %c0_470 = arith.constant 0 : index
    %c0_471 = arith.constant 0 : index
    %420 = vector.load %arg8[%c0_470, %c0_471] : memref<8x288xf32, #tpu.memory_space<vmem>>, vector<8x256xf32>
    %c3_472 = arith.constant 3 : index
    %c0_473 = arith.constant 0 : index
    %c0_474 = arith.constant 0 : index
    %421 = vector.load %arg5[%c3_472, %c0_473, %c0_474] : memref<11x8x8xf32, #tpu.memory_space<vmem>>, vector<1x8x8xf32>
    %422 = vector.shape_cast %421 : vector<1x8x8xf32> to vector<8x8xf32>
    %cst_475 = arith.constant dense<0.000000e+00> : vector<8x256xf32>
    %423 = tpu.matmul %422, %420, %cst_475 {dimension_numbers = #tpu.dot_dimension_numbers<[1], [0], [0], [1], [0, 0, 1, 1], [], []>} : vector<8x8xf32>, vector<8x256xf32>, vector<8x256xf32> -> vector<8x256xf32>
    %424 = arith.addf %418, %423 : vector<8x256xf32>
    %c0_476 = arith.constant 0 : index
    %c16_477 = arith.constant 16 : index
    %425 = vector.load %arg8[%c0_476, %c16_477] : memref<8x288xf32, #tpu.memory_space<vmem>>, vector<8x256xf32>
    %c4_478 = arith.constant 4 : index
    %c0_479 = arith.constant 0 : index
    %c0_480 = arith.constant 0 : index
    %426 = vector.load %arg5[%c4_478, %c0_479, %c0_480] : memref<11x8x8xf32, #tpu.memory_space<vmem>>, vector<1x8x8xf32>
    %427 = vector.shape_cast %426 : vector<1x8x8xf32> to vector<8x8xf32>
    %cst_481 = arith.constant dense<0.000000e+00> : vector<8x256xf32>
    %428 = tpu.matmul %427, %425, %cst_481 {dimension_numbers = #tpu.dot_dimension_numbers<[1], [0], [0], [1], [0, 0, 1, 1], [], []>} : vector<8x8xf32>, vector<8x256xf32>, vector<8x256xf32> -> vector<8x256xf32>
    %429 = arith.addf %424, %428 : vector<8x256xf32>
    %c0_482 = arith.constant 0 : index
    %c32_483 = arith.constant 32 : index
    %430 = vector.load %arg8[%c0_482, %c32_483] : memref<8x288xf32, #tpu.memory_space<vmem>>, vector<8x256xf32>
    %c5_484 = arith.constant 5 : index
    %c0_485 = arith.constant 0 : index
    %c0_486 = arith.constant 0 : index
    %431 = vector.load %arg5[%c5_484, %c0_485, %c0_486] : memref<11x8x8xf32, #tpu.memory_space<vmem>>, vector<1x8x8xf32>
    %432 = vector.shape_cast %431 : vector<1x8x8xf32> to vector<8x8xf32>
    %cst_487 = arith.constant dense<0.000000e+00> : vector<8x256xf32>
    %433 = tpu.matmul %432, %430, %cst_487 {dimension_numbers = #tpu.dot_dimension_numbers<[1], [0], [0], [1], [0, 0, 1, 1], [], []>} : vector<8x8xf32>, vector<8x256xf32>, vector<8x256xf32> -> vector<8x256xf32>
    %434 = arith.addf %429, %433 : vector<8x256xf32>
    %c0_488 = arith.constant 0 : index
    %c16_489 = arith.constant 16 : index
    %435 = vector.load %arg8[%c0_488, %c16_489] : memref<8x288xf32, #tpu.memory_space<vmem>>, vector<8x256xf32>
    tpu.vector_store %arg8[%c0_488, %c16_489], %401 {strides = array<i32>} : memref<8x288xf32, #tpu.memory_space<vmem>>, vector<8x256xf32>,
    %c0_490 = arith.constant 0 : index
    %c0_491 = arith.constant 0 : index
    %436 = vector.load %arg8[%c0_490, %c0_491] : memref<8x288xf32, #tpu.memory_space<vmem>>, vector<8x256xf32>
    %c6_492 = arith.constant 6 : index
    %c0_493 = arith.constant 0 : index
    %c0_494 = arith.constant 0 : index
    %437 = vector.load %arg5[%c6_492, %c0_493, %c0_494] : memref<11x8x8xf32, #tpu.memory_space<vmem>>, vector<1x8x8xf32>
    %438 = vector.shape_cast %437 : vector<1x8x8xf32> to vector<8x8xf32>
    %cst_495 = arith.constant dense<0.000000e+00> : vector<8x256xf32>
    %439 = tpu.matmul %438, %436, %cst_495 {dimension_numbers = #tpu.dot_dimension_numbers<[1], [0], [0], [1], [0, 0, 1, 1], [], []>} : vector<8x8xf32>, vector<8x256xf32>, vector<8x256xf32> -> vector<8x256xf32>
    %440 = arith.addf %434, %439 : vector<8x256xf32>
    %c0_496 = arith.constant 0 : index
    %c16_497 = arith.constant 16 : index
    %441 = vector.load %arg8[%c0_496, %c16_497] : memref<8x288xf32, #tpu.memory_space<vmem>>, vector<8x256xf32>
    %c7_498 = arith.constant 7 : index
    %c0_499 = arith.constant 0 : index
    %c0_500 = arith.constant 0 : index
    %442 = vector.load %arg5[%c7_498, %c0_499, %c0_500] : memref<11x8x8xf32, #tpu.memory_space<vmem>>, vector<1x8x8xf32>
    %443 = vector.shape_cast %442 : vector<1x8x8xf32> to vector<8x8xf32>
    %cst_501 = arith.constant dense<0.000000e+00> : vector<8x256xf32>
    %444 = tpu.matmul %443, %441, %cst_501 {dimension_numbers = #tpu.dot_dimension_numbers<[1], [0], [0], [1], [0, 0, 1, 1], [], []>} : vector<8x8xf32>, vector<8x256xf32>, vector<8x256xf32> -> vector<8x256xf32>
    %445 = arith.addf %440, %444 : vector<8x256xf32>
    %c0_502 = arith.constant 0 : index
    %c32_503 = arith.constant 32 : index
    %446 = vector.load %arg8[%c0_502, %c32_503] : memref<8x288xf32, #tpu.memory_space<vmem>>, vector<8x256xf32>
    %c8_504 = arith.constant 8 : index
    %c0_505 = arith.constant 0 : index
    %c0_506 = arith.constant 0 : index
    %447 = vector.load %arg5[%c8_504, %c0_505, %c0_506] : memref<11x8x8xf32, #tpu.memory_space<vmem>>, vector<1x8x8xf32>
    %448 = vector.shape_cast %447 : vector<1x8x8xf32> to vector<8x8xf32>
    %cst_507 = arith.constant dense<0.000000e+00> : vector<8x256xf32>
    %449 = tpu.matmul %448, %446, %cst_507 {dimension_numbers = #tpu.dot_dimension_numbers<[1], [0], [0], [1], [0, 0, 1, 1], [], []>} : vector<8x8xf32>, vector<8x256xf32>, vector<8x256xf32> -> vector<8x256xf32>
    %450 = arith.addf %445, %449 : vector<8x256xf32>
    %c0_508 = arith.constant 0 : index
    %c1_509 = arith.constant 1 : index
    %451 = vector.load %arg9[%c0_508, %c1_509] : memref<8x258xf32, #tpu.memory_space<vmem>>, vector<8x256xf32>
    tpu.vector_store %arg9[%c0_508, %c1_509], %399 {strides = array<i32>} : memref<8x258xf32, #tpu.memory_space<vmem>>, vector<8x256xf32>,
    %c9_510 = arith.constant 9 : index
    %c0_511 = arith.constant 0 : index
    %c0_512 = arith.constant 0 : index
    %452 = vector.load %arg5[%c9_510, %c0_511, %c0_512] : memref<11x8x8xf32, #tpu.memory_space<vmem>>, vector<1x8x8xf32>
    %453 = vector.shape_cast %452 : vector<1x8x8xf32> to vector<8x8xf32>
    %c0_513 = arith.constant 0 : index
    %c0_514 = arith.constant 0 : index
    %454 = vector.load %arg9[%c0_513, %c0_514] : memref<8x258xf32, #tpu.memory_space<vmem>>, vector<8x256xf32>
    %cst_515 = arith.constant dense<0.000000e+00> : vector<8x256xf32>
    %455 = tpu.matmul %453, %454, %cst_515 {dimension_numbers = #tpu.dot_dimension_numbers<[1], [0], [0], [1], [0, 0, 1, 1], [], []>} : vector<8x8xf32>, vector<8x256xf32>, vector<8x256xf32> -> vector<8x256xf32>
    %456 = vector.broadcast %12 : vector<1x256xf32> to vector<8x256xf32>
    %457 = arith.mulf %456, %455 : vector<8x256xf32>
    %458 = arith.addf %450, %457 : vector<8x256xf32>
    %c10_516 = arith.constant 10 : index
    %c0_517 = arith.constant 0 : index
    %c0_518 = arith.constant 0 : index
    %459 = vector.load %arg5[%c10_516, %c0_517, %c0_518] : memref<11x8x8xf32, #tpu.memory_space<vmem>>, vector<1x8x8xf32>
    %460 = vector.shape_cast %459 : vector<1x8x8xf32> to vector<8x8xf32>
    %c0_519 = arith.constant 0 : index
    %c2_520 = arith.constant 2 : index
    %461 = vector.load %arg9[%c0_519, %c2_520] : memref<8x258xf32, #tpu.memory_space<vmem>>, vector<8x256xf32>
    %cst_521 = arith.constant dense<0.000000e+00> : vector<8x256xf32>
    %462 = tpu.matmul %460, %461, %cst_521 {dimension_numbers = #tpu.dot_dimension_numbers<[1], [0], [0], [1], [0, 0, 1, 1], [], []>} : vector<8x8xf32>, vector<8x256xf32>, vector<8x256xf32> -> vector<8x256xf32>
    %463 = vector.broadcast %13 : vector<1x256xf32> to vector<8x256xf32>
    %464 = arith.mulf %463, %462 : vector<8x256xf32>
    %465 = arith.addf %458, %464 : vector<8x256xf32>
    %cst_522 = arith.constant 0.000000e+00 : f32
    %466 = vector.broadcast %cst_522 : f32 to vector<8x256xf32>
    %467 = arith.maximumf %465, %466 : vector<8x256xf32>
    %468 = arith.addf %399, %467 : vector<8x256xf32>
    %c0_523 = arith.constant 0 : index
    %c0_524 = arith.constant 0 : index
    %c1280_525 = arith.constant 1280 : index
    %469 = vector.load %arg7[%c0_523, %c0_524, %c1280_525] : memref<1x8x2048xf32, #tpu.memory_space<vmem>>, vector<1x8x256xf32>
    %470 = vector.shape_cast %469 : vector<1x8x256xf32> to vector<8x256xf32>
    %471 = vector.shape_cast %468 : vector<8x256xf32> to vector<1x8x256xf32>
    tpu.vector_store %arg7[%c0_523, %c0_524, %c1280_525], %471 {strides = array<i32>} : memref<1x8x2048xf32, #tpu.memory_space<vmem>>, vector<1x8x256xf32>,
    %c0_526 = arith.constant 0 : index
    %c0_527 = arith.constant 0 : index
    %c1280_528 = arith.constant 1280 : index
    %472 = vector.load %arg2[%c0_526, %c0_527, %c1280_528] : memref<1x8x2048xf32, #tpu.memory_space<vmem>>, vector<1x8x256xf32>
    %473 = vector.shape_cast %472 : vector<1x8x256xf32> to vector<8x256xf32>
    %c0_529 = arith.constant 0 : index
    %c0_530 = arith.constant 0 : index
    %c1536_531 = arith.constant 1536 : index
    %474 = vector.load %arg2[%c0_529, %c0_530, %c1536_531] : memref<1x8x2048xf32, #tpu.memory_space<vmem>>, vector<1x8x256xf32>
    %475 = vector.shape_cast %474 : vector<1x8x256xf32> to vector<8x256xf32>
    %c0_532 = arith.constant 0 : index
    %c0_533 = arith.constant 0 : index
    %c1792 = arith.constant 1792 : index
    %476 = vector.load %arg2[%c0_532, %c0_533, %c1792] : memref<1x8x2048xf32, #tpu.memory_space<vmem>>, vector<1x8x256xf32>
    %477 = vector.shape_cast %476 : vector<1x8x256xf32> to vector<8x256xf32>
    %cst_534 = arith.constant 0.000000e+00 : f32
    %478 = vector.broadcast %cst_534 : f32 to vector<8x256xf32>
    %c0_535 = arith.constant 0 : index
    %c16_536 = arith.constant 16 : index
    %479 = vector.load %arg8[%c0_535, %c16_536] : memref<8x288xf32, #tpu.memory_space<vmem>>, vector<8x256xf32>
    tpu.vector_store %arg8[%c0_535, %c16_536], %473 {strides = array<i32>} : memref<8x288xf32, #tpu.memory_space<vmem>>, vector<8x256xf32>,
    %c0_537 = arith.constant 0 : index
    %c0_538 = arith.constant 0 : index
    %480 = vector.load %arg8[%c0_537, %c0_538] : memref<8x288xf32, #tpu.memory_space<vmem>>, vector<8x256xf32>
    %c0_539 = arith.constant 0 : index
    %c0_540 = arith.constant 0 : index
    %c0_541 = arith.constant 0 : index
    %481 = vector.load %arg5[%c0_539, %c0_540, %c0_541] : memref<11x8x8xf32, #tpu.memory_space<vmem>>, vector<1x8x8xf32>
    %482 = vector.shape_cast %481 : vector<1x8x8xf32> to vector<8x8xf32>
    %cst_542 = arith.constant dense<0.000000e+00> : vector<8x256xf32>
    %483 = tpu.matmul %482, %480, %cst_542 {dimension_numbers = #tpu.dot_dimension_numbers<[1], [0], [0], [1], [0, 0, 1, 1], [], []>} : vector<8x8xf32>, vector<8x256xf32>, vector<8x256xf32> -> vector<8x256xf32>
    %484 = arith.addf %478, %483 : vector<8x256xf32>
    %c0_543 = arith.constant 0 : index
    %c16_544 = arith.constant 16 : index
    %485 = vector.load %arg8[%c0_543, %c16_544] : memref<8x288xf32, #tpu.memory_space<vmem>>, vector<8x256xf32>
    %c1_545 = arith.constant 1 : index
    %c0_546 = arith.constant 0 : index
    %c0_547 = arith.constant 0 : index
    %486 = vector.load %arg5[%c1_545, %c0_546, %c0_547] : memref<11x8x8xf32, #tpu.memory_space<vmem>>, vector<1x8x8xf32>
    %487 = vector.shape_cast %486 : vector<1x8x8xf32> to vector<8x8xf32>
    %cst_548 = arith.constant dense<0.000000e+00> : vector<8x256xf32>
    %488 = tpu.matmul %487, %485, %cst_548 {dimension_numbers = #tpu.dot_dimension_numbers<[1], [0], [0], [1], [0, 0, 1, 1], [], []>} : vector<8x8xf32>, vector<8x256xf32>, vector<8x256xf32> -> vector<8x256xf32>
    %489 = arith.addf %484, %488 : vector<8x256xf32>
    %c0_549 = arith.constant 0 : index
    %c32_550 = arith.constant 32 : index
    %490 = vector.load %arg8[%c0_549, %c32_550] : memref<8x288xf32, #tpu.memory_space<vmem>>, vector<8x256xf32>
    %c2_551 = arith.constant 2 : index
    %c0_552 = arith.constant 0 : index
    %c0_553 = arith.constant 0 : index
    %491 = vector.load %arg5[%c2_551, %c0_552, %c0_553] : memref<11x8x8xf32, #tpu.memory_space<vmem>>, vector<1x8x8xf32>
    %492 = vector.shape_cast %491 : vector<1x8x8xf32> to vector<8x8xf32>
    %cst_554 = arith.constant dense<0.000000e+00> : vector<8x256xf32>
    %493 = tpu.matmul %492, %490, %cst_554 {dimension_numbers = #tpu.dot_dimension_numbers<[1], [0], [0], [1], [0, 0, 1, 1], [], []>} : vector<8x8xf32>, vector<8x256xf32>, vector<8x256xf32> -> vector<8x256xf32>
    %494 = arith.addf %489, %493 : vector<8x256xf32>
    %c0_555 = arith.constant 0 : index
    %c16_556 = arith.constant 16 : index
    %495 = vector.load %arg8[%c0_555, %c16_556] : memref<8x288xf32, #tpu.memory_space<vmem>>, vector<8x256xf32>
    tpu.vector_store %arg8[%c0_555, %c16_556], %475 {strides = array<i32>} : memref<8x288xf32, #tpu.memory_space<vmem>>, vector<8x256xf32>,
    %c0_557 = arith.constant 0 : index
    %c0_558 = arith.constant 0 : index
    %496 = vector.load %arg8[%c0_557, %c0_558] : memref<8x288xf32, #tpu.memory_space<vmem>>, vector<8x256xf32>
    %c3_559 = arith.constant 3 : index
    %c0_560 = arith.constant 0 : index
    %c0_561 = arith.constant 0 : index
    %497 = vector.load %arg5[%c3_559, %c0_560, %c0_561] : memref<11x8x8xf32, #tpu.memory_space<vmem>>, vector<1x8x8xf32>
    %498 = vector.shape_cast %497 : vector<1x8x8xf32> to vector<8x8xf32>
    %cst_562 = arith.constant dense<0.000000e+00> : vector<8x256xf32>
    %499 = tpu.matmul %498, %496, %cst_562 {dimension_numbers = #tpu.dot_dimension_numbers<[1], [0], [0], [1], [0, 0, 1, 1], [], []>} : vector<8x8xf32>, vector<8x256xf32>, vector<8x256xf32> -> vector<8x256xf32>
    %500 = arith.addf %494, %499 : vector<8x256xf32>
    %c0_563 = arith.constant 0 : index
    %c16_564 = arith.constant 16 : index
    %501 = vector.load %arg8[%c0_563, %c16_564] : memref<8x288xf32, #tpu.memory_space<vmem>>, vector<8x256xf32>
    %c4_565 = arith.constant 4 : index
    %c0_566 = arith.constant 0 : index
    %c0_567 = arith.constant 0 : index
    %502 = vector.load %arg5[%c4_565, %c0_566, %c0_567] : memref<11x8x8xf32, #tpu.memory_space<vmem>>, vector<1x8x8xf32>
    %503 = vector.shape_cast %502 : vector<1x8x8xf32> to vector<8x8xf32>
    %cst_568 = arith.constant dense<0.000000e+00> : vector<8x256xf32>
    %504 = tpu.matmul %503, %501, %cst_568 {dimension_numbers = #tpu.dot_dimension_numbers<[1], [0], [0], [1], [0, 0, 1, 1], [], []>} : vector<8x8xf32>, vector<8x256xf32>, vector<8x256xf32> -> vector<8x256xf32>
    %505 = arith.addf %500, %504 : vector<8x256xf32>
    %c0_569 = arith.constant 0 : index
    %c32_570 = arith.constant 32 : index
    %506 = vector.load %arg8[%c0_569, %c32_570] : memref<8x288xf32, #tpu.memory_space<vmem>>, vector<8x256xf32>
    %c5_571 = arith.constant 5 : index
    %c0_572 = arith.constant 0 : index
    %c0_573 = arith.constant 0 : index
    %507 = vector.load %arg5[%c5_571, %c0_572, %c0_573] : memref<11x8x8xf32, #tpu.memory_space<vmem>>, vector<1x8x8xf32>
    %508 = vector.shape_cast %507 : vector<1x8x8xf32> to vector<8x8xf32>
    %cst_574 = arith.constant dense<0.000000e+00> : vector<8x256xf32>
    %509 = tpu.matmul %508, %506, %cst_574 {dimension_numbers = #tpu.dot_dimension_numbers<[1], [0], [0], [1], [0, 0, 1, 1], [], []>} : vector<8x8xf32>, vector<8x256xf32>, vector<8x256xf32> -> vector<8x256xf32>
    %510 = arith.addf %505, %509 : vector<8x256xf32>
    %c0_575 = arith.constant 0 : index
    %c16_576 = arith.constant 16 : index
    %511 = vector.load %arg8[%c0_575, %c16_576] : memref<8x288xf32, #tpu.memory_space<vmem>>, vector<8x256xf32>
    tpu.vector_store %arg8[%c0_575, %c16_576], %477 {strides = array<i32>} : memref<8x288xf32, #tpu.memory_space<vmem>>, vector<8x256xf32>,
    %c0_577 = arith.constant 0 : index
    %c0_578 = arith.constant 0 : index
    %512 = vector.load %arg8[%c0_577, %c0_578] : memref<8x288xf32, #tpu.memory_space<vmem>>, vector<8x256xf32>
    %c6_579 = arith.constant 6 : index
    %c0_580 = arith.constant 0 : index
    %c0_581 = arith.constant 0 : index
    %513 = vector.load %arg5[%c6_579, %c0_580, %c0_581] : memref<11x8x8xf32, #tpu.memory_space<vmem>>, vector<1x8x8xf32>
    %514 = vector.shape_cast %513 : vector<1x8x8xf32> to vector<8x8xf32>
    %cst_582 = arith.constant dense<0.000000e+00> : vector<8x256xf32>
    %515 = tpu.matmul %514, %512, %cst_582 {dimension_numbers = #tpu.dot_dimension_numbers<[1], [0], [0], [1], [0, 0, 1, 1], [], []>} : vector<8x8xf32>, vector<8x256xf32>, vector<8x256xf32> -> vector<8x256xf32>
    %516 = arith.addf %510, %515 : vector<8x256xf32>
    %c0_583 = arith.constant 0 : index
    %c16_584 = arith.constant 16 : index
    %517 = vector.load %arg8[%c0_583, %c16_584] : memref<8x288xf32, #tpu.memory_space<vmem>>, vector<8x256xf32>
    %c7_585 = arith.constant 7 : index
    %c0_586 = arith.constant 0 : index
    %c0_587 = arith.constant 0 : index
    %518 = vector.load %arg5[%c7_585, %c0_586, %c0_587] : memref<11x8x8xf32, #tpu.memory_space<vmem>>, vector<1x8x8xf32>
    %519 = vector.shape_cast %518 : vector<1x8x8xf32> to vector<8x8xf32>
    %cst_588 = arith.constant dense<0.000000e+00> : vector<8x256xf32>
    %520 = tpu.matmul %519, %517, %cst_588 {dimension_numbers = #tpu.dot_dimension_numbers<[1], [0], [0], [1], [0, 0, 1, 1], [], []>} : vector<8x8xf32>, vector<8x256xf32>, vector<8x256xf32> -> vector<8x256xf32>
    %521 = arith.addf %516, %520 : vector<8x256xf32>
    %c0_589 = arith.constant 0 : index
    %c32_590 = arith.constant 32 : index
    %522 = vector.load %arg8[%c0_589, %c32_590] : memref<8x288xf32, #tpu.memory_space<vmem>>, vector<8x256xf32>
    %c8_591 = arith.constant 8 : index
    %c0_592 = arith.constant 0 : index
    %c0_593 = arith.constant 0 : index
    %523 = vector.load %arg5[%c8_591, %c0_592, %c0_593] : memref<11x8x8xf32, #tpu.memory_space<vmem>>, vector<1x8x8xf32>
    %524 = vector.shape_cast %523 : vector<1x8x8xf32> to vector<8x8xf32>
    %cst_594 = arith.constant dense<0.000000e+00> : vector<8x256xf32>
    %525 = tpu.matmul %524, %522, %cst_594 {dimension_numbers = #tpu.dot_dimension_numbers<[1], [0], [0], [1], [0, 0, 1, 1], [], []>} : vector<8x8xf32>, vector<8x256xf32>, vector<8x256xf32> -> vector<8x256xf32>
    %526 = arith.addf %521, %525 : vector<8x256xf32>
    %c0_595 = arith.constant 0 : index
    %c1_596 = arith.constant 1 : index
    %527 = vector.load %arg9[%c0_595, %c1_596] : memref<8x258xf32, #tpu.memory_space<vmem>>, vector<8x256xf32>
    tpu.vector_store %arg9[%c0_595, %c1_596], %475 {strides = array<i32>} : memref<8x258xf32, #tpu.memory_space<vmem>>, vector<8x256xf32>,
    %c9_597 = arith.constant 9 : index
    %c0_598 = arith.constant 0 : index
    %c0_599 = arith.constant 0 : index
    %528 = vector.load %arg5[%c9_597, %c0_598, %c0_599] : memref<11x8x8xf32, #tpu.memory_space<vmem>>, vector<1x8x8xf32>
    %529 = vector.shape_cast %528 : vector<1x8x8xf32> to vector<8x8xf32>
    %c0_600 = arith.constant 0 : index
    %c0_601 = arith.constant 0 : index
    %530 = vector.load %arg9[%c0_600, %c0_601] : memref<8x258xf32, #tpu.memory_space<vmem>>, vector<8x256xf32>
    %cst_602 = arith.constant dense<0.000000e+00> : vector<8x256xf32>
    %531 = tpu.matmul %529, %530, %cst_602 {dimension_numbers = #tpu.dot_dimension_numbers<[1], [0], [0], [1], [0, 0, 1, 1], [], []>} : vector<8x8xf32>, vector<8x256xf32>, vector<8x256xf32> -> vector<8x256xf32>
    %532 = vector.broadcast %12 : vector<1x256xf32> to vector<8x256xf32>
    %533 = arith.mulf %532, %531 : vector<8x256xf32>
    %534 = arith.addf %526, %533 : vector<8x256xf32>
    %c10_603 = arith.constant 10 : index
    %c0_604 = arith.constant 0 : index
    %c0_605 = arith.constant 0 : index
    %535 = vector.load %arg5[%c10_603, %c0_604, %c0_605] : memref<11x8x8xf32, #tpu.memory_space<vmem>>, vector<1x8x8xf32>
    %536 = vector.shape_cast %535 : vector<1x8x8xf32> to vector<8x8xf32>
    %c0_606 = arith.constant 0 : index
    %c2_607 = arith.constant 2 : index
    %537 = vector.load %arg9[%c0_606, %c2_607] : memref<8x258xf32, #tpu.memory_space<vmem>>, vector<8x256xf32>
    %cst_608 = arith.constant dense<0.000000e+00> : vector<8x256xf32>
    %538 = tpu.matmul %536, %537, %cst_608 {dimension_numbers = #tpu.dot_dimension_numbers<[1], [0], [0], [1], [0, 0, 1, 1], [], []>} : vector<8x8xf32>, vector<8x256xf32>, vector<8x256xf32> -> vector<8x256xf32>
    %539 = vector.broadcast %13 : vector<1x256xf32> to vector<8x256xf32>
    %540 = arith.mulf %539, %538 : vector<8x256xf32>
    %541 = arith.addf %534, %540 : vector<8x256xf32>
    %cst_609 = arith.constant 0.000000e+00 : f32
    %542 = vector.broadcast %cst_609 : f32 to vector<8x256xf32>
    %543 = arith.maximumf %541, %542 : vector<8x256xf32>
    %544 = arith.addf %475, %543 : vector<8x256xf32>
    %c0_610 = arith.constant 0 : index
    %c0_611 = arith.constant 0 : index
    %c1536_612 = arith.constant 1536 : index
    %545 = vector.load %arg7[%c0_610, %c0_611, %c1536_612] : memref<1x8x2048xf32, #tpu.memory_space<vmem>>, vector<1x8x256xf32>
    %546 = vector.shape_cast %545 : vector<1x8x256xf32> to vector<8x256xf32>
    %547 = vector.shape_cast %544 : vector<8x256xf32> to vector<1x8x256xf32>
    tpu.vector_store %arg7[%c0_610, %c0_611, %c1536_612], %547 {strides = array<i32>} : memref<1x8x2048xf32, #tpu.memory_space<vmem>>, vector<1x8x256xf32>,
    %c0_613 = arith.constant 0 : index
    %c0_614 = arith.constant 0 : index
    %c1536_615 = arith.constant 1536 : index
    %548 = vector.load %arg2[%c0_613, %c0_614, %c1536_615] : memref<1x8x2048xf32, #tpu.memory_space<vmem>>, vector<1x8x256xf32>
    %549 = vector.shape_cast %548 : vector<1x8x256xf32> to vector<8x256xf32>
    %c0_616 = arith.constant 0 : index
    %c0_617 = arith.constant 0 : index
    %c1792_618 = arith.constant 1792 : index
    %550 = vector.load %arg2[%c0_616, %c0_617, %c1792_618] : memref<1x8x2048xf32, #tpu.memory_space<vmem>>, vector<1x8x256xf32>
    %551 = vector.shape_cast %550 : vector<1x8x256xf32> to vector<8x256xf32>
    %c0_619 = arith.constant 0 : index
    %c0_620 = arith.constant 0 : index
    %c0_621 = arith.constant 0 : index
    %552 = vector.load %arg4[%c0_619, %c0_620, %c0_621] : memref<1x8x256xf32, #tpu.memory_space<vmem>>, vector<1x8x256xf32>
    %553 = vector.shape_cast %552 : vector<1x8x256xf32> to vector<8x256xf32>
    %554 = vector.broadcast %3 : f32 to vector<8x256xf32>
    %555 = arith.mulf %553, %554 : vector<8x256xf32>
    %cst_622 = arith.constant 0.000000e+00 : f32
    %556 = vector.broadcast %cst_622 : f32 to vector<8x256xf32>
    %c0_623 = arith.constant 0 : index
    %c16_624 = arith.constant 16 : index
    %557 = vector.load %arg8[%c0_623, %c16_624] : memref<8x288xf32, #tpu.memory_space<vmem>>, vector<8x256xf32>
    tpu.vector_store %arg8[%c0_623, %c16_624], %549 {strides = array<i32>} : memref<8x288xf32, #tpu.memory_space<vmem>>, vector<8x256xf32>,
    %c0_625 = arith.constant 0 : index
    %c0_626 = arith.constant 0 : index
    %558 = vector.load %arg8[%c0_625, %c0_626] : memref<8x288xf32, #tpu.memory_space<vmem>>, vector<8x256xf32>
    %c0_627 = arith.constant 0 : index
    %c0_628 = arith.constant 0 : index
    %c0_629 = arith.constant 0 : index
    %559 = vector.load %arg5[%c0_627, %c0_628, %c0_629] : memref<11x8x8xf32, #tpu.memory_space<vmem>>, vector<1x8x8xf32>
    %560 = vector.shape_cast %559 : vector<1x8x8xf32> to vector<8x8xf32>
    %cst_630 = arith.constant dense<0.000000e+00> : vector<8x256xf32>
    %561 = tpu.matmul %560, %558, %cst_630 {dimension_numbers = #tpu.dot_dimension_numbers<[1], [0], [0], [1], [0, 0, 1, 1], [], []>} : vector<8x8xf32>, vector<8x256xf32>, vector<8x256xf32> -> vector<8x256xf32>
    %562 = arith.addf %556, %561 : vector<8x256xf32>
    %c0_631 = arith.constant 0 : index
    %c16_632 = arith.constant 16 : index
    %563 = vector.load %arg8[%c0_631, %c16_632] : memref<8x288xf32, #tpu.memory_space<vmem>>, vector<8x256xf32>
    %c1_633 = arith.constant 1 : index
    %c0_634 = arith.constant 0 : index
    %c0_635 = arith.constant 0 : index
    %564 = vector.load %arg5[%c1_633, %c0_634, %c0_635] : memref<11x8x8xf32, #tpu.memory_space<vmem>>, vector<1x8x8xf32>
    %565 = vector.shape_cast %564 : vector<1x8x8xf32> to vector<8x8xf32>
    %cst_636 = arith.constant dense<0.000000e+00> : vector<8x256xf32>
    %566 = tpu.matmul %565, %563, %cst_636 {dimension_numbers = #tpu.dot_dimension_numbers<[1], [0], [0], [1], [0, 0, 1, 1], [], []>} : vector<8x8xf32>, vector<8x256xf32>, vector<8x256xf32> -> vector<8x256xf32>
    %567 = arith.addf %562, %566 : vector<8x256xf32>
    %c0_637 = arith.constant 0 : index
    %c32_638 = arith.constant 32 : index
    %568 = vector.load %arg8[%c0_637, %c32_638] : memref<8x288xf32, #tpu.memory_space<vmem>>, vector<8x256xf32>
    %c2_639 = arith.constant 2 : index
    %c0_640 = arith.constant 0 : index
    %c0_641 = arith.constant 0 : index
    %569 = vector.load %arg5[%c2_639, %c0_640, %c0_641] : memref<11x8x8xf32, #tpu.memory_space<vmem>>, vector<1x8x8xf32>
    %570 = vector.shape_cast %569 : vector<1x8x8xf32> to vector<8x8xf32>
    %cst_642 = arith.constant dense<0.000000e+00> : vector<8x256xf32>
    %571 = tpu.matmul %570, %568, %cst_642 {dimension_numbers = #tpu.dot_dimension_numbers<[1], [0], [0], [1], [0, 0, 1, 1], [], []>} : vector<8x8xf32>, vector<8x256xf32>, vector<8x256xf32> -> vector<8x256xf32>
    %572 = arith.addf %567, %571 : vector<8x256xf32>
    %c0_643 = arith.constant 0 : index
    %c16_644 = arith.constant 16 : index
    %573 = vector.load %arg8[%c0_643, %c16_644] : memref<8x288xf32, #tpu.memory_space<vmem>>, vector<8x256xf32>
    tpu.vector_store %arg8[%c0_643, %c16_644], %551 {strides = array<i32>} : memref<8x288xf32, #tpu.memory_space<vmem>>, vector<8x256xf32>,
    %c0_645 = arith.constant 0 : index
    %c0_646 = arith.constant 0 : index
    %574 = vector.load %arg8[%c0_645, %c0_646] : memref<8x288xf32, #tpu.memory_space<vmem>>, vector<8x256xf32>
    %c3_647 = arith.constant 3 : index
    %c0_648 = arith.constant 0 : index
    %c0_649 = arith.constant 0 : index
    %575 = vector.load %arg5[%c3_647, %c0_648, %c0_649] : memref<11x8x8xf32, #tpu.memory_space<vmem>>, vector<1x8x8xf32>
    %576 = vector.shape_cast %575 : vector<1x8x8xf32> to vector<8x8xf32>
    %cst_650 = arith.constant dense<0.000000e+00> : vector<8x256xf32>
    %577 = tpu.matmul %576, %574, %cst_650 {dimension_numbers = #tpu.dot_dimension_numbers<[1], [0], [0], [1], [0, 0, 1, 1], [], []>} : vector<8x8xf32>, vector<8x256xf32>, vector<8x256xf32> -> vector<8x256xf32>
    %578 = arith.addf %572, %577 : vector<8x256xf32>
    %c0_651 = arith.constant 0 : index
    %c16_652 = arith.constant 16 : index
    %579 = vector.load %arg8[%c0_651, %c16_652] : memref<8x288xf32, #tpu.memory_space<vmem>>, vector<8x256xf32>
    %c4_653 = arith.constant 4 : index
    %c0_654 = arith.constant 0 : index
    %c0_655 = arith.constant 0 : index
    %580 = vector.load %arg5[%c4_653, %c0_654, %c0_655] : memref<11x8x8xf32, #tpu.memory_space<vmem>>, vector<1x8x8xf32>
    %581 = vector.shape_cast %580 : vector<1x8x8xf32> to vector<8x8xf32>
    %cst_656 = arith.constant dense<0.000000e+00> : vector<8x256xf32>
    %582 = tpu.matmul %581, %579, %cst_656 {dimension_numbers = #tpu.dot_dimension_numbers<[1], [0], [0], [1], [0, 0, 1, 1], [], []>} : vector<8x8xf32>, vector<8x256xf32>, vector<8x256xf32> -> vector<8x256xf32>
    %583 = arith.addf %578, %582 : vector<8x256xf32>
    %c0_657 = arith.constant 0 : index
    %c32_658 = arith.constant 32 : index
    %584 = vector.load %arg8[%c0_657, %c32_658] : memref<8x288xf32, #tpu.memory_space<vmem>>, vector<8x256xf32>
    %c5_659 = arith.constant 5 : index
    %c0_660 = arith.constant 0 : index
    %c0_661 = arith.constant 0 : index
    %585 = vector.load %arg5[%c5_659, %c0_660, %c0_661] : memref<11x8x8xf32, #tpu.memory_space<vmem>>, vector<1x8x8xf32>
    %586 = vector.shape_cast %585 : vector<1x8x8xf32> to vector<8x8xf32>
    %cst_662 = arith.constant dense<0.000000e+00> : vector<8x256xf32>
    %587 = tpu.matmul %586, %584, %cst_662 {dimension_numbers = #tpu.dot_dimension_numbers<[1], [0], [0], [1], [0, 0, 1, 1], [], []>} : vector<8x8xf32>, vector<8x256xf32>, vector<8x256xf32> -> vector<8x256xf32>
    %588 = arith.addf %583, %587 : vector<8x256xf32>
    %c0_663 = arith.constant 0 : index
    %c16_664 = arith.constant 16 : index
    %589 = vector.load %arg8[%c0_663, %c16_664] : memref<8x288xf32, #tpu.memory_space<vmem>>, vector<8x256xf32>
    tpu.vector_store %arg8[%c0_663, %c16_664], %555 {strides = array<i32>} : memref<8x288xf32, #tpu.memory_space<vmem>>, vector<8x256xf32>,
    %c0_665 = arith.constant 0 : index
    %c0_666 = arith.constant 0 : index
    %590 = vector.load %arg8[%c0_665, %c0_666] : memref<8x288xf32, #tpu.memory_space<vmem>>, vector<8x256xf32>
    %c6_667 = arith.constant 6 : index
    %c0_668 = arith.constant 0 : index
    %c0_669 = arith.constant 0 : index
    %591 = vector.load %arg5[%c6_667, %c0_668, %c0_669] : memref<11x8x8xf32, #tpu.memory_space<vmem>>, vector<1x8x8xf32>
    %592 = vector.shape_cast %591 : vector<1x8x8xf32> to vector<8x8xf32>
    %cst_670 = arith.constant dense<0.000000e+00> : vector<8x256xf32>
    %593 = tpu.matmul %592, %590, %cst_670 {dimension_numbers = #tpu.dot_dimension_numbers<[1], [0], [0], [1], [0, 0, 1, 1], [], []>} : vector<8x8xf32>, vector<8x256xf32>, vector<8x256xf32> -> vector<8x256xf32>
    %594 = arith.addf %588, %593 : vector<8x256xf32>
    %c0_671 = arith.constant 0 : index
    %c16_672 = arith.constant 16 : index
    %595 = vector.load %arg8[%c0_671, %c16_672] : memref<8x288xf32, #tpu.memory_space<vmem>>, vector<8x256xf32>
    %c7_673 = arith.constant 7 : index
    %c0_674 = arith.constant 0 : index
    %c0_675 = arith.constant 0 : index
    %596 = vector.load %arg5[%c7_673, %c0_674, %c0_675] : memref<11x8x8xf32, #tpu.memory_space<vmem>>, vector<1x8x8xf32>
    %597 = vector.shape_cast %596 : vector<1x8x8xf32> to vector<8x8xf32>
    %cst_676 = arith.constant dense<0.000000e+00> : vector<8x256xf32>
    %598 = tpu.matmul %597, %595, %cst_676 {dimension_numbers = #tpu.dot_dimension_numbers<[1], [0], [0], [1], [0, 0, 1, 1], [], []>} : vector<8x8xf32>, vector<8x256xf32>, vector<8x256xf32> -> vector<8x256xf32>
    %599 = arith.addf %594, %598 : vector<8x256xf32>
    %c0_677 = arith.constant 0 : index
    %c32_678 = arith.constant 32 : index
    %600 = vector.load %arg8[%c0_677, %c32_678] : memref<8x288xf32, #tpu.memory_space<vmem>>, vector<8x256xf32>
    %c8_679 = arith.constant 8 : index
    %c0_680 = arith.constant 0 : index
    %c0_681 = arith.constant 0 : index
    %601 = vector.load %arg5[%c8_679, %c0_680, %c0_681] : memref<11x8x8xf32, #tpu.memory_space<vmem>>, vector<1x8x8xf32>
    %602 = vector.shape_cast %601 : vector<1x8x8xf32> to vector<8x8xf32>
    %cst_682 = arith.constant dense<0.000000e+00> : vector<8x256xf32>
    %603 = tpu.matmul %602, %600, %cst_682 {dimension_numbers = #tpu.dot_dimension_numbers<[1], [0], [0], [1], [0, 0, 1, 1], [], []>} : vector<8x8xf32>, vector<8x256xf32>, vector<8x256xf32> -> vector<8x256xf32>
    %604 = arith.addf %599, %603 : vector<8x256xf32>
    %c0_683 = arith.constant 0 : index
    %c1_684 = arith.constant 1 : index
    %605 = vector.load %arg9[%c0_683, %c1_684] : memref<8x258xf32, #tpu.memory_space<vmem>>, vector<8x256xf32>
    tpu.vector_store %arg9[%c0_683, %c1_684], %551 {strides = array<i32>} : memref<8x258xf32, #tpu.memory_space<vmem>>, vector<8x256xf32>,
    %c9_685 = arith.constant 9 : index
    %c0_686 = arith.constant 0 : index
    %c0_687 = arith.constant 0 : index
    %606 = vector.load %arg5[%c9_685, %c0_686, %c0_687] : memref<11x8x8xf32, #tpu.memory_space<vmem>>, vector<1x8x8xf32>
    %607 = vector.shape_cast %606 : vector<1x8x8xf32> to vector<8x8xf32>
    %c0_688 = arith.constant 0 : index
    %c0_689 = arith.constant 0 : index
    %608 = vector.load %arg9[%c0_688, %c0_689] : memref<8x258xf32, #tpu.memory_space<vmem>>, vector<8x256xf32>
    %cst_690 = arith.constant dense<0.000000e+00> : vector<8x256xf32>
    %609 = tpu.matmul %607, %608, %cst_690 {dimension_numbers = #tpu.dot_dimension_numbers<[1], [0], [0], [1], [0, 0, 1, 1], [], []>} : vector<8x8xf32>, vector<8x256xf32>, vector<8x256xf32> -> vector<8x256xf32>
    %610 = vector.broadcast %12 : vector<1x256xf32> to vector<8x256xf32>
    %611 = arith.mulf %610, %609 : vector<8x256xf32>
    %612 = arith.addf %604, %611 : vector<8x256xf32>
    %c10_691 = arith.constant 10 : index
    %c0_692 = arith.constant 0 : index
    %c0_693 = arith.constant 0 : index
    %613 = vector.load %arg5[%c10_691, %c0_692, %c0_693] : memref<11x8x8xf32, #tpu.memory_space<vmem>>, vector<1x8x8xf32>
    %614 = vector.shape_cast %613 : vector<1x8x8xf32> to vector<8x8xf32>
    %c0_694 = arith.constant 0 : index
    %c2_695 = arith.constant 2 : index
    %615 = vector.load %arg9[%c0_694, %c2_695] : memref<8x258xf32, #tpu.memory_space<vmem>>, vector<8x256xf32>
    %cst_696 = arith.constant dense<0.000000e+00> : vector<8x256xf32>
    %616 = tpu.matmul %614, %615, %cst_696 {dimension_numbers = #tpu.dot_dimension_numbers<[1], [0], [0], [1], [0, 0, 1, 1], [], []>} : vector<8x8xf32>, vector<8x256xf32>, vector<8x256xf32> -> vector<8x256xf32>
    %617 = vector.broadcast %13 : vector<1x256xf32> to vector<8x256xf32>
    %618 = arith.mulf %617, %616 : vector<8x256xf32>
    %619 = arith.addf %612, %618 : vector<8x256xf32>
    %cst_697 = arith.constant 0.000000e+00 : f32
    %620 = vector.broadcast %cst_697 : f32 to vector<8x256xf32>
    %621 = arith.maximumf %619, %620 : vector<8x256xf32>
    %622 = arith.addf %551, %621 : vector<8x256xf32>
    %c0_698 = arith.constant 0 : index
    %c0_699 = arith.constant 0 : index
    %c1792_700 = arith.constant 1792 : index
    %623 = vector.load %arg7[%c0_698, %c0_699, %c1792_700] : memref<1x8x2048xf32, #tpu.memory_space<vmem>>, vector<1x8x256xf32>
    %624 = vector.shape_cast %623 : vector<1x8x256xf32> to vector<8x256xf32>
    %625 = vector.shape_cast %622 : vector<8x256xf32> to vector<1x8x256xf32>
    tpu.vector_store %arg7[%c0_698, %c0_699, %c1792_700], %625 {strides = array<i32>} : memref<1x8x2048xf32, #tpu.memory_space<vmem>>, vector<1x8x256xf32>,
    return
  }
  func.func @transform_0(%arg0: i32, %arg1: i32) -> (i32, i32, i32) {
    %c0_i32 = arith.constant 0 : i32
    %c0_i32_0 = arith.constant 0 : i32
    return %arg0, %c0_i32, %arg1 : i32, i32, i32
  }
  func.func @transform_1(%arg0: i32, %arg1: i32) -> (i32, i32, i32) {
    %c8_i32 = arith.constant 8 : i32
    %0 = arith.muli %arg1, %c8_i32 : i32
    %c1_i32 = arith.constant 1 : i32
    %1 = arith.subi %0, %c1_i32 : i32
    %c0_i32 = arith.constant 0 : i32
    %2 = arith.maxsi %1, %c0_i32 : i32
    %c0_i32_0 = arith.constant 0 : i32
    %c0_i32_1 = arith.constant 0 : i32
    return %arg0, %c0_i32_0, %2 : i32, i32, i32
  }
  func.func @transform_2(%arg0: i32, %arg1: i32) -> (i32, i32, i32) {
    %c1_i32 = arith.constant 1 : i32
    %0 = arith.addi %arg1, %c1_i32 : i32
    %c8_i32 = arith.constant 8 : i32
    %1 = arith.muli %0, %c8_i32 : i32
    %c15_i32 = arith.constant 15 : i32
    %2 = arith.minsi %1, %c15_i32 : i32
    %c0_i32 = arith.constant 0 : i32
    %c0_i32_0 = arith.constant 0 : i32
    return %arg0, %c0_i32, %2 : i32, i32, i32
  }
  func.func @transform_3(%arg0: i32, %arg1: i32) -> (i32, i32, i32) {
    %c0_i32 = arith.constant 0 : i32
    %c0_i32_0 = arith.constant 0 : i32
    %c0_i32_1 = arith.constant 0 : i32
    %c0_i32_2 = arith.constant 0 : i32
    return %c0_i32, %c0_i32_0, %c0_i32_1 : i32, i32, i32
  }
  func.func @transform_4(%arg0: i32, %arg1: i32) -> (i32, i32) {
    %c0_i32 = arith.constant 0 : i32
    %c0_i32_0 = arith.constant 0 : i32
    %c0_i32_1 = arith.constant 0 : i32
    return %c0_i32, %c0_i32_0 : i32, i32
  }
  func.func @transform_5(%arg0: i32, %arg1: i32) -> (i32, i32, i32) {
    %c0_i32 = arith.constant 0 : i32
    %c0_i32_0 = arith.constant 0 : i32
    return %arg0, %c0_i32, %arg1 : i32, i32, i32
  }
}

</mosaic_0001>

<bundles_post_ra>
// kernel: tpu_custom_call.1
= control target key start
LH: loop header
LB: loop body
LE: loop exit
PB: predicated region body
PF: predicated region fallthrough
CT: control target
= control target key end

     0   :  { %s8822_s0 = inlined_call_operand.hbm [shape: f32[2,8,4096], index: 0, kind: input, shape index: {}]   ;;  %s8823_s1 = inlined_call_operand.hbm [shape: f32[2,8,4096], index: 1, kind: input, shape index: {}]   ;;  %s8824_s2 = inlined_call_operand.hbm [shape: f32[2,8,4096], index: 2, kind: input, shape index: {}]   ;;  %s8825_s3 = inlined_call_operand.vmem [shape: f32[11,8,8], index: 3, kind: input, shape index: {}]   ;;  %s8826_s4 = inlined_call_operand.vmem [shape: f32[2,256], index: 4, kind: input, shape index: {}]   ;;  %s8827_s5 = inlined_call_operand.hbm [shape: f32[2,8,4096], index: 5, kind: output, shape index: {}]  }
   0x1   :  { %8842 = sst [smem:[#allocation26_spill]] %s8822_s0 }
   0x2   :  { %8843 = sst [smem:[#allocation27_spill]] %s8823_s1 }
   0x3   :  { %8844 = sst [smem:[#allocation28_spill]] %s8825_s3 }
   0x4   :  { %8845 = sst [smem:[#allocation29_spill]] %s8826_s4 }
   0x5   :  { %8846 = sst [smem:[#allocation30_spill]] %s8827_s5 }
   0x6   :  { %10 = vsyncpa [#allocation5], 0 }
   0x7   :  { %12 = vsyncpa [#allocation5 + $0x1], 0 }
   0x8   :  { %13 = vsyncpa [#allocation8], 0 }
   0x9   :  { %15 = vsyncpa [#allocation8 + $0x1], 0 }
   0xa   :  { %16 = vsyncpa [#allocation6], 0 }
   0xb   :  { %18 = vsyncpa [#allocation6 + $0x1], 0  ;;  %s7022_s18 = smov 0   ;;  %s7024_s19 = smov 0  }
   0xc   :  { %s7026_s20 = smov 0   ;;  %s7028_s21 = smov 0  }
   0xd   :  { %s7030_s22 = smov 0   ;;  %s7032_s23 = smov 0  }
   0xe   :  { %s7034_s24 = smov 0   ;;  %s7036_s25 = smov 0  }
   0xf   :  { %s7038_s26 = smov 0   ;;  %s7040_s27 = smov 0  }
  0x10   :  { %s7042_s28 = smov 0   ;;  %s7044_s29 = smov 0  }
  0x11   :  { %s7046_s30 = smov 0   ;;  %s7048_s6 = smov 0  }
  0x12 LB: > { %8847 = sst [smem:[#allocation15_spill]] %s6952_s23  ;;  %s7093_s7 = sadd.s32 4294967295, %s6984_s6   ;;  %s6984_s6 = sphi %s7048_s6, %s24_s6   ;;  %s6980_s30 = sphi %s7046_s30, %s8888_s30   ;;  %s6976_s29 = sphi %s7044_s29, %s8897_s29   ;;  %s6972_s28 = sphi %s7042_s28, %s8886_s28   ;;  %s6968_s27 = sphi %s7040_s27, %s8896_s27   ;;  %s6964_s26 = sphi %s7038_s26, %s8885_s26   ;;  %s6960_s25 = sphi %s7036_s25, %s8895_s25   ;;  %s6956_s24 = sphi %s7034_s24, %s8894_s24   ;;  %s6952_s23 = sphi %s7032_s23, %s8883_s23   ;;  %s6948_s22 = sphi %s7030_s22, %s8893_s22   ;;  %s6944_s21 = sphi %s7028_s21, %s8892_s21   ;;  %s6940_s20 = sphi %s7026_s20, %s8891_s20   ;;  %s6936_s19 = sphi %s7024_s19, %s8890_s19   ;;  %s6932_s18 = sphi %s7022_s18, %s8889_s18  }
  0x13   : > { %8848 = sst [smem:[#allocation16_spill]] %s6964_s26  ;;  %s33_s8 = sadd.s32 1, %s6976_s29 }
  0x14   : > { %8849 = sst [smem:[#allocation17_spill]] %s6968_s27  ;;  %p34_p0 = scmp.ge.s32.totalorder %s33_s8, 2 }
  0x15   : > { %8850 = sst [smem:[#allocation18_spill]] %s6972_s28  ;;  %s36_s9 = sadd.s32 1, %s6980_s30 }
  0x16   : > { %8851 = sst [smem:[#allocation19_spill]] %s6980_s30  ;;  %p53_p1 = scmp.eq.s32.totalorder %s6984_s6, 0 }
  0x17   : > { %p8840_p2 = scmp.eq.s32.totalorder %s7093_s7, 0  ;;  %s8899_s8 = smov (%p34_p0, %s33_s8), 0 }
  0x18   : > { %8852 = sst [smem:[#allocation20_spill]] %s8899_s8  ;;  %s8901_s9 = smov (!%p34_p0, %s36_s9), %s6980_s30 }
  0x19   : > { %s41_s10 = ssub.s32 %s6976_s29, %s8899_s8  ;;  %s5930_s11 = sshll.u32 %s6976_s29, 3 }
  0x1a   : > { %p38_p3 = scmp.ge.s32.totalorder %s8901_s9, 2  ;;  %s5931_s12 = sadd.s32 4294967295, %s5930_s11 }
  0x1b   : > { %p70_p4 = scmp.gt.s32.totalorder %s5931_s12, 0  ;;  %s5932_s13 = sshll.u32 %s8899_s8, 3 }
  0x1c   : > { %s8903_s9 = smov (%p38_p3, %s8901_s9), 0  ;;  %s5933_s15 = sadd.s32 4294967295, %s5932_s13 }
  0x1d   : > { %8853 = sst [smem:[#allocation21_spill]] %s8903_s9  ;;  %s8905_s12 = smov (!%p70_p4, %s5931_s12), 0 }
  0x1e   : > { %s7110_s14 = ssub.s32 %s6980_s30, %s8903_s9  ;;  %p74_p5 = scmp.gt.s32.totalorder %s5933_s15, 0 }
  0x1f   : > { %s7113_s16 = sor.u32 %s41_s10, %s7110_s14  ;;  %s81_s17 = sadd.s32 1, %s6952_s23 }
  0x20   : > { %p43_p6 = scmp.eq.s32.totalorder %s7113_s16, 0  ;;  %s8907_s15 = smov (!%p74_p5, %s5933_s15), 0 }
  0x21   : > { %p88_p7 = scmp.ne.s32.totalorder %s6952_s23, %s6948_s22  ;;  %p94_p8 = scmp.ne.s32.totalorder %s6948_s22, %s6944_s21 }
  0x22   : > { %s77_s8 = ssub.s32 %s8905_s12, %s8907_s15  ;;  %s7121_s9 = sadd.s32 8, %s5930_s11 }
  0x23   : > { %s78_s5 = sor.u32 %s77_s8, %s7110_s14  ;;  %p7126_p9 = por %p88_p7, %p53_p1 }
  0x24   : > { %p79_p10 = scmp.eq.s32.totalorder %s78_s5, 0  ;;  %p7132_p11 = por %p94_p8, %p8840_p2 }
  0x25   : > { %s7137_s21 = sadd.s32 8, %s5932_s13  ;;  %p8841_p0 = scmp.lt.s32.totalorder %s6984_s6, 4 }
  0x26   : > { %s8855_s28 = scalar_select %p7132_p11, 1, 0 }
  0x27   : > { %s7140_s11 = scalar_select %p79_p10, %s6952_s23, %s81_s17  }
  0x28   : > { %8856 = sst [smem:[#allocation22_spill]] %s8855_s28  ;;  %s7145_s8 = sshll.u32 %s6980_s30, 5 }
  0x29   : > { %8857 = sst [smem:[#allocation23_spill]] %s7140_s11  ;;  %s252_s5 = sand.u32 1, %s6984_s6  }
  0x2a   : > { %s254_s15 = sand.u32 1, %s6952_s23   ;;  %s5945_s3 = sshll.u32 %s8905_s12, 1 }
  0x2b   : > { %s5942_s4 = sshll.u32 %s254_s15, 4  ;;  %s265_s27 = sadd.s32 %s5945_s3, %s7145_s8 }
  0x2c   : > { %s256_s13 = scalar_lea.vmem [#allocation7], %s5942_s4  ;;  %s5947_s11 = sshll.u32 %s265_s27, 3 }
  0x2d   : > { %s271_s17 = sshll.u32 %s256_s13, 4  ;;  %s8858_s1 = sld [smem:[#allocation27_spill]]  ;;  %s272_s17 = int_to_ptr.vmem [resolvable:$true] %s271_s17 }
  0x2e   : > { %p6239_p3 = pnand %p8841_p0, %p7126_p9  ;;  %p5953_p4 = scmp.ge.s32.totalorder %s6984_s6, 1 }
  0x2f   : > { %s7158_s4 = scalar_lea.sflag [#allocation8], %s252_s5  ;;  %p302_p5 = scmp.lt.s32.totalorder %s6984_s6, 5 }
  0x30   : > { %s5929_s28 = sadd.s32 4294967294, %s6984_s6   ;;  %s45_s30 = sadd.s32 1, %s6964_s26 }
  0x31   : > { %p7162_p7 = pnand %p5953_p4, %p302_p5  ;;  %p52_p8 = scmp.ne.s32.totalorder %s6964_s26, %s6960_s25 }
  0x32   : > { %s7171_s12 = scalar_select %p43_p6, %s6964_s26, %s45_s30  }
  0x33   : > { %s267_s23 = scalar_lea.hbm %s8858_s1, %s5947_s11  ;;  %p58_p9 = scmp.ne.s32.totalorder %s6960_s25, %s6956_s24 }
  0x34   : > { %s269_s3 = sshll.u32 %s267_s23, 4  ;;  %8860 = sst [smem:[#allocation24_spill]] %s7171_s12  ;;  %s270_s3 = int_to_ptr.hbm [resolvable:$true] %s269_s3 }
  0x35   : > { %6241 = dma.hbm_to_vmem [thread:$0]  (!%p6239_p3), %s270_s3, 256, %s272_s17, %s7158_s4  }
  0x36   : > { %p198_p10 = scmp.eq.s32.totalorder %s7093_s7, 3  ;;  %p204_p13 = scmp.eq.s32.totalorder %s5929_s28, 3 }
  0x37   : > { %p7180_p12 = por %p53_p1, %p52_p8  ;;  %p7186_p3 = por %p8840_p2, %p58_p9 }
  0x38   : > { %p7190_p4 = por %p198_p10, %p52_p8  ;;  %p7194_p6 = por %p204_p13, %p58_p9 }
  0x39   : > { %s230_s5 = sand.u32 1, %s6964_s26   ;;  %s5939_s15 = sshll.u32 %s6976_s29, 4 }
  0x3a   : > { %s8864_s11 = scalar_select %p7194_p6, 1, 0 }
  0x3b   : > { %s5938_s13 = sshll.u32 %s230_s5, 7  ;;  %s239_s17 = sadd.s32 %s7145_s8, %s5939_s15 }
  0x3c   : > { %8865 = sst [smem:[#allocation25_spill]] %s8864_s11  ;;  %s5941_s3 = sshll.u32 %s239_s17, 3 }
  0x3d   : > { %s234_s28 = scalar_lea.vmem [#allocation4], %s5938_s13  ;;  %s8866_s0 = sld [smem:[#allocation26_spill]] }
  0x3e   : > { %s245_s30 = sshll.u32 %s234_s28, 4  ;;  %p6236_p13 = pnand %p8841_p0, %p7180_p12  ;;  %s246_s30 = int_to_ptr.vmem [resolvable:$true] %s245_s30 }
  0x3f   : > { %s231_s15 = scalar_lea.sflag [#allocation5], %s230_s5  ;;  %p8867_p5 = scmp.lt.s32.totalorder %s7121_s9, 15 }
  0x40   : > { %p8868_p8 = scmp.lt.s32.totalorder %s7137_s21, 15  ;;  %s117_s13 = sadd.s32 1, %s6940_s20 }
  0x41   : > { %s8909_s9 = smov (!%p8867_p5, %s7121_s9), 15  ;;  %p124_p9 = scmp.ne.s32.totalorder %s6940_s20, %s6936_s19 }
  0x42   : > { %s8911_s21 = smov (!%p8868_p8, %s7137_s21), 15  ;;  %p130_p10 = scmp.ne.s32.totalorder %s6936_s19, %s6932_s18 }
  0x43   : > { %s241_s11 = scalar_lea.hbm %s8866_s0, %s5941_s3  ;;  %s113_s1 = ssub.s32 %s8909_s9, %s8911_s21 }
  0x44   : > { %s243_s26 = sshll.u32 %s241_s11, 4  ;;  %s114_s12 = sor.u32 %s113_s1, %s7110_s14  ;;  %s244_s26 = int_to_ptr.hbm [resolvable:$true] %s243_s26 }
  0x45   : > { %6238 = dma.hbm_to_vmem [thread:$0]  (!%p6236_p13), %s244_s26, 2048, %s246_s30, %s231_s15  }
  0x46   : > { %p7222_p2 = por %p124_p9, %p53_p1  ;;  %p115_p12 = scmp.eq.s32.totalorder %s114_s12, 0 }
  0x47   : > { %p8870_p0 = scmp.eq.s32.totalorder %s7093_s7, 0  ;;  %s280_s11 = sand.u32 1, %s6940_s20  }
  0x48   : > { %s5950_s5 = sshll.u32 %s8909_s9, 1  ;;  %s5948_s18 = sshll.u32 %s280_s11, 4 }
  0x49   : > { %p7228_p13 = por %p130_p10, %p8870_p0  ;;  %s291_s14 = sadd.s32 %s5950_s5, %s7145_s8 }
  0x4a   : > { %s7234_s17 = scalar_select %p115_p12, %s6940_s20, %s117_s13  }
  0x4b   : > { %s5952_s21 = sshll.u32 %s291_s14, 3  ;;  %s282_s15 = scalar_lea.vmem [#allocation9], %s5948_s18 }
  0x4c   : > { %s293_s30 = scalar_lea.hbm %s8824_s2, %s5952_s21  ;;  %s297_s1 = sshll.u32 %s282_s15, 4  ;;  %s298_s1 = int_to_ptr.vmem [resolvable:$true] %s297_s1 }
  0x4d   : > { %s295_s0 = sshll.u32 %s293_s30, 4  ;;  %p8872_p1 = scmp.lt.s32.totalorder %s6984_s6, 4  ;;  %s296_s0 = int_to_ptr.hbm [resolvable:$true] %s295_s0 }
  0x4e   : > { %306 = sbr.rel (%p7162_p7) target bundleno = 1238 (0x4d6), region = 40  ;;  %s7248_s9 = sand.u32 (!%p7162_p7), 1, %s6960_s25  }
  0x4f   : > { %p6242_p0 = pnand %p8872_p1, %p7222_p2  ;;  %s5954_s8 = sshll.u32 (!%p7162_p7), %s7248_s9, 7 }
  0x50   : > { %s309_s13 = scalar_lea.sflag (!%p7162_p7), [#allocation5], %s7248_s9  ;;  %s7254_s12 = scalar_lea.vmem (!%p7162_p7), [#allocation4], %s5954_s8 }
  0x51   : > { %6244 = dma.hbm_to_vmem [thread:$0]  (!%p6242_p0), %s296_s0, 256, %s298_s1, %s7158_s4  }
  0x53   : > { %6915 = dma.done.wait (%p7186_p3), %s309_s13, 2048  }
  0x54   : > { %6917 = vsyncadd (%p7186_p3), %s309_s13, 4294965248  ;;  %s318_s4 = sand.u32 1, %s7093_s7   ;;  %s320_s27 = sand.u32 1, %s6948_s22  }
  0x55   : > { %s5955_s23 = sshll.u32 %s320_s27, 4  ;;  %s319_s11 = scalar_lea.sflag [#allocation8], %s318_s4 }
  0x56   : > { %s322_s5 = scalar_lea.vmem [#allocation7], %s5955_s23 }
  0x57   : > { %6919 = dma.done.wait (%p7132_p11), %s319_s11, 256  }
  0x58   : > { %6921 = vsyncadd (%p7132_p11), %s319_s11, 4294967040  ;;  %s330_s18 = sand.u32 1, %s6936_s19  }
  0x59   : > { %s7267_s14 = sshll.u32 %s330_s18, 4 }
  0x5a   : > { %s332_s10 = scalar_lea.vmem [#allocation9], %s7267_s14 }
  0x5b   : > { %6923 = dma.done.wait (%p7228_p13), %s319_s11, 256  }
  0x5c   : > { %6925 = vsyncadd (%p7228_p13), %s319_s11, 4294967040  ;;  %s8874_s7 = sld [smem:[#allocation17_spill]]  ;;  %v403_v1 = vld [vmem:[%s7254_s12 + $0x8] sm:$0xff]  ;;  %v397_v2 = vld [vmem:[%s322_s5] sm:$0xff]  ;;  %s6986_s3 = smov 16   ;;  %vm386_vm0 = vcmask 130048  }
  0x5d   : > { %589 = vrot.lane.b32.xlu1 %v403_v1, %s6986_s3  ;;  %1104 = vrot.lane.b32.xlu2 %v403_v1, %s6986_s3  ;;  %v398_v4 = vld [vmem:[%s322_s5 + $0x8] sm:$0xff]  ;;  %v402_v8 = vld [vmem:[%s7254_s12] sm:$0xff]  ;;  %s6987_s26 = smov 1   ;;  %v6988_v13 = vmov 0.0   ;;  %vm388_vm1 = vcmask 261248   ;;  %vm392_vm2 = vcmask 15368  }
  0x5e   : > { %v405_v5 = vld [vmem:[%s7254_s12 + $0x18] sm:$0xff]  ;;  %v7284_v7 = vld [vmem:[%s7254_s12 + $0x28] sm:$0xff]  ;;  %v404_v9 = vld [vmem:[%s7254_s12 + $0x10] sm:$0xff]  ;;  %387 = vst.msk [vmem:[#allocation2] sm:$0xff] %vm386_vm0, %v6988_v13  ;;  %vm390_vm3 = vcmask 7168   ;;  %vm416_vm4 = vcmask 1047680  }
  0x5f   : > { %v1098_v10 = vld [vmem:[%s7254_s12 + $0x20] sm:$0xff]  ;;  %v7303_v11 = vld [vmem:[%s7254_s12 + $0x30] sm:$0xff]  ;;  %v7311_v12 = vld [vmem:[%s7254_s12 + $0x38] sm:$0xff]  ;;  %389 = vst.msk [vmem:[#allocation2 + $0x10] sm:$0xff] %vm388_vm1, %v6988_v13  ;;  %s6989_s28 = smov 112   ;;  %s6990_s30 = smov 126  }
  0x60   : > { %393 = vst.msk [vmem:[#allocation3 + $0x10] sm:$0xff] %vm392_vm2, %v6988_v13  ;;  %vm957_vm5 = vcmask 1047560   ;;  %s6991_s15 = smov 96   ;;  %s8875_s0 = sld [smem:[#allocation28_spill]]  ;;  %vm440_vm6 = vcmask 64512   ;;  %vm435_vm7 = vcmask 916480  }
  0x61   : > { %391 = vst.msk [vmem:[#allocation3] sm:$0xff] %vm390_vm3, %v6988_v13  ;;  %vm535_vm8 = vcmask 785408   ;;  %vm1031_vm9 = vcmask 1031168   ;;  %s8876_s13 = sld [smem:[#allocation29_spill]]  ;;  %s8294_s23 = scalar_lea.vmem [#allocation10], %s5954_s8 }
  0x62   : > { %p382_p2 = scmp.eq.s32.totalorder %s8874_s7, 0  ;;  %p384_p11 = scmp.eq.s32.totalorder %s8874_s7, 1 }
  0x63   : > { %s6216_s5 = sshll.u32 %s8874_s7, 4  ;;  %s8878_s27 = sld [smem:[#allocation30_spill]] }
  0x64   : > { %s383_s21 = scalar_select %p382_p2, 0.0, 1.0 }
  0x65   : > { %771 = vrot.lane.b32.xlu1 %v405_v5, %s6986_s3  ;;  %1277 = vrot.lane.b32.xlu2 %v405_v5, %s6986_s3  ;;  %s385_s8 = scalar_select %p384_p11, 0.0, 1.0 }
  0x66   : > { %v399_v0 = vstv %s383_s21 }
  0x67   : > { %v400_v3 = vmul.f32 %v399_v0, %v397_v2  ;;  %v401_v6 = vmul.f32 %v399_v0, %v398_v4 }
  0x69   : > { %408 = vrot.lane.b32.xlu0 %v400_v3, %s6986_s3 }
  0x6d   : > { %951 = vrot.lane.b32.xlu1 %v403_v1, %s6987_s26  ;;  %1456 = vrot.lane.b32.xlu2 %v7284_v7, %s6986_s3 }
  0x71   : > { %410 = vrot.lane.b32.xlu0 %v401_v6, %s6986_s3 }
  0x75   : > { %1102 = vrot.lane.b32.xlu1 %v402_v8, %s6986_s3  ;;  %1633 = vrot.lane.b32.xlu2 %v405_v5, %s6987_s26 }
  0x79   : > { %587 = vrot.lane.b32.xlu0 %v402_v8, %s6986_s3 }
  0x7d   : > { %1275 = vrot.lane.b32.xlu1 %v404_v9, %s6986_s3  ;;  %1770 = vrot.lane.b32.xlu2 %v404_v9, %s6986_s3 }
  0x81   : > { %769 = vrot.lane.b32.xlu0 %v404_v9, %s6986_s3 }
  0x85   : > { %1454 = vrot.lane.b32.xlu1 %v1098_v10, %s6986_s3  ;;  %1943 = vrot.lane.b32.xlu2 %v1098_v10, %s6986_s3 }
  0x89   : > { %949 = vrot.lane.b32.xlu0 %v402_v8, %s6987_s26 }
  0x8d   : > { %1631 = vrot.lane.b32.xlu1 %v404_v9, %s6987_s26  ;;  %2122 = vrot.lane.b32.xlu2 %v7303_v11, %s6986_s3 }
  0x91   : > { %1772 = vrot.lane.b32.xlu0 %v405_v5, %s6986_s3 }
  0x95   : > { %2299 = vrot.lane.b32.xlu2 %v1098_v10, %s6987_s26  ;;  %2438 = vrot.lane.b32.xlu1 %v1098_v10, %s6986_s3 }
  0x99   : > { %1945 = vrot.lane.b32.xlu0 %v7284_v7, %s6986_s3 }
  0xa1   : > { %2124 = vrot.lane.b32.xlu0 %v7311_v12, %s6986_s3 }
  0xa9   : > { %2301 = vrot.lane.b32.xlu0 %v7284_v7, %s6987_s26 }
  0xb7   : > { %v7321_v14 = vpop.permute.xlu2 %1104 }
  0xbf   : > { %v7323_v15 = vpop.permute.xlu2 %1277 }
  0xc7   : > { %v7326_v18 = vpop.permute.xlu2 %1456 }
  0xcf   : > { %v590_v16 = vpop.permute.xlu1 %589  ;;  %v1634_v24 = vpop.permute.xlu2 %1633 }
  0xd7   : > { %v7328_v19 = vpop.permute.xlu1 %771  ;;  %v1771_v30 = vpop.permute.xlu2 %1770 }
  0xdb   : > { %v409_v17 = vpop.permute.xlu0 %408 }
  0xdc   : > { %417 = vst.msk [vmem:[#allocation2] sm:$0xff] %vm416_vm4, %v409_v17 }
  0xdf   : > { %v952_v23 = vpop.permute.xlu1 %951  ;;  %v1944_v39 = vpop.permute.xlu2 %1943 }
  0xe0   : > { %960 = vst.msk [vmem:[#allocation3 + $0x10] sm:$0xff] %vm390_vm3, %v952_v23 }
  0xe3   : > { %v411_v20 = vpop.permute.xlu0 %410  ;;  %v420_v21 = vld [vmem:[#allocation2] sm:$0xff] }
  0xe4   : > { %v412_v22 = vsel %vm386_vm0, %v409_v17, %v411_v20  ;;  %419 = vst.msk [vmem:[#allocation2 + $0x10] sm:$0xff] %vm386_vm0, %v411_v20  ;;  %502 = vmatpush.msra.mxu2 %v420_v21  ;;  %v7459_v20 = vld [vmem:[%s7254_s12 + $0x48] sm:$0xff] }
  0xe5   : > { %522 = vmatpush.msra.mxu3 %v412_v22  ;;  %v6374_v31 = vpack.i.bf16 %v412_v22, %v420_v21  ;;  %v7482_v22 = vld [vmem:[%s7254_s12 + $0x40] sm:$0xff] }
  0xe7   : > { %v7337_v28 = vpop.permute.xlu1 %1102  ;;  %v1021_v29 = vld [vmem:[#allocation3 + $0x10] sm:$0xff]  ;;  %v2123_v49 = vpop.permute.xlu2 %2122 }
  0xe8   : > { %1029 = vrot.lane.b32.xlu0 %v1021_v29, %s6990_s30  ;;  %1641 = vst.msk [vmem:[#allocation3 + $0x10] sm:$0xff] %vm390_vm3, %v1634_v24 }
  0xeb   : > { %v588_v25 = vpop.permute.xlu0 %587  ;;  %v423_v26 = vld [vmem:[#allocation2 + $0x10] sm:$0xff] }
  0xec   : > { %v591_v27 = vsel %vm386_vm0, %v588_v25, %v590_v16  ;;  %595 = vst.msk [vmem:[#allocation2] sm:$0xff] %vm416_vm4, %v588_v25  ;;  %433 = vrot.lane.b32.xlu1 %v423_v26, %s6989_s28 }
  0xed   : > { %597 = vst.msk [vmem:[#allocation2 + $0x10] sm:$0xff] %vm386_vm0, %v590_v16  ;;  %640 = vmatpush.msrb.mxu3 %v591_v27 }
  0xef   : > { %v7348_v35 = vpop.permute.xlu1 %1275  ;;  %v1695_v36 = vld [vmem:[#allocation3 + $0x10] sm:$0xff]  ;;  %v2300_v56 = vpop.permute.xlu2 %2299 }
  0xf3   : > { %v647_v32 = vld [vmem:[#allocation2] sm:$0xff]  ;;  %v7341_v33 = vpop.permute.xlu0 %769 }
  0xf4   : > { %6375 = vrot.lane.b32.xlu1 %v6374_v31, %s6989_s28  ;;  %620 = vmatpush.msrb.mxu2 %v647_v32  ;;  %777 = vst.msk [vmem:[#allocation2] sm:$0xff] %vm416_vm4, %v7341_v33  ;;  %v649_v34 = vld [vmem:[#allocation2 + $0x10] sm:$0xff]  ;;  %v6394_v42 = vpack.i.bf16 %v591_v27, %v647_v32  ;;  %v7430_v9 = vsel %vm386_vm0, %v7341_v33, %v7328_v19 }
  0xf5   : > { %779 = vst.msk [vmem:[#allocation2 + $0x10] sm:$0xff] %vm386_vm0, %v7328_v19  ;;  %v7456_v19 = vsel %vm386_vm0, %v7337_v28, %v7321_v14 }
  0xf7   : > { %v7358_v41 = vpop.permute.xlu1 %1454 }
  0xfb   : > { %v7350_v37 = vld [vmem:[#allocation2] sm:$0xff]  ;;  %v950_v38 = vpop.permute.xlu0 %949 }
  0xfc   : > { %1110 = vst.msk [vmem:[#allocation2] sm:$0xff] %vm416_vm4, %v7337_v28  ;;  %1703 = vrot.lane.b32.xlu1 %v1695_v36, %s6990_s30  ;;  %v831_v40 = vld [vmem:[#allocation2 + $0x10] sm:$0xff]  ;;  %v7365_v45 = vsel %vm390_vm3, %v950_v38, %v952_v23  ;;  %v6409_v13 = vpack.i.bf16 %v7430_v9, %v7350_v37  ;;  %v7487_v23 = vld [vmem:[%s8875_s0] sm:$0xff] }
  0xfd   : > { %958 = vst.msk [vmem:[#allocation3] sm:$0xff] %vm957_vm5, %v950_v38  ;;  %5962 = vmatmul.msk.f32.vlgmr.msra.gmra.mxu2 %vm440_vm6, %v7487_v23  ;;  %5963 = vmatmul.msk.f32.vlgmr.msra.gmra.mxu3 %vm440_vm6, %v7487_v23 }
  0xfe   : > { %1112 = vst.msk [vmem:[#allocation2 + $0x10] sm:$0xff] %vm386_vm0, %v7321_v14 }
  0xff   : > { %v1632_v51 = vpop.permute.xlu1 %1631 }
 0x100   : > { %v7390_v57 = vsel %vm390_vm3, %v1632_v51, %v1634_v24  ;;  %v7498_v24 = vsel %vm386_vm0, %v7358_v41, %v7326_v18 }
 0x103   : > { %v7360_v43 = vld [vmem:[#allocation2] sm:$0xff]  ;;  %v1773_v44 = vpop.permute.xlu0 %1772 }
 0x104   : > { %1283 = vst.msk [vmem:[#allocation2] sm:$0xff] %vm416_vm4, %v7348_v35  ;;  %6395 = vrot.lane.b32.xlu1 %v6394_v42, %s6991_s15  ;;  %v7368_v46 = vld [vmem:[#allocation3] sm:$0xff]  ;;  %v7371_v47 = vsel %vm386_vm0, %v1771_v30, %v1773_v44  ;;  %v6414_v21 = vpack.i.bf16 %v7456_v19, %v7360_v43 }
 0x105   : > { %v6369_v48 = vpack.i.bf16 %v7365_v45, %v7368_v46  ;;  %v1116_v50 = vld [vmem:[#allocation2 + $0x10] sm:$0xff]  ;;  %1639 = vst.msk [vmem:[#allocation3] sm:$0xff] %vm957_vm5, %v1632_v51 }
 0x106   : > { %1285 = vst.msk [vmem:[#allocation2 + $0x10] sm:$0xff] %vm386_vm0, %v7323_v15 }
 0x107   : > { %6370 = vrot.lane.b32.xlu2 %v6369_v48, %s6990_s30  ;;  %v7442_v16 = vpop.permute.xlu1 %2438 }
 0x10b   : > { %v1946_v52 = vpop.permute.xlu0 %1945  ;;  %v7379_v53 = vld [vmem:[#allocation2] sm:$0xff] }
 0x10c   : > { %1462 = vst.msk [vmem:[#allocation2] sm:$0xff] %vm416_vm4, %v7358_v41  ;;  %v7384_v54 = vsel %vm386_vm0, %v1944_v39, %v1946_v52  ;;  %v7392_v58 = vld [vmem:[#allocation3] sm:$0xff]  ;;  %v7541_v41 = vld [vmem:[%s8875_s0 + $0x10] sm:$0xff] }
 0x10d   : > { %v1336_v55 = vld [vmem:[#allocation2 + $0x10] sm:$0xff]  ;;  %v6384_v59 = vpack.i.bf16 %v7390_v57, %v7392_v58  ;;  %2307 = vst.msk [vmem:[#allocation3] sm:$0xff] %vm957_vm5, %v2300_v56 }
 0x10e   : > { %1464 = vst.msk [vmem:[#allocation2 + $0x10] sm:$0xff] %vm386_vm0, %v7326_v18 }
 0x10f   : > { %533 = vrot.lane.b32.xlu2 %v423_v26, %s6991_s15  ;;  %6385 = vrot.lane.b32.xlu0 %v6384_v59, %s6990_s30 }
 0x113   : > { %v7397_v60 = vld [vmem:[#allocation2] sm:$0xff]  ;;  %v2125_v61 = vpop.permute.xlu0 %2124 }
 0x114   : > { %1778 = vst.msk [vmem:[#allocation2] sm:$0xff] %vm416_vm4, %v1771_v30  ;;  %v7402_v62 = vsel %vm386_vm0, %v2123_v49, %v2125_v61  ;;  %v7425_v8 = vld [vmem:[#allocation3] sm:$0xff]  ;;  %v6439_v25 = vpack.i.bf16 %v7498_v24, %v7397_v60  ;;  %v7515_v30 = vld [vmem:[%s8875_s0 + $0x8] sm:$0xff] }
 0x115   : > { %v1515_v63 = vld [vmem:[#allocation2 + $0x10] sm:$0xff] }
 0x116   : > { %1780 = vst.msk [vmem:[#allocation2 + $0x10] sm:$0xff] %vm386_vm0, %v1773_v44 }
 0x117   : > { %6380 = vrot.lane.b32.xlu2 %v6374_v31, %s6991_s15  ;;  %659 = vrot.lane.b32.xlu0 %v649_v34, %s6989_s28 }
 0x11b   : > { %v7406_v0 = vld [vmem:[#allocation2] sm:$0xff]  ;;  %v2302_v1 = vpop.permute.xlu0 %2301 }
 0x11c   : > { %1951 = vst.msk [vmem:[#allocation2] sm:$0xff] %vm416_vm4, %v1944_v39  ;;  %v7422_v6 = vsel %vm390_vm3, %v2300_v56, %v2302_v1 }
 0x11d   : > { %2309 = vst.msk [vmem:[#allocation3 + $0x10] sm:$0xff] %vm390_vm3, %v2302_v1  ;;  %v1784_v2 = vld [vmem:[#allocation2 + $0x10] sm:$0xff]  ;;  %v6404_v10 = vpack.i.bf16 %v7422_v6, %v7425_v8 }
 0x11e   : > { %1953 = vst.msk [vmem:[#allocation2 + $0x10] sm:$0xff] %vm386_vm0, %v1946_v52  ;;  %v7555_v52 = vld [vmem:[%s8875_s0 + $0x28] sm:$0xff] }
 0x11f   : > { %716 = vrot.lane.b32.xlu2 %v649_v34, %s6991_s15  ;;  %841 = vrot.lane.b32.xlu0 %v831_v40, %s6989_s28 }
 0x123   : > { %v7413_v3 = vld [vmem:[#allocation2] sm:$0xff] }
 0x124   : > { %v2363_v4 = vld [vmem:[#allocation3 + $0x10] sm:$0xff]  ;;  %2130 = vst.msk [vmem:[#allocation2] sm:$0xff] %vm416_vm4, %v2123_v49  ;;  %v6454_v34 = vpack.i.bf16 %v7384_v54, %v7413_v3 }
 0x125   : > { %2371 = vrot.lane.b32.xlu1 %v2363_v4, %s6990_s30  ;;  %v7418_v5 = vld [vmem:[#allocation2 + $0x10] sm:$0xff] }
 0x126   : > { %2132 = vst.msk [vmem:[#allocation2 + $0x10] sm:$0xff] %vm386_vm0, %v2125_v61 }
 0x127   : > { %6390 = vrot.lane.b32.xlu2 %v6394_v42, %s6989_s28  ;;  %6405 = vrot.lane.b32.xlu0 %v6404_v10, %s6990_s30  ;;  %v7574_v10 = vld [vmem:[%s8875_s0 + $0x20] sm:$0xff] }
 0x12b   : > { %v7444_v17 = vld [vmem:[#allocation2] sm:$0xff] }
 0x12c   : > { %2446 = vst.msk [vmem:[#allocation2] sm:$0xff] %vm416_vm4, %v7442_v16  ;;  %v6464_v61 = vpack.i.bf16 %v7402_v62, %v7444_v17 }
 0x12d   : > { %6410 = vrot.lane.b32.xlu1 %v6409_v13, %s6991_s15  ;;  %v2183_v42 = vld [vmem:[#allocation2 + $0x10] sm:$0xff] }
 0x12f   : > { %898 = vrot.lane.b32.xlu2 %v831_v40, %s6991_s15  ;;  %2613 = vrot.lane.b32.xlu0 %v7311_v12, %s6986_s3 }
 0x135   : > { %1125 = vrot.lane.b32.xlu1 %v1116_v50, %s6989_s28 }
 0x137   : > { %6400 = vrot.lane.b32.xlu2 %v6409_v13, %s6989_s28  ;;  %1222 = vrot.lane.b32.xlu0 %v1116_v50, %s6991_s15 }
 0x13d   : > { %1345 = vrot.lane.b32.xlu1 %v1336_v55, %s6989_s28 }
 0x13f   : > { %2440 = vrot.lane.b32.xlu2 %v7284_v7, %s6986_s3  ;;  %6415 = vrot.lane.b32.xlu0 %v6414_v21, %s6989_s28  ;;  %v7474_v7 = vsel %vm386_vm0, %v7348_v35, %v7323_v15  ;;  %v6444_v15 = vpack.i.bf16 %v7371_v47, %v7406_v0  ;;  %v7529_v35 = vld [vmem:[%s8875_s0 + $0x18] sm:$0xff] }
 0x140   : > { %v6424_v14 = vpack.i.bf16 %v7474_v7, %v7379_v53  ;;  %5968 = vmatmul.msk.f32.vlgmr.msrb.gmra.mxu2 %vm440_vm6, %v7529_v35  ;;  %5969 = vmatmul.msk.f32.vlgmr.msrb.gmra.mxu3 %vm440_vm6, %v7529_v35 }
 0x145   : > { %2792 = vrot.lane.b32.xlu1 %v7459_v20, %s6986_s3 }
 0x147   : > { %2611 = vrot.lane.b32.xlu2 %v7303_v11, %s6986_s3  ;;  %1401 = vrot.lane.b32.xlu0 %v1336_v55, %s6991_s15 }
 0x14d   : > { %1524 = vrot.lane.b32.xlu1 %v1515_v63, %s6989_s28 }
 0x14f   : > { %6420 = vrot.lane.b32.xlu2 %v6414_v21, %s6991_s15  ;;  %6425 = vrot.lane.b32.xlu0 %v6424_v14, %s6989_s28 }
 0x155   : > { %1890 = vrot.lane.b32.xlu1 %v1784_v2, %s6991_s15 }
 0x157   : > { %6430 = vrot.lane.b32.xlu2 %v6424_v14, %s6991_s15  ;;  %2790 = vrot.lane.b32.xlu0 %v7482_v22, %s6986_s3 }
 0x15d   : > { %6445 = vrot.lane.b32.xlu1 %v6444_v15, %s6989_s28 }
 0x15e   : > { %v434_v26 = vpop.permute.xlu1 %433 }
 0x15f   : > { %6440 = vrot.lane.b32.xlu2 %v6439_v25, %s6991_s15  ;;  %1580 = vrot.lane.b32.xlu0 %v1515_v63, %s6991_s15  ;;  %v7567_v63 = vpop.permute.xlu0 %1029 }
 0x161   : > { %v7506_v27 = vpop.permute.xlu2 %6370 }
 0x165   : > { %2069 = vrot.lane.b32.xlu1 %v7418_v5, %s6991_s15 }
 0x166   : > { %v6376_v18 = vpop.permute.xlu1 %6375 }
 0x167   : > { %v6378_v28 = vunpack.i.h.bf16 %v6376_v18  ;;  %v6377_v29 = vunpack.i.l.bf16 %v6376_v18  ;;  %1793 = vrot.lane.b32.xlu2 %v1784_v2, %s6989_s28  ;;  %6435 = vrot.lane.b32.xlu0 %v6439_v25, %s6989_s28 }
 0x169   : > { %v534_v31 = vpop.permute.xlu2 %533  ;;  %v436_v32 = vsel %vm435_vm7, %v6377_v29, %v6378_v28  ;;  %v437_v33 = vsel %vm435_vm7, %v6378_v28, %v434_v26 }
 0x16a   : > { %459 = vmatpush.msra.mxu0 %v436_v32  ;;  %479 = vmatpush.msra.mxu1 %v437_v33  ;;  %v7608_v32 = vld [vmem:[%s8875_s0 + $0x38] sm:$0xff] }
 0x16b   : > { %5960 = vmatmul.msk.f32.vlgmr.msra.gmra.mxu0 %vm440_vm6, %v7515_v30  ;;  %5961 = vmatmul.msk.f32.vlgmr.msra.gmra.mxu1 %vm440_vm6, %v7515_v30 }
 0x16d   : > { %6455 = vrot.lane.b32.xlu1 %v6454_v34, %s6989_s28 }
 0x16e   : > { %v1704_v36 = vpop.permute.xlu1 %1703 }
 0x16f   : > { %2013 = vrot.lane.b32.xlu2 %v7418_v5, %s6989_s28  ;;  %6450 = vrot.lane.b32.xlu0 %v6444_v15, %s6991_s15 }
 0x171   : > { %v6381_v38 = vpop.permute.xlu2 %6380 }
 0x172   : > { %v6383_v39 = vunpack.i.h.bf16 %v6381_v38  ;;  %v6382_v40 = vunpack.i.l.bf16 %v6381_v38 }
 0x174   : > { %v536_v44 = vsel %vm535_vm8, %v6382_v40, %v6383_v39  ;;  %v537_v48 = vsel %vm535_vm8, %v6383_v39, %v534_v31 }
 0x175   : > { %2248 = vrot.lane.b32.xlu1 %v2183_v42, %s6991_s15  ;;  %558 = vmatpush.msrb.mxu0 %v536_v44  ;;  %v6372_v44 = vunpack.i.l.bf16 %v7506_v27 }
 0x176   : > { %578 = vmatpush.msrb.mxu1 %v537_v48  ;;  %v6396_v49 = vpop.permute.xlu1 %6395  ;;  %5965 = vmatmul.msk.f32.vlgmr.msrb.gmra.mxu0 %vm440_vm6, %v7541_v41 }
 0x177   : > { %v6398_v50 = vunpack.i.h.bf16 %v6396_v49  ;;  %v6397_v51 = vunpack.i.l.bf16 %v6396_v49  ;;  %2192 = vrot.lane.b32.xlu2 %v2183_v42, %s6989_s28  ;;  %5966 = vmatmul.msk.f32.vlgmr.msrb.gmra.mxu1 %vm440_vm6, %v7541_v41  ;;  %v6373_v42 = vunpack.i.h.bf16 %v7506_v27 }
 0x178   : > { %6460 = vrot.lane.b32.xlu0 %v6454_v34, %s6991_s15 }
 0x179   : > { %v717_v55 = vpop.permute.xlu2 %716  ;;  %v718_v56 = vsel %vm535_vm8, %v6397_v51, %v6398_v50  ;;  %v7647_v51 = vld [vmem:[%s8875_s0 + $0x40] sm:$0xff] }
 0x17a   : > { %v719_v59 = vsel %vm535_vm8, %v6398_v50, %v717_v55  ;;  %740 = vmatpush.msra.mxu2 %v718_v56 }
 0x17b   : > { %760 = vmatpush.msra.mxu3 %v719_v59  ;;  %5974 = vmatmul.msk.f32.vlgmr.msra.gmra.mxu2 %vm440_vm6, %v7555_v52  ;;  %v1033_v59 = vsel %vm1031_vm9, %v6373_v42, %v7567_v63 }
 0x17c   : > { %5975 = vmatmul.msk.f32.vlgmr.msra.gmra.mxu3 %vm440_vm6, %v7555_v52 }
 0x17d   : > { %6465 = vrot.lane.b32.xlu1 %v6464_v61, %s6989_s28 }
 0x180   : > { %6470 = vrot.lane.b32.xlu0 %v6464_v61, %s6991_s15  ;;  %v1032_v61 = vsel %vm1031_vm9, %v6372_v44, %v6373_v42 }
 0x181   : > { %v6391_v1 = vpop.permute.xlu2 %6390  ;;  %v7579_v13 = vpop.permute.xlu0 %6385 }
 0x182   : > { %v6393_v2 = vunpack.i.h.bf16 %v6391_v1  ;;  %v6392_v4 = vunpack.i.l.bf16 %v6391_v1  ;;  %v6388_v21 = vunpack.i.h.bf16 %v7579_v13 }
 0x184   : > { %v661_v5 = vsel %vm435_vm7, %v6392_v4, %v6393_v2  ;;  %v7587_v15 = vsel %vm1031_vm9, %v6388_v21, %v1704_v36 }
 0x185   : > { %683 = vmatpush.msra.mxu0 %v661_v5  ;;  %2969 = vrot.lane.b32.xlu1 %v7311_v12, %s6987_s26 }
 0x186   : > { %5971 = vmatmul.msk.f32.vlgmr.msra.gmra.mxu0 %vm440_vm6, %v7574_v10 }
 0x187   : > { %802 = vmatpush.msrb.mxu0 %v7350_v37  ;;  %v7594_v37 = vld [vmem:[%s8875_s0 + $0x30] sm:$0xff] }
 0x188   : > { %2967 = vrot.lane.b32.xlu0 %v7303_v11, %s6987_s26 }
 0x189   : > { %v899_v14 = vpop.permute.xlu2 %898  ;;  %v660_v25 = vpop.permute.xlu0 %659 }
 0x18a   : > { %v662_v26 = vsel %vm435_vm7, %v6393_v2, %v660_v25  ;;  %v7667_v2 = vld [vmem:[%s7254_s12 + $0x58] sm:$0xff] }
 0x18b   : > { %703 = vmatpush.msra.mxu1 %v662_v26 }
 0x18c   : > { %5972 = vmatmul.msk.f32.vlgmr.msra.gmra.mxu1 %vm440_vm6, %v7574_v10 }
 0x18d   : > { %822 = vmatpush.msrb.mxu1 %v7430_v9 }
 0x18e   : > { %5977 = vmatmul.msk.f32.vlgmr.msrb.gmra.mxu0 %vm440_vm6, %v7594_v37 }
 0x190   : > { %3106 = vrot.lane.b32.xlu0 %v7303_v11, %s6986_s3 }
 0x191   : > { %v6401_v18 = vpop.permute.xlu2 %6400  ;;  %v842_v33 = vpop.permute.xlu0 %841 }
 0x192   : > { %v6403_v28 = vunpack.i.h.bf16 %v6401_v18  ;;  %v6402_v29 = vunpack.i.l.bf16 %v6401_v18 }
 0x194   : > { %v843_v31 = vsel %vm435_vm7, %v6402_v29, %v6403_v28  ;;  %v844_v34 = vsel %vm435_vm7, %v6403_v28, %v842_v33  ;;  %5978 = vmatmul.msk.f32.vlgmr.msrb.gmra.mxu1 %vm440_vm6, %v7594_v37 }
 0x195   : > { %865 = vmatpush.msrb.mxu2 %v843_v31  ;;  %885 = vmatpush.msrb.mxu3 %v844_v34 }
 0x196   : > { %5980 = vmatmul.msk.f32.vlgmr.msrb.gmra.mxu2 %vm440_vm6, %v7608_v32  ;;  %5981 = vmatmul.msk.f32.vlgmr.msrb.gmra.mxu3 %vm440_vm6, %v7608_v32 }
 0x197   : > { %983 = vmatpush.msra.mxu2 %v7368_v46  ;;  %v2372_v9 = vpop.permute.xlu1 %2371  ;;  %1003 = vmatpush.msra.mxu3 %v7365_v45  ;;  %v7622_v46 = vld [vmem:[#allocation2] sm:$0xff]  ;;  %v7633_v45 = vld [vmem:[%s8875_s0 + $0x48] sm:$0xff] }
 0x198   : > { %3279 = vrot.lane.b32.xlu0 %v7482_v22, %s6986_s3 }
 0x199   : > { %v2441_v36 = vpop.permute.xlu2 %2440 }
 0x19a   : > { %v7617_v11 = vsel %vm386_vm0, %v7442_v16, %v2441_v36  ;;  %2448 = vst.msk [vmem:[#allocation2 + $0x10] sm:$0xff] %vm386_vm0, %v2441_v36  ;;  %v7637_v16 = vpop.permute.xlu0 %6405 }
 0x19b   : > { %v6479_v38 = vpack.i.bf16 %v7617_v11, %v7622_v46  ;;  %v6408_v40 = vunpack.i.h.bf16 %v7637_v16 }
 0x19d   : > { %6480 = vrot.lane.b32.xlu2 %v6479_v38, %s6991_s15  ;;  %6475 = vrot.lane.b32.xlu1 %v6479_v38, %s6989_s28  ;;  %v7652_v55 = vsel %vm1031_vm9, %v6408_v40, %v2372_v9 }
 0x19e   : > { %5986 = vmatmul.msk.f32.vlgmr.msra.gmra.mxu2 %vm440_vm6, %v7633_v45  ;;  %5987 = vmatmul.msk.f32.vlgmr.msra.gmra.mxu3 %vm440_vm6, %v7633_v45 }
 0x19f   : > { %v6411_v39 = vpop.permute.xlu1 %6410 }
 0x1a0   : > { %v6413_v48 = vunpack.i.h.bf16 %v6411_v39  ;;  %v6412_v49 = vunpack.i.l.bf16 %v6411_v39  ;;  %3460 = vrot.lane.b32.xlu0 %v7667_v2, %s6986_s3 }
 0x1a1   : > { %v2612_v50 = vpop.permute.xlu2 %2611  ;;  %v2452_v1 = vld [vmem:[#allocation2 + $0x10] sm:$0xff] }
 0x1a2   : > { %2619 = vst.msk [vmem:[#allocation2] sm:$0xff] %vm416_vm4, %v2612_v50  ;;  %v900_v56 = vsel %vm535_vm8, %v6412_v49, %v6413_v48  ;;  %v901_v27 = vsel %vm535_vm8, %v6413_v48, %v899_v14  ;;  %v2614_v4 = vpop.permute.xlu0 %2613  ;;  %v7679_v14 = vld [vmem:[%s8875_s0 + $0x50] sm:$0xff] }
 0x1a3   : > { %922 = vmatpush.msra.mxu0 %v900_v56  ;;  %942 = vmatpush.msra.mxu1 %v901_v27  ;;  %2621 = vst.msk [vmem:[#allocation2 + $0x10] sm:$0xff] %vm386_vm0, %v2614_v4  ;;  %v7694_v31 = vsel %vm386_vm0, %v2612_v50, %v2614_v4 }
 0x1a4   : > { %5983 = vmatmul.msk.f32.vlgmr.msra.gmra.mxu0 %vm440_vm6, %v7647_v51  ;;  %5984 = vmatmul.msk.f32.vlgmr.msra.gmra.mxu1 %vm440_vm6, %v7647_v51 }
 0x1a5   : > { %1054 = vmatpush.msrb.mxu0 %v1032_v61  ;;  %1074 = vmatpush.msrb.mxu1 %v1033_v59  ;;  %v7724_v59 = vld [vmem:[%s7254_s12 + $0x50] sm:$0xff] }
 0x1a6   : > { %3108 = vrot.lane.b32.xlu1 %v7311_v12, %s6986_s3 }
 0x1a7   : > { %1192 = vmatpush.msra.mxu0 %v7360_v43  ;;  %1212 = vmatpush.msra.mxu1 %v7456_v19  ;;  %v1126_v5 = vpop.permute.xlu1 %1125 }
 0x1a9   : > { %v6421_v63 = vpop.permute.xlu2 %6420  ;;  %v7681_v25 = vld [vmem:[#allocation2] sm:$0xff] }
 0x1aa   : > { %v6484_v43 = vpack.i.bf16 %v7681_v25, %v2452_v1  ;;  %v1223_v12 = vpop.permute.xlu0 %1222  ;;  %v2672_v29 = vld [vmem:[#allocation2 + $0x10] sm:$0xff]  ;;  %v6423_v9 = vunpack.i.h.bf16 %v6421_v63  ;;  %v6422_v34 = vunpack.i.l.bf16 %v6421_v63 }
 0x1ac   : > { %5989 = vmatmul.msk.f32.vlgmr.msrb.gmra.mxu0 %vm440_vm6, %v7679_v14  ;;  %5990 = vmatmul.msk.f32.vlgmr.msrb.gmra.mxu1 %vm440_vm6, %v7679_v14  ;;  %v1225_v48 = vsel %vm535_vm8, %v6423_v9, %v1223_v12  ;;  %v1224_v49 = vsel %vm535_vm8, %v6422_v34, %v6423_v9 }
 0x1ad   : > { %1307 = vmatpush.msrb.mxu0 %v7379_v53  ;;  %1327 = vmatpush.msrb.mxu1 %v7474_v7  ;;  %v6499_v7 = vpack.i.bf16 %v2672_v29, %v7694_v31 }
 0x1ae   : > { %6485 = vrot.lane.b32.xlu2 %v6484_v43, %s6989_s28  ;;  %3281 = vrot.lane.b32.xlu1 %v7459_v20, %s6986_s3 }
 0x1af   : > { %v1346_v19 = vpop.permute.xlu1 %1345 }
 0x1b1   : > { %v6431_v26 = vpop.permute.xlu2 %6430 }
 0x1b2   : > { %v6433_v18 = vunpack.i.h.bf16 %v6431_v26  ;;  %v6432_v28 = vunpack.i.l.bf16 %v6431_v26  ;;  %v6416_v33 = vpop.permute.xlu0 %6415 }
 0x1b3   : > { %v6418_v38 = vunpack.i.h.bf16 %v6416_v33  ;;  %v6417_v39 = vunpack.i.l.bf16 %v6416_v33 }
 0x1b4   : > { %5994 = vmatmul.msk.f32.vlgmr.msra.gmra.mxu0 %vm440_vm6, %v7487_v23  ;;  %v1403_v53 = vsel %vm535_vm8, %v6432_v28, %v6433_v18  ;;  %5995 = vmatmul.msk.f32.vlgmr.msra.gmra.mxu1 %vm440_vm6, %v7487_v23 }
 0x1b5   : > { %1425 = vmatpush.msra.mxu0 %v1403_v53  ;;  %v1127_v42 = vsel %vm435_vm7, %v6417_v39, %v6418_v38  ;;  %v1128_v44 = vsel %vm435_vm7, %v6418_v38, %v1126_v5  ;;  %v6387_v53 = vunpack.i.l.bf16 %v7579_v13 }
 0x1b6   : > { %6490 = vrot.lane.b32.xlu2 %v6484_v43, %s6991_s15  ;;  %6500 = vrot.lane.b32.xlu1 %v6499_v7, %s6991_s15 }
 0x1b7   : > { %v2793_v36 = vpop.permute.xlu1 %2792  ;;  %1149 = vmatpush.msrb.mxu2 %v1127_v42  ;;  %1169 = vmatpush.msrb.mxu3 %v1128_v44 }
 0x1b8   : > { %2800 = vst.msk [vmem:[#allocation2 + $0x10] sm:$0xff] %vm386_vm0, %v2793_v36  ;;  %5992 = vmatmul.msk.f32.vlgmr.msrb.gmra.mxu2 %vm440_vm6, %v7515_v30  ;;  %5993 = vmatmul.msk.f32.vlgmr.msrb.gmra.mxu3 %vm440_vm6, %v7515_v30 }
 0x1b9   : > { %1246 = vmatpush.msra.mxu2 %v1224_v49  ;;  %1266 = vmatpush.msra.mxu3 %v1225_v48  ;;  %v6441_v61 = vpop.permute.xlu2 %6440 }
 0x1ba   : > { %v1402_v50 = vpop.permute.xlu0 %1401  ;;  %v6443_v43 = vunpack.i.h.bf16 %v6441_v61  ;;  %v6442_v12 = vunpack.i.l.bf16 %v6441_v61 }
 0x1bb   : > { %v1404_v27 = vsel %vm535_vm8, %v6433_v18, %v1402_v50 }
 0x1bc   : > { %6000 = vmatmul.msk.f32.vlgmr.msrb.gmra.mxu0 %vm440_vm6, %v7529_v35  ;;  %6001 = vmatmul.msk.f32.vlgmr.msrb.gmra.mxu1 %vm440_vm6, %v7529_v35  ;;  %v1582_v28 = vsel %vm535_vm8, %v6442_v12, %v6443_v43 }
 0x1bd   : > { %1445 = vmatpush.msra.mxu1 %v1404_v27 }
 0x1be   : > { %6495 = vrot.lane.b32.xlu2 %v6499_v7, %s6989_s28 }
 0x1bf   : > { %v1525_v56 = vpop.permute.xlu1 %1524 }
 0x1c0   : > { %5997 = vmatmul.msk.f32.vlgmr.msra.gmra.mxu2 %vm440_vm6, %v7541_v41  ;;  %5998 = vmatmul.msk.f32.vlgmr.msra.gmra.mxu3 %vm440_vm6, %v7541_v41 }
 0x1c1   : > { %v1794_v13 = vpop.permute.xlu2 %1793 }
 0x1c2   : > { %v6426_v1 = vpop.permute.xlu0 %6425 }
 0x1c3   : > { %v6428_v5 = vunpack.i.h.bf16 %v6426_v1  ;;  %v6427_v63 = vunpack.i.l.bf16 %v6426_v1 }
 0x1c4   : > { %6006 = vmatmul.msk.f32.vlgmr.msra.gmra.mxu0 %vm440_vm6, %v7555_v52  ;;  %6007 = vmatmul.msk.f32.vlgmr.msra.gmra.mxu1 %vm440_vm6, %v7555_v52 }
 0x1c5   : > { %v1347_v26 = vsel %vm435_vm7, %v6427_v63, %v6428_v5  ;;  %v1348_v18 = vsel %vm435_vm7, %v6428_v5, %v1346_v19 }
 0x1c6   : > { %3458 = vrot.lane.b32.xlu2 %v7724_v59, %s6986_s3  ;;  %1369 = vmatpush.msrb.mxu2 %v1347_v26 }
 0x1c7   : > { %v7732_v4 = vpop.permute.xlu1 %1890  ;;  %1389 = vmatpush.msrb.mxu3 %v1348_v18 }
 0x1c8   : > { %6003 = vmatmul.msk.f32.vlgmr.msrb.gmra.mxu2 %vm440_vm6, %v7574_v10  ;;  %6004 = vmatmul.msk.f32.vlgmr.msrb.gmra.mxu3 %vm440_vm6, %v7574_v10 }
 0x1c9   : > { %1486 = vmatpush.msra.mxu2 %v7397_v60  ;;  %1506 = vmatpush.msra.mxu3 %v7498_v24  ;;  %v1705_v60 = vsel %vm1031_vm9, %v6387_v53, %v6388_v21  ;;  %v2014_v27 = vpop.permute.xlu2 %2013 }
 0x1ca   : > { %v2791_v29 = vpop.permute.xlu0 %2790 }
 0x1cb   : > { %1604 = vmatpush.msrb.mxu2 %v1582_v28  ;;  %2798 = vst.msk [vmem:[#allocation2] sm:$0xff] %vm416_vm4, %v2791_v29  ;;  %v7753_v24 = vsel %vm386_vm0, %v2791_v29, %v2793_v36 }
 0x1cf   : > { %v6446_v7 = vpop.permute.xlu1 %6445 }
 0x1d0   : > { %6009 = vmatmul.msk.f32.vlgmr.msra.gmra.mxu2 %vm440_vm6, %v7594_v37  ;;  %6010 = vmatmul.msk.f32.vlgmr.msra.gmra.mxu3 %vm440_vm6, %v7594_v37  ;;  %v6448_v48 = vunpack.i.h.bf16 %v6446_v7  ;;  %v6447_v49 = vunpack.i.l.bf16 %v6446_v7 }
 0x1d1   : > { %1727 = vmatpush.msra.mxu2 %v1705_v60  ;;  %v2193_v29 = vpop.permute.xlu2 %2192 }
 0x1d2   : > { %v1581_v19 = vpop.permute.xlu0 %1580  ;;  %v7755_v33 = vld [vmem:[#allocation2] sm:$0xff] }
 0x1d3   : > { %v1583_v34 = vsel %vm535_vm8, %v6443_v43, %v1581_v19  ;;  %v6514_v38 = vpack.i.bf16 %v7753_v24, %v7755_v33 }
 0x1d4   : > { %1624 = vmatpush.msrb.mxu3 %v1583_v34 }
 0x1d5   : > { %6515 = vrot.lane.b32.xlu1 %v6514_v38, %s6989_s28  ;;  %6505 = vrot.lane.b32.xlu2 %v6514_v38, %s6991_s15 }
 0x1d6   : > { %1747 = vmatpush.msra.mxu3 %v7587_v15 }
 0x1d7   : > { %v2070_v9 = vpop.permute.xlu1 %2069 }
 0x1d8   : > { %6015 = vmatmul.msk.f32.vlgmr.msrb.gmra.mxu2 %vm440_vm6, %v7647_v51  ;;  %6016 = vmatmul.msk.f32.vlgmr.msrb.gmra.mxu3 %vm440_vm6, %v7647_v51 }
 0x1d9   : > { %1860 = vmatpush.msrb.mxu2 %v7406_v0  ;;  %1880 = vmatpush.msrb.mxu3 %v7371_v47  ;;  %v1795_v47 = vsel %vm435_vm7, %v6447_v49, %v6448_v48  ;;  %v1796_v0 = vsel %vm435_vm7, %v6448_v48, %v1794_v13  ;;  %v2851_v48 = vld [vmem:[#allocation2 + $0x10] sm:$0xff] }
 0x1da   : > { %v6436_v21 = vpop.permute.xlu0 %6435 }
 0x1db   : > { %v6438_v39 = vunpack.i.h.bf16 %v6436_v21  ;;  %v6437_v42 = vunpack.i.l.bf16 %v6436_v21 }
 0x1dd   : > { %v1526_v15 = vsel %vm435_vm7, %v6437_v42, %v6438_v39  ;;  %v1527_v44 = vsel %vm435_vm7, %v6438_v39, %v1525_v56 }
 0x1de   : > { %1548 = vmatpush.msrb.mxu0 %v1526_v15  ;;  %1568 = vmatpush.msrb.mxu1 %v1527_v44 }
 0x1df   : > { %v6456_v36 = vpop.permute.xlu1 %6455  ;;  %6012 = vmatmul.msk.f32.vlgmr.msrb.gmra.mxu0 %vm440_vm6, %v7608_v32  ;;  %6013 = vmatmul.msk.f32.vlgmr.msrb.gmra.mxu1 %vm440_vm6, %v7608_v32 }
 0x1e0   : > { %1663 = vmatpush.msra.mxu0 %v7392_v58  ;;  %1683 = vmatpush.msra.mxu1 %v7390_v57 }
 0x1e1   : > { %6021 = vmatmul.msk.f32.vlgmr.msra.gmra.mxu2 %vm440_vm6, %v7679_v14  ;;  %6022 = vmatmul.msk.f32.vlgmr.msra.gmra.mxu3 %vm440_vm6, %v7679_v14 }
 0x1e2   : > { %1975 = vmatpush.msra.mxu2 %v7413_v3  ;;  %1995 = vmatpush.msra.mxu3 %v7384_v54  ;;  %v6451_v50 = vpop.permute.xlu0 %6450  ;;  %v6458_v54 = vunpack.i.h.bf16 %v6456_v36  ;;  %v6457_v3 = vunpack.i.l.bf16 %v6456_v36 }
 0x1e3   : > { %1817 = vmatpush.msrb.mxu0 %v1795_v47  ;;  %1837 = vmatpush.msrb.mxu1 %v1796_v0  ;;  %v6453_v56 = vunpack.i.h.bf16 %v6451_v50  ;;  %v6452_v57 = vunpack.i.l.bf16 %v6451_v50 }
 0x1e4   : > { %v2015_v53 = vsel %vm435_vm7, %v6457_v3, %v6458_v54  ;;  %v2016_v7 = vsel %vm435_vm7, %v6458_v54, %v2014_v27 }
 0x1e5   : > { %v1892_v61 = vsel %vm535_vm8, %v6452_v57, %v6453_v56  ;;  %v1893_v1 = vsel %vm535_vm8, %v6453_v56, %v7732_v4 }
 0x1e7   : > { %v2249_v58 = vpop.permute.xlu1 %2248  ;;  %6018 = vmatmul.msk.f32.vlgmr.msra.gmra.mxu0 %vm440_vm6, %v7633_v45  ;;  %6019 = vmatmul.msk.f32.vlgmr.msra.gmra.mxu1 %vm440_vm6, %v7633_v45 }
 0x1e8   : > { %1914 = vmatpush.msra.mxu0 %v1892_v61  ;;  %1934 = vmatpush.msra.mxu1 %v1893_v1 }
 0x1e9   : > { %6026 = vmatmul.msk.f32.vlgmr.msrb.gmra.mxu2 %vm440_vm6, %v7487_v23  ;;  %6027 = vmatmul.msk.f32.vlgmr.msrb.gmra.mxu3 %vm440_vm6, %v7487_v23 }
 0x1ea   : > { %v6461_v5 = vpop.permute.xlu0 %6460 }
 0x1eb   : > { %v6463_v43 = vunpack.i.h.bf16 %v6461_v5  ;;  %v6462_v4 = vunpack.i.l.bf16 %v6461_v5 }
 0x1ed   : > { %v2071_v18 = vsel %vm535_vm8, %v6462_v4, %v6463_v43  ;;  %v2072_v28 = vsel %vm535_vm8, %v6463_v43, %v2070_v9 }
 0x1ee   : > { %2093 = vmatpush.msrb.mxu2 %v2071_v18  ;;  %2113 = vmatpush.msrb.mxu3 %v2072_v28 }
 0x1ef   : > { %v6466_v63 = vpop.permute.xlu1 %6465  ;;  %6024 = vmatmul.msk.f32.vlgmr.msrb.gmra.mxu0 %vm440_vm6, %v7515_v30  ;;  %6025 = vmatmul.msk.f32.vlgmr.msrb.gmra.mxu1 %vm440_vm6, %v7515_v30 }
 0x1f0   : > { %v6468_v12 = vunpack.i.h.bf16 %v6466_v63  ;;  %v6467_v26 = vunpack.i.l.bf16 %v6466_v63  ;;  %2037 = vmatpush.msrb.mxu0 %v2015_v53  ;;  %2057 = vmatpush.msrb.mxu1 %v2016_v7 }
 0x1f1   : > { %6032 = vmatmul.msk.f32.vlgmr.msra.gmra.mxu2 %vm440_vm6, %v7529_v35  ;;  %6033 = vmatmul.msk.f32.vlgmr.msra.gmra.mxu3 %vm440_vm6, %v7529_v35 }
 0x1f2   : > { %v2194_v60 = vsel %vm435_vm7, %v6467_v26, %v6468_v12  ;;  %v2195_v19 = vsel %vm435_vm7, %v6468_v12, %v2193_v29  ;;  %v6471_v9 = vpop.permute.xlu0 %6470 }
 0x1f3   : > { %2216 = vmatpush.msra.mxu2 %v2194_v60  ;;  %2236 = vmatpush.msra.mxu3 %v2195_v19  ;;  %v6473_v13 = vunpack.i.h.bf16 %v6471_v9  ;;  %v6472_v21 = vunpack.i.l.bf16 %v6471_v9 }
 0x1f7   : > { %v7810_v34 = vpop.permute.xlu1 %2969  ;;  %6029 = vmatmul.msk.f32.vlgmr.msra.gmra.mxu0 %vm440_vm6, %v7541_v41  ;;  %6030 = vmatmul.msk.f32.vlgmr.msra.gmra.mxu1 %vm440_vm6, %v7541_v41  ;;  %v6481_v39 = vpop.permute.xlu2 %6480 }
 0x1f8   : > { %2977 = vst.msk [vmem:[#allocation3 + $0x10] sm:$0xff] %vm390_vm3, %v7810_v34  ;;  %2154 = vmatpush.msra.mxu0 %v7444_v17  ;;  %2174 = vmatpush.msra.mxu1 %v7402_v62  ;;  %v2250_v62 = vsel %vm535_vm8, %v6472_v21, %v6473_v13  ;;  %v6407_v17 = vunpack.i.l.bf16 %v7637_v16  ;;  %v6482_v56 = vunpack.i.l.bf16 %v6481_v39 }
 0x1f9   : > { %6038 = vmatmul.msk.f32.vlgmr.msrb.gmra.mxu2 %vm440_vm6, %v7555_v52  ;;  %6039 = vmatmul.msk.f32.vlgmr.msrb.gmra.mxu3 %vm440_vm6, %v7555_v52 }
 0x1fa   : > { %2331 = vmatpush.msrb.mxu2 %v7425_v8  ;;  %2351 = vmatpush.msrb.mxu3 %v7422_v6  ;;  %v2968_v38 = vpop.permute.xlu0 %2967  ;;  %v2251_v8 = vsel %vm535_vm8, %v6473_v13, %v2249_v58  ;;  %v2373_v15 = vsel %vm1031_vm9, %v6407_v17, %v6408_v40  ;;  %v6483_v58 = vunpack.i.h.bf16 %v6481_v39  ;;  %v7960_v13 = vld [vmem:[%s7254_s12 + $0x68] sm:$0xff] }
 0x1fb   : > { %2975 = vst.msk [vmem:[#allocation3] sm:$0xff] %vm957_vm5, %v2968_v38  ;;  %v7880_v54 = vsel %vm390_vm3, %v2968_v38, %v7810_v34 }
 0x1fc   : > { %v2560_v3 = vsel %vm535_vm8, %v6482_v56, %v6483_v58 }
 0x1ff   : > { %v3031_v36 = vld [vmem:[#allocation3 + $0x10] sm:$0xff]  ;;  %6035 = vmatmul.msk.f32.vlgmr.msrb.gmra.mxu0 %vm440_vm6, %v7574_v10  ;;  %6036 = vmatmul.msk.f32.vlgmr.msrb.gmra.mxu1 %vm440_vm6, %v7574_v10 }
 0x200   : > { %3039 = vrot.lane.b32.xlu1 %v3031_v36, %s6990_s30  ;;  %2272 = vmatpush.msrb.mxu0 %v2250_v62 }
 0x201   : > { %2292 = vmatpush.msrb.mxu1 %v2251_v8  ;;  %6044 = vmatmul.msk.f32.vlgmr.msra.gmra.mxu2 %vm440_vm6, %v7608_v32  ;;  %v7975_v8 = vld [vmem:[%s7254_s12 + $0x60] sm:$0xff] }
 0x202   : > { %6045 = vmatmul.msk.f32.vlgmr.msra.gmra.mxu3 %vm440_vm6, %v7608_v32  ;;  %v7838_v6 = vpop.permute.xlu0 %3106  ;;  %v7876_v1 = vld [vmem:[#allocation3] sm:$0xff] }
 0x203   : > { %3114 = vst.msk [vmem:[#allocation2] sm:$0xff] %vm416_vm4, %v7838_v6 }
 0x207   : > { %6041 = vmatmul.msk.f32.vlgmr.msra.gmra.mxu0 %vm440_vm6, %v7594_v37  ;;  %6042 = vmatmul.msk.f32.vlgmr.msra.gmra.mxu1 %vm440_vm6, %v7594_v37 }
 0x208   : > { %v6486_v42 = vpop.permute.xlu2 %6485  ;;  %3635 = vrot.lane.b32.xlu1 %v7482_v22, %s6987_s26  ;;  %2395 = vmatpush.msra.mxu0 %v2373_v15 }
 0x209   : > { %2415 = vmatpush.msra.mxu1 %v7652_v55  ;;  %6050 = vmatmul.msk.f32.vlgmr.msrb.gmra.mxu2 %vm440_vm6, %v7633_v45  ;;  %v6487_v44 = vunpack.i.l.bf16 %v6486_v42  ;;  %v6488_v5 = vunpack.i.h.bf16 %v6486_v42 }
 0x20a   : > { %6051 = vmatmul.msk.f32.vlgmr.msrb.gmra.mxu3 %vm440_vm6, %v7633_v45  ;;  %v7857_v49 = vld [vmem:[#allocation2] sm:$0xff]  ;;  %v3280_v47 = vpop.permute.xlu0 %3279 }
 0x20b   : > { %v6519_v0 = vpack.i.bf16 %v7857_v49, %v2851_v48  ;;  %3287 = vst.msk [vmem:[#allocation2] sm:$0xff] %vm416_vm4, %v3280_v47 }
 0x20d   : > { %6520 = vrot.lane.b32.xlu2 %v6519_v0, %s6989_s28  ;;  %6510 = vrot.lane.b32.xlu0 %v6519_v0, %s6991_s15 }
 0x20f   : > { %v6476_v50 = vpop.permute.xlu1 %6475  ;;  %6047 = vmatmul.msk.f32.vlgmr.msrb.gmra.mxu0 %vm440_vm6, %v7647_v51  ;;  %6048 = vmatmul.msk.f32.vlgmr.msrb.gmra.mxu1 %vm440_vm6, %v7647_v51 }
 0x210   : > { %v7861_v16 = vpop.permute.xlu2 %6490  ;;  %v6478_v40 = vunpack.i.h.bf16 %v6476_v50  ;;  %v6477_v55 = vunpack.i.l.bf16 %v6476_v50  ;;  %3947 = vrot.lane.b32.xlu1 %v7724_v59, %s6986_s3  ;;  %2528 = vmatpush.msrb.mxu0 %v7622_v46 }
 0x211   : > { %v6492_v57 = vunpack.i.l.bf16 %v7861_v16  ;;  %2548 = vmatpush.msrb.mxu1 %v7617_v11  ;;  %v6524_v11 = vpack.i.bf16 %v7880_v54, %v7876_v1  ;;  %v6493_v29 = vunpack.i.h.bf16 %v7861_v16 }
 0x212   : > { %v2463_v27 = vsel %vm435_vm7, %v6477_v55, %v6478_v40  ;;  %v2464_v61 = vsel %vm435_vm7, %v6478_v40, %v6487_v44 }
 0x213   : > { %2485 = vmatpush.msra.mxu2 %v2463_v27  ;;  %2505 = vmatpush.msra.mxu3 %v2464_v61  ;;  %v2561_v46 = vsel %vm535_vm8, %v6483_v58, %v6492_v57 }
 0x214   : > { %6056 = vmatmul.msk.f32.vlgmr.msra.gmra.mxu2 %vm440_vm6, %v7515_v30  ;;  %6057 = vmatmul.msk.f32.vlgmr.msra.gmra.mxu3 %vm440_vm6, %v7515_v30 }
 0x215   : > { %2582 = vmatpush.msrb.mxu2 %v2560_v3  ;;  %2602 = vmatpush.msrb.mxu3 %v2561_v46 }
 0x216   : > { %3774 = vrot.lane.b32.xlu2 %v7482_v22, %s6986_s3  ;;  %6525 = vrot.lane.b32.xlu0 %v6524_v11, %s6990_s30  ;;  %v7906_v22 = vld [vmem:[#allocation2] sm:$0xff] }
 0x217   : > { %6053 = vmatmul.msk.f32.vlgmr.msra.gmra.mxu0 %vm440_vm6, %v7679_v14  ;;  %6054 = vmatmul.msk.f32.vlgmr.msra.gmra.mxu1 %vm440_vm6, %v7679_v14 }
 0x218   : > { %v6496_v63 = vpop.permute.xlu2 %6495  ;;  %v3109_v12 = vpop.permute.xlu1 %3108  ;;  %2643 = vmatpush.msra.mxu0 %v7681_v25  ;;  %2663 = vmatpush.msra.mxu1 %v7694_v31 }
 0x219   : > { %v6498_v43 = vunpack.i.h.bf16 %v6496_v63  ;;  %v6497_v4 = vunpack.i.l.bf16 %v6496_v63  ;;  %3116 = vst.msk [vmem:[#allocation2 + $0x10] sm:$0xff] %vm386_vm0, %v3109_v12 }
 0x21b   : > { %v2683_v30 = vsel %vm435_vm7, %v6488_v5, %v6497_v4  ;;  %v2684_v26 = vsel %vm435_vm7, %v6497_v4, %v6498_v43 }
 0x21c   : > { %2705 = vmatpush.msra.mxu2 %v2683_v30  ;;  %2725 = vmatpush.msra.mxu3 %v2684_v26 }
 0x21d   : > { %6061 = vmatmul.msk.f32.vlgmr.msrb.gmra.mxu2 %vm440_vm6, %v7541_v41  ;;  %6062 = vmatmul.msk.f32.vlgmr.msrb.gmra.mxu3 %vm440_vm6, %v7541_v41 }
 0x21e   : > { %2822 = vmatpush.msrb.mxu2 %v7755_v33  ;;  %2842 = vmatpush.msrb.mxu3 %v7753_v24  ;;  %v3461_v33 = vpop.permute.xlu0 %3460 }
 0x21f   : > { %3637 = vrot.lane.b32.xlu2 %v7459_v20, %s6987_s26  ;;  %3776 = vrot.lane.b32.xlu0 %v7459_v20, %s6986_s3  ;;  %v7928_v20 = vsel %vm386_vm0, %v7838_v6, %v3109_v12 }
 0x220   : > { %v3459_v18 = vpop.permute.xlu2 %3458  ;;  %v3120_v25 = vld [vmem:[#allocation2 + $0x10] sm:$0xff]  ;;  %v3282_v31 = vpop.permute.xlu1 %3281  ;;  %6059 = vmatmul.msk.f32.vlgmr.msrb.gmra.mxu1 %vm440_vm6, %v7487_v23  ;;  %6058 = vmatmul.msk.f32.vlgmr.msrb.gmra.mxu0 %vm440_vm6, %v7487_v23 }
 0x221   : > { %3466 = vst.msk [vmem:[#allocation2] sm:$0xff] %vm416_vm4, %v3459_v18  ;;  %v7916_v28 = vsel %vm386_vm0, %v3280_v47, %v3282_v31  ;;  %v6529_v24 = vpack.i.bf16 %v3120_v25, %v7928_v20 }
 0x222   : > { %3289 = vst.msk [vmem:[#allocation2 + $0x10] sm:$0xff] %vm386_vm0, %v3282_v31  ;;  %v6539_v41 = vpack.i.bf16 %v7916_v28, %v7906_v22 }
 0x224   : > { %6540 = vrot.lane.b32.xlu1 %v6539_v41, %s6991_s15 }
 0x225   : > { %6067 = vmatmul.msk.f32.vlgmr.msra.gmra.mxu2 %vm440_vm6, %v7574_v10  ;;  %6068 = vmatmul.msk.f32.vlgmr.msra.gmra.mxu3 %vm440_vm6, %v7574_v10 }
 0x227   : > { %3949 = vrot.lane.b32.xlu2 %v7667_v2, %s6986_s3  ;;  %6530 = vrot.lane.b32.xlu0 %v6529_v24, %s6989_s28 }
 0x228   : > { %v7936_v53 = vld [vmem:[#allocation2] sm:$0xff]  ;;  %v6501_v7 = vpop.permute.xlu1 %6500  ;;  %6064 = vmatmul.msk.f32.vlgmr.msra.gmra.mxu0 %vm440_vm6, %v7529_v35  ;;  %6065 = vmatmul.msk.f32.vlgmr.msra.gmra.mxu1 %vm440_vm6, %v7529_v35  ;;  %v7957_v35 = vsel %vm386_vm0, %v3459_v18, %v3461_v33 }
 0x229   : > { %v3340_v23 = vld [vmem:[#allocation2 + $0x10] sm:$0xff]  ;;  %v6503_v60 = vunpack.i.h.bf16 %v6501_v7  ;;  %v6502_v19 = vunpack.i.l.bf16 %v6501_v7  ;;  %v8073_v7 = vld [vmem:[%s8875_s0 + $0x8] sm:$0xff] }
 0x22a   : > { %3468 = vst.msk [vmem:[#allocation2 + $0x10] sm:$0xff] %vm386_vm0, %v3461_v33  ;;  %v6544_v10 = vpack.i.bf16 %v7936_v53, %v3340_v23 }
 0x22b   : > { %v2740_v9 = vsel %vm535_vm8, %v6502_v19, %v6503_v60  ;;  %v2739_v34 = vsel %vm535_vm8, %v6493_v29, %v6502_v19  ;;  %v504_v60 = vpop.f32.mrf.mxu2  ;;  %v461_v19 = vpop.f32.mrf.mxu0 }
 0x22c   : > { %2781 = vmatpush.msrb.mxu1 %v2740_v9  ;;  %2761 = vmatpush.msrb.mxu0 %v2739_v34  ;;  %v8081_v34 = vld [vmem:[%s8875_s0 + $0x18] sm:$0xff] }
 0x22d   : > { %6555 = vrot.lane.b32.xlu1 %v6544_v10, %s6989_s28  ;;  %6073 = vmatmul.msk.f32.vlgmr.msrb.gmra.mxu2 %vm440_vm6, %v7594_v37 }
 0x22e   : > { %6074 = vmatmul.msk.f32.vlgmr.msrb.gmra.mxu3 %vm440_vm6, %v7594_v37 }
 0x22f   : > { %6535 = vrot.lane.b32.xlu0 %v6529_v24, %s6991_s15  ;;  %6545 = vrot.lane.b32.xlu2 %v6544_v10, %s6991_s15  ;;  %v6506_v21 = vpop.permute.xlu2 %6505 }
 0x230   : > { %6070 = vmatmul.msk.f32.vlgmr.msrb.gmra.mxu0 %vm440_vm6, %v7555_v52  ;;  %6071 = vmatmul.msk.f32.vlgmr.msrb.gmra.mxu1 %vm440_vm6, %v7555_v52  ;;  %v6508_v36 = vunpack.i.h.bf16 %v6506_v21  ;;  %v6507_v37 = vunpack.i.l.bf16 %v6506_v21 }
 0x231   : > { %v3519_v38 = vld [vmem:[#allocation2 + $0x10] sm:$0xff] }
 0x232   : > { %v6559_v39 = vpack.i.bf16 %v3519_v38, %v7957_v35  ;;  %v2918_v62 = vsel %vm535_vm8, %v6507_v37, %v6508_v36  ;;  %v505_v38 = vadd.f32 %v504_v60, %v461_v19  ;;  %v8203_v60 = vld [vmem:[%s8875_s0 + $0x38] sm:$0xff] }
 0x233   : > { %2940 = vmatpush.msra.mxu2 %v2918_v62 }
 0x235   : > { %4128 = vrot.lane.b32.xlu1 %v7960_v13, %s6986_s3  ;;  %6079 = vmatmul.msk.f32.vlgmr.msra.gmra.mxu2 %vm440_vm6, %v7647_v51 }
 0x237   : > { %6550 = vrot.lane.b32.xlu0 %v6539_v41, %s6989_s28  ;;  %6560 = vrot.lane.b32.xlu2 %v6559_v39, %s6989_s28 }
 0x23d   : > { %6565 = vrot.lane.b32.xlu1 %v6559_v39, %s6991_s15 }
 0x23f   : > { %4303 = vrot.lane.b32.xlu2 %v7724_v59, %s6987_s26  ;;  %4126 = vrot.lane.b32.xlu0 %v7975_v8, %s6986_s3 }
 0x247   : > { %4305 = vrot.lane.b32.xlu0 %v7667_v2, %s6987_s26  ;;  %v6516_v52 = vpop.permute.xlu1 %6515 }
 0x248   : > { %v6518_v6 = vunpack.i.h.bf16 %v6516_v52  ;;  %v6517_v17 = vunpack.i.l.bf16 %v6516_v52 }
 0x24a   : > { %v2862_v42 = vsel %vm435_vm7, %v6517_v17, %v6518_v6 }
 0x24b   : > { %2884 = vmatpush.msra.mxu0 %v2862_v42 }
 0x24c   : > { %6076 = vmatmul.msk.f32.vlgmr.msra.gmra.mxu0 %vm440_vm6, %v7608_v32 }
 0x24d   : > { %2999 = vmatpush.msrb.mxu0 %v7876_v1 }
 0x254   : > { %6082 = vmatmul.msk.f32.vlgmr.msrb.gmra.mxu0 %vm440_vm6, %v7633_v45 }
 0x267   : > { %v7990_v15 = vpop.permute.xlu2 %6520 }
 0x268   : > { %v6522_v44 = vunpack.i.l.bf16 %v7990_v15  ;;  %v6523_v24 = vunpack.i.h.bf16 %v7990_v15 }
 0x26a   : > { %v2863_v48 = vsel %vm435_vm7, %v6518_v6, %v6522_v44 }
 0x26b   : > { %2904 = vmatpush.msra.mxu1 %v2863_v48 }
 0x26c   : > { %6077 = vmatmul.msk.f32.vlgmr.msra.gmra.mxu1 %vm440_vm6, %v7608_v32 }
 0x26d   : > { %3019 = vmatpush.msrb.mxu1 %v7880_v54 }
 0x270   : > { %v3775_v0 = vpop.permute.xlu2 %3774 }
 0x271   : > { %3782 = vst.msk [vmem:[#allocation2] sm:$0xff] %vm416_vm4, %v3775_v0 }
 0x272   : > { %v3040_v47 = vpop.permute.xlu1 %3039 }
 0x274   : > { %6083 = vmatmul.msk.f32.vlgmr.msrb.gmra.mxu1 %vm440_vm6, %v7633_v45 }
 0x278   : > { %v8005_v55 = vld [vmem:[#allocation2] sm:$0xff] }
 0x279   : > { %v3638_v16 = vpop.permute.xlu2 %3637 }
 0x27a   : > { %v3636_v50 = vpop.permute.xlu1 %3635  ;;  %3645 = vst.msk [vmem:[#allocation3 + $0x10] sm:$0xff] %vm390_vm3, %v3638_v16 }
 0x27b   : > { %3643 = vst.msk [vmem:[#allocation3] sm:$0xff] %vm957_vm5, %v3636_v50  ;;  %v8003_v40 = vsel %vm390_vm3, %v3636_v50, %v3638_v16  ;;  %v8106_v16 = vld [vmem:[%s8875_s0 + $0x10] sm:$0xff] }
 0x27f   : > { %v8011_v56 = vpop.permute.xlu0 %6510 }
 0x280   : > { %v6512_v27 = vunpack.i.l.bf16 %v8011_v56  ;;  %v6513_v62 = vunpack.i.h.bf16 %v8011_v56 }
 0x281   : > { %v8013_v57 = vpop.permute.xlu2 %3949  ;;  %v3699_v37 = vld [vmem:[#allocation3 + $0x10] sm:$0xff] }
 0x282   : > { %v8007_v58 = vld [vmem:[#allocation3] sm:$0xff]  ;;  %v8009_v32 = vpop.permute.xlu1 %3947  ;;  %v2919_v61 = vsel %vm535_vm8, %v6508_v36, %v6512_v27  ;;  %v524_v27 = vpop.f32.mrf.mxu3 }
 0x283   : > { %v6579_v45 = vpack.i.bf16 %v8003_v40, %v8007_v58  ;;  %3955 = vst.msk [vmem:[#allocation2] sm:$0xff] %vm416_vm4, %v8009_v32  ;;  %2960 = vmatpush.msra.mxu3 %v2919_v61  ;;  %v8099_v42 = vsel %vm386_vm0, %v8009_v32, %v8013_v57 }
 0x284   : > { %6080 = vmatmul.msk.f32.vlgmr.msra.gmra.mxu3 %vm440_vm6, %v7647_v51 }
 0x285   : > { %6580 = vrot.lane.b32.xlu1 %v6579_v45, %s6990_s30  ;;  %v560_v45 = vpop.f32.mrf.mxu0 }
 0x286   : > { %v8119_v61 = vadd.f32 %v560_v45, %v505_v38  ;;  %v8230_v45 = vld [vmem:[%s8875_s0 + $0x50] sm:$0xff] }
 0x288   : > { %v6526_v1 = vpop.permute.xlu0 %6525 }
 0x289   : > { %v8024_v54 = vpop.permute.xlu2 %6545  ;;  %v6528_v3 = vunpack.i.h.bf16 %v6526_v1  ;;  %v6527_v46 = vunpack.i.l.bf16 %v6526_v1 }
 0x28a   : > { %v6547_v43 = vunpack.i.l.bf16 %v8024_v54  ;;  %v8056_v26 = vld [vmem:[#allocation2] sm:$0xff] }
 0x28b   : > { %v3041_v5 = vsel %vm1031_vm9, %v6527_v46, %v6528_v3  ;;  %v3042_v11 = vsel %vm1031_vm9, %v6528_v3, %v3040_v47 }
 0x28c   : > { %3063 = vmatpush.msrb.mxu2 %v3041_v5  ;;  %3083 = vmatpush.msrb.mxu3 %v3042_v11 }
 0x28d   : > { %4444 = vrot.lane.b32.xlu1 %v7667_v2, %s6986_s3  ;;  %6085 = vmatmul.msk.f32.vlgmr.msrb.gmra.mxu2 %vm440_vm6, %v7679_v14 }
 0x28e   : > { %3196 = vmatpush.msra.mxu2 %v7857_v49  ;;  %3216 = vmatpush.msra.mxu3 %v7928_v20 }
 0x28f   : > { %6086 = vmatmul.msk.f32.vlgmr.msrb.gmra.mxu3 %vm440_vm6, %v7679_v14  ;;  %v8050_v14 = vld [vmem:[%s8875_s0] sm:$0xff] }
 0x290   : > { %3311 = vmatpush.msrb.mxu2 %v7906_v22  ;;  %3331 = vmatpush.msrb.mxu3 %v7916_v28 }
 0x291   : > { %v3777_v51 = vpop.permute.xlu0 %3776  ;;  %v6561_v2 = vpop.permute.xlu2 %6560 }
 0x292   : > { %v8039_v63 = vsel %vm386_vm0, %v3775_v0, %v3777_v51  ;;  %3784 = vst.msk [vmem:[#allocation2 + $0x10] sm:$0xff] %vm386_vm0, %v3777_v51  ;;  %v6563_v25 = vunpack.i.h.bf16 %v6561_v2  ;;  %v6562_v31 = vunpack.i.l.bf16 %v6561_v2  ;;  %v481_v0 = vpop.f32.mrf.mxu1 }
 0x293   : > { %v8044_v49 = vpack.i.bf16 %v8039_v63, %v8005_v55  ;;  %v525_v1 = vadd.f32 %v524_v27, %v481_v0 }
 0x294   : > { %v3531_v21 = vsel %vm435_vm7, %v6562_v31, %v6563_v25 }
 0x295   : > { %6570 = vrot.lane.b32.xlu2 %v8044_v49, %s6989_s28  ;;  %6090 = vmatmul.msk.f32.vlgmr.msra.gmra.mxu2 %vm440_vm6, %v8050_v14 }
 0x296   : > { %v6541_v4 = vpop.permute.xlu1 %6540 }
 0x297   : > { %v6543_v12 = vunpack.i.h.bf16 %v6541_v4  ;;  %v6542_v30 = vunpack.i.l.bf16 %v6541_v4  ;;  %6091 = vmatmul.msk.f32.vlgmr.msra.gmra.mxu3 %vm440_vm6, %v8050_v14  ;;  %v8138_v4 = vld [vmem:[%s7254_s12 + $0x70] sm:$0xff] }
 0x299   : > { %v3408_v22 = vsel %vm535_vm8, %v6543_v12, %v6547_v43  ;;  %v3407_v18 = vsel %vm535_vm8, %v6542_v30, %v6543_v12  ;;  %v6531_v28 = vpop.permute.xlu0 %6530  ;;  %v8062_v41 = vpop.permute.xlu2 %4303  ;;  %v3788_v20 = vld [vmem:[#allocation2 + $0x10] sm:$0xff]  ;;  %v8143_v12 = vld [vmem:[%s8875_s0 + $0x20] sm:$0xff] }
 0x29a   : > { %3449 = vmatpush.msra.mxu3 %v3408_v22  ;;  %3429 = vmatpush.msra.mxu2 %v3407_v18  ;;  %v6533_v33 = vunpack.i.h.bf16 %v6531_v28  ;;  %v6532_v29 = vunpack.i.l.bf16 %v6531_v28  ;;  %4311 = vst.msk [vmem:[#allocation3] sm:$0xff] %vm957_vm5, %v8062_v41  ;;  %v6574_v23 = vpack.i.bf16 %v8056_v26, %v3788_v20  ;;  %v580_v51 = vpop.f32.mrf.mxu1  ;;  %v8178_v20 = vld [vmem:[%s7254_s12 + $0x78] sm:$0xff] }
 0x29b   : > { %3957 = vst.msk [vmem:[#allocation2 + $0x10] sm:$0xff] %vm386_vm0, %v8013_v57  ;;  %v8116_v57 = vld [vmem:[%s8875_s0 + $0x28] sm:$0xff]  ;;  %v584_v2 = vadd.f32 %v580_v51, %v525_v1 }
 0x29c   : > { %6575 = vrot.lane.b32.xlu0 %v6574_v23, %s6989_s28  ;;  %v3131_v10 = vsel %vm435_vm7, %v6523_v24, %v6532_v29  ;;  %v3132_v9 = vsel %vm435_vm7, %v6532_v29, %v6533_v33  ;;  %v8190_v33 = vld [vmem:[%s8875_s0 + $0x40] sm:$0xff]  ;;  %v685_v29 = vpop.f32.mrf.mxu0 }
 0x29d   : > { %3153 = vmatpush.msra.mxu0 %v3131_v10  ;;  %3173 = vmatpush.msra.mxu1 %v3132_v9 }
 0x29e   : > { %6088 = vmatmul.msk.f32.vlgmr.msra.gmra.mxu0 %vm440_vm6, %v8073_v7  ;;  %6089 = vmatmul.msk.f32.vlgmr.msra.gmra.mxu1 %vm440_vm6, %v8073_v7 }
 0x29f   : > { %v6556_v36 = vpop.permute.xlu1 %6555  ;;  %6097 = vmatmul.msk.f32.vlgmr.msrb.gmra.mxu3 %vm440_vm6, %v8081_v34  ;;  %6096 = vmatmul.msk.f32.vlgmr.msrb.gmra.mxu2 %vm440_vm6, %v8081_v34 }
 0x2a0   : > { %v6558_v39 = vunpack.i.h.bf16 %v6556_v36  ;;  %3572 = vmatpush.msrb.mxu3 %v3531_v21  ;;  %v6557_v3 = vunpack.i.l.bf16 %v6556_v36  ;;  %v8215_v21 = vld [vmem:[%s8875_s0 + $0x48] sm:$0xff]  ;;  %v642_v36 = vpop.f32.mrf.mxu3 }
 0x2a1   : > { %v6536_v52 = vpop.permute.xlu0 %6535  ;;  %v8093_v6 = vld [vmem:[#allocation3] sm:$0xff] }
 0x2a2   : > { %v3530_v17 = vsel %vm435_vm7, %v6558_v39, %v6562_v31  ;;  %v6538_v15 = vunpack.i.h.bf16 %v6536_v52  ;;  %v6537_v44 = vunpack.i.l.bf16 %v6536_v52  ;;  %v4008_v48 = vld [vmem:[#allocation2 + $0x10] sm:$0xff]  ;;  %v6584_v47 = vpack.i.bf16 %v8093_v6, %v3699_v37  ;;  %v705_v19 = vpop.f32.mrf.mxu1 }
 0x2a3   : > { %3552 = vmatpush.msrb.mxu2 %v3530_v17  ;;  %v6599_v50 = vpack.i.bf16 %v4008_v48, %v8099_v42  ;;  %v646_v37 = vadd.f32 %v642_v36, %v584_v2 }
 0x2a4   : > { %4442 = vrot.lane.b32.xlu0 %v7724_v59, %s6986_s3  ;;  %6585 = vrot.lane.b32.xlu2 %v6584_v47, %s6990_s30  ;;  %v3228_v32 = vsel %vm535_vm8, %v6513_v62, %v6537_v44  ;;  %v3229_v56 = vsel %vm535_vm8, %v6537_v44, %v6538_v15  ;;  %v804_v27 = vpop.f32.mrf.mxu0 }
 0x2a5   : > { %6600 = vrot.lane.b32.xlu1 %v6599_v50, %s6989_s28  ;;  %3250 = vmatpush.msrb.mxu0 %v3228_v32  ;;  %v709_v15 = vadd.f32 %v705_v19, %v646_v37 }
 0x2a6   : > { %3270 = vmatpush.msrb.mxu1 %v3229_v56  ;;  %6093 = vmatmul.msk.f32.vlgmr.msrb.gmra.mxu0 %vm440_vm6, %v8106_v16 }
 0x2a7   : > { %v4129_v59 = vpop.permute.xlu1 %4128  ;;  %6103 = vmatmul.msk.f32.vlgmr.msra.gmra.mxu3 %vm440_vm6, %v8116_v57  ;;  %6094 = vmatmul.msk.f32.vlgmr.msrb.gmra.mxu1 %vm440_vm6, %v8106_v16 }
 0x2a8   : > { %4136 = vst.msk [vmem:[#allocation2 + $0x10] sm:$0xff] %vm386_vm0, %v4129_v59  ;;  %3687 = vmatpush.msra.mxu3 %v8003_v40  ;;  %6102 = vmatmul.msk.f32.vlgmr.msra.gmra.mxu2 %vm440_vm6, %v8116_v57  ;;  %v762_v44 = vpop.f32.mrf.mxu3 }
 0x2a9   : > { %v6551_v46 = vpop.permute.xlu0 %6550  ;;  %3667 = vmatpush.msra.mxu2 %v8007_v58  ;;  %v6548_v58 = vunpack.i.h.bf16 %v8024_v54  ;;  %v766_v47 = vadd.f32 %v762_v44, %v709_v15 }
 0x2aa   : > { %v6553_v5 = vunpack.i.h.bf16 %v6551_v46  ;;  %v6552_v11 = vunpack.i.l.bf16 %v6551_v46 }
 0x2ac   : > { %6595 = vrot.lane.b32.xlu0 %v6574_v23, %s6991_s15  ;;  %6590 = vrot.lane.b32.xlu2 %v8044_v49, %s6991_s15  ;;  %v3351_v43 = vsel %vm435_vm7, %v6552_v11, %v6553_v5  ;;  %v3352_v40 = vsel %vm435_vm7, %v6553_v5, %v6557_v3  ;;  %v622_v23 = vpop.f32.mrf.mxu2 }
 0x2ad   : > { %3373 = vmatpush.msra.mxu0 %v3351_v43  ;;  %3393 = vmatpush.msra.mxu1 %v3352_v40  ;;  %v645_v10 = vadd.f32 %v622_v23, %v8119_v61  ;;  %v824_v61 = vpop.f32.mrf.mxu1 }
 0x2ae   : > { %4794 = vrot.lane.b32.xlu1 %v8138_v4, %s6986_s3  ;;  %6099 = vmatmul.msk.f32.vlgmr.msra.gmra.mxu0 %vm440_vm6, %v8143_v12  ;;  %v828_v1 = vadd.f32 %v824_v61, %v766_v47 }
 0x2af   : > { %3490 = vmatpush.msrb.mxu0 %v7936_v53  ;;  %3510 = vmatpush.msrb.mxu1 %v7957_v35  ;;  %v6566_v49 = vpop.permute.xlu1 %6565  ;;  %v8164_v35 = vld [vmem:[%s8875_s0 + $0x30] sm:$0xff]  ;;  %v708_v9 = vadd.f32 %v685_v29, %v645_v10  ;;  %v8276_v10 = vld [vmem:[%s8876_s13 + $0x1] ss:$2 sm:$0x3] }
 0x2b0   : > { %v6568_v30 = vunpack.i.h.bf16 %v6566_v49  ;;  %v6567_v22 = vunpack.i.l.bf16 %v6566_v49  ;;  %6100 = vmatmul.msk.f32.vlgmr.msra.gmra.mxu1 %vm440_vm6, %v8143_v12  ;;  %6108 = vmatmul.msk.f32.vlgmr.msrb.gmra.mxu2 %vm440_vm6, %v8203_v60  ;;  %v887_v3 = vpop.f32.mrf.mxu3  ;;  %v8281_v36 = vperm.slane %v8276_v10, 0 }
 0x2b1   : > { %v4127_v54 = vpop.permute.xlu0 %4126  ;;  %6109 = vmatmul.msk.f32.vlgmr.msrb.gmra.mxu3 %vm440_vm6, %v8203_v60  ;;  %v8240_v5 = vadd.f32 %v887_v3, %v828_v1 }
 0x2b2   : > { %v3586_v18 = vsel %vm535_vm8, %v6548_v58, %v6567_v22  ;;  %v3587_v53 = vsel %vm535_vm8, %v6567_v22, %v6568_v30  ;;  %4134 = vst.msk [vmem:[#allocation2] sm:$0xff] %vm416_vm4, %v4127_v54  ;;  %v8169_v25 = vsel %vm386_vm0, %v4127_v54, %v4129_v59  ;;  %v8235_v59 = vld [vmem:[#allocation2 + $0x10] sm:$0xff]  ;;  %v8256_v30 = vld [vmem:[%s8876_s13] ss:$2 sm:$0x3]  ;;  %v924_v54 = vpop.f32.mrf.mxu0 }
 0x2b3   : > { %3608 = vmatpush.msra.mxu0 %v3586_v18  ;;  %3628 = vmatpush.msra.mxu1 %v3587_v53 }
 0x2b4   : > { %4617 = vrot.lane.b32.xlu0 %v7960_v13, %s6986_s3  ;;  %4615 = vrot.lane.b32.xlu2 %v7975_v8, %s6986_s3  ;;  %v742_v38 = vpop.f32.mrf.mxu2 }
 0x2b5   : > { %v8267_v19 = vpop.f32.mrf.mxu1 }
 0x2b6   : > { %6105 = vmatmul.msk.f32.vlgmr.msrb.gmra.mxu0 %vm440_vm6, %v8164_v35 }
 0x2b8   : > { %6106 = vmatmul.msk.f32.vlgmr.msrb.gmra.mxu1 %vm440_vm6, %v8164_v35  ;;  %6114 = vmatmul.msk.f32.vlgmr.msra.gmra.mxu2 %vm440_vm6, %v8215_v21 }
 0x2b9   : > { %v8173_v31 = vpop.permute.xlu0 %4305  ;;  %v8175_v28 = vld [vmem:[#allocation2] sm:$0xff]  ;;  %6115 = vmatmul.msk.f32.vlgmr.msra.gmra.mxu3 %vm440_vm6, %v8215_v21 }
 0x2ba   : > { %4313 = vst.msk [vmem:[#allocation3 + $0x10] sm:$0xff] %vm390_vm3, %v8173_v31  ;;  %v6619_v24 = vpack.i.bf16 %v8169_v25, %v8175_v28 }
 0x2bc   : > { %6605 = vrot.lane.b32.xlu0 %v6599_v50, %s6991_s15  ;;  %4796 = vrot.lane.b32.xlu2 %v8178_v20, %s6986_s3  ;;  %v867_v48 = vpop.f32.mrf.mxu2 }
 0x2bd   : > { %6610 = vrot.lane.b32.xlu1 %v6619_v24, %s6991_s15 }
 0x2be   : > { %6111 = vmatmul.msk.f32.vlgmr.msra.gmra.mxu0 %vm440_vm6, %v8190_v33 }
 0x2c0   : > { %6112 = vmatmul.msk.f32.vlgmr.msra.gmra.mxu1 %vm440_vm6, %v8190_v33 }
 0x2c4   : > { %6620 = vrot.lane.b32.xlu0 %v6619_v24, %s6989_s28  ;;  %v985_v22 = vpop.f32.mrf.mxu2 }
 0x2cc   : > { %5113 = vrot.lane.b32.xlu0 %v7975_v8, %s6986_s3 }
 0x2d4   : > { %4973 = vrot.lane.b32.xlu0 %v7960_v13, %s6987_s26 }
 0x2dc   : > { %5288 = vrot.lane.b32.xlu0 %v8178_v20, %s6986_s3 }
 0x2ef   : > { %v6571_v39 = vpop.permute.xlu2 %6570 }
 0x2f0   : > { %v6573_v62 = vunpack.i.h.bf16 %v6571_v39  ;;  %v6572_v52 = vunpack.i.l.bf16 %v6571_v39 }
 0x2f2   : > { %v3799_v17 = vsel %vm435_vm7, %v6572_v52, %v6573_v62 }
 0x2f3   : > { %3821 = vmatpush.msrb.mxu2 %v3799_v17 }
 0x2f4   : > { %6120 = vmatmul.msk.f32.vlgmr.msrb.gmra.mxu2 %vm440_vm6, %v8073_v7 }
 0x2f7   : > { %v6581_v0 = vpop.permute.xlu1 %6580 }
 0x2f8   : > { %v6583_v50 = vunpack.i.h.bf16 %v6581_v0  ;;  %v6582_v32 = vunpack.i.l.bf16 %v6581_v0  ;;  %v6724_v0 = vld [vmem:[%s7254_s12] sm:$0xff] }
 0x2fa   : > { %v3709_v56 = vsel %vm1031_vm9, %v6582_v32, %v6583_v50 }
 0x2fb   : > { %3731 = vmatpush.msrb.mxu0 %v3709_v56 }
 0x2fc   : > { %6117 = vmatmul.msk.f32.vlgmr.msrb.gmra.mxu0 %vm440_vm6, %v8230_v45 }
 0x2fd   : > { %3864 = vmatpush.msra.mxu0 %v8005_v55 }
 0x2fe   : > { %v8242_v11 = vpop.permute.xlu2 %6585 }
 0x2ff   : > { %3979 = vmatpush.msrb.mxu0 %v8056_v26  ;;  %v8238_v46 = vpop.permute.xlu1 %4444  ;;  %v6587_v55 = vunpack.i.l.bf16 %v8242_v11  ;;  %v765_v26 = vadd.f32 %v742_v38, %v708_v9  ;;  %v1056_v9 = vpop.f32.mrf.mxu0 }
 0x300   : > { %4452 = vst.msk [vmem:[#allocation2 + $0x10] sm:$0xff] %vm386_vm0, %v8238_v46  ;;  %v1084_v39 = vmul.f32 %v8281_v36, %v1056_v9 }
 0x301   : > { %v3710_v51 = vsel %vm1031_vm9, %v6583_v50, %v6587_v55  ;;  %v827_v58 = vadd.f32 %v804_v27, %v765_v26  ;;  %v8305_v55 = vpop.f32.mrf.mxu3  ;;  %v4367_v26 = vld [vmem:[#allocation3 + $0x10] sm:$0xff] }
 0x302   : > { %3751 = vmatpush.msrb.mxu1 %v3710_v51 }
 0x303   : > { %6118 = vmatmul.msk.f32.vlgmr.msrb.gmra.mxu1 %vm440_vm6, %v8230_v45 }
 0x304   : > { %3884 = vmatpush.msra.mxu1 %v8039_v63  ;;  %6122 = vmatmul.msk.f32.vlgmr.msra.gmra.mxu0 %vm440_vm6, %v8050_v14  ;;  %v890_v63 = vadd.f32 %v867_v48, %v827_v58 }
 0x306   : > { %3999 = vmatpush.msrb.mxu1 %v8099_v42  ;;  %v6591_v2 = vpop.permute.xlu2 %6590  ;;  %v8263_v42 = vperm.slane %v8256_v30, 0  ;;  %v947_v29 = vadd.f32 %v924_v54, %v890_v63 }
 0x307   : > { %v6593_v43 = vunpack.i.h.bf16 %v6591_v2  ;;  %v6592_v40 = vunpack.i.l.bf16 %v6591_v2 }
 0x308   : > { %v1013_v24 = vmul.f32 %v8263_v42, %v985_v22 }
 0x309   : > { %v3896_v49 = vsel %vm535_vm8, %v6592_v40, %v6593_v43  ;;  %v4456_v40 = vld [vmem:[#allocation2 + $0x10] sm:$0xff] }
 0x30a   : > { %3918 = vmatpush.msra.mxu2 %v3896_v49  ;;  %v1015_v38 = vadd.f32 %v1013_v24, %v947_v29  ;;  %v1194_v29 = vpop.f32.mrf.mxu0 }
 0x30b   : > { %6125 = vmatmul.msk.f32.vlgmr.msra.gmra.mxu2 %vm440_vm6, %v8106_v16  ;;  %6123 = vmatmul.msk.f32.vlgmr.msra.gmra.mxu1 %vm440_vm6, %v8050_v14 }
 0x30c   : > { %6128 = vmatmul.msk.f32.vlgmr.msrb.gmra.mxu0 %vm440_vm6, %v8081_v34  ;;  %v1086_v15 = vadd.f32 %v1084_v39, %v1015_v38 }
 0x30e   : > { %v6576_v18 = vpop.permute.xlu0 %6575  ;;  %v1088_v48 = vmax.f32 %v1086_v15, 0.0  ;;  %v8287_v47 = vpop.permute.xlu2 %4615 }
 0x30f   : > { %v6577_v53 = vunpack.i.l.bf16 %v6576_v18  ;;  %v6578_v52 = vunpack.i.h.bf16 %v6576_v18 }
 0x310   : > { %v1090_v50 = vadd.f32 %v6724_v0, %v1088_v48  ;;  %v5106_v0 = vld [vmem:[%s332_s10] sm:$0xff] }
 0x311   : > { %v3800_v23 = vsel %vm435_vm7, %v6573_v62, %v6577_v53 }
 0x312   : > { %3841 = vmatpush.msrb.mxu3 %v3800_v23  ;;  %1092 = vst [vmem:[%s8294_s23] sm:$0xff] %v1090_v50  ;;  %v5108_v50 = vstv %s385_s8  ;;  %s8879_s8 = smov %s8878_s27 }
 0x313   : > { %6121 = vmatmul.msk.f32.vlgmr.msrb.gmra.mxu3 %vm440_vm6, %v8073_v7 }
 0x316   : > { %v4443_v37 = vpop.permute.xlu0 %4442 }
 0x317   : > { %v6601_v62 = vpop.permute.xlu1 %6600  ;;  %4450 = vst.msk [vmem:[#allocation2] sm:$0xff] %vm416_vm4, %v4443_v37 }
 0x318   : > { %v6602_v17 = vunpack.i.l.bf16 %v6601_v62  ;;  %v6603_v32 = vunpack.i.h.bf16 %v6601_v62 }
 0x31a   : > { %v4019_v44 = vsel %vm435_vm7, %v6578_v52, %v6602_v17  ;;  %v4020_v3 = vsel %vm435_vm7, %v6602_v17, %v6603_v32  ;;  %v1151_v52 = vpop.f32.mrf.mxu2  ;;  %v1171_v17 = vpop.f32.mrf.mxu3  ;;  %v5109_v32 = vmul.f32 %v5108_v50, %v5106_v0 }
 0x31b   : > { %4041 = vmatpush.msrb.mxu2 %v4019_v44  ;;  %v1195_v15 = vadd.f32 %v1194_v29, %v1151_v52 }
 0x31c   : > { %6131 = vmatmul.msk.f32.vlgmr.msrb.gmra.mxu2 %vm440_vm6, %v8143_v12 }
 0x31d   : > { %4158 = vmatpush.msra.mxu2 %v8175_v28 }
 0x31e   : > { %v8290_v56 = vld [vmem:[#allocation2] sm:$0xff]  ;;  %v6596_v27 = vpop.permute.xlu0 %6595 }
 0x31f   : > { %4623 = vst.msk [vmem:[#allocation2] sm:$0xff] %vm416_vm4, %v8287_v47  ;;  %v6597_v61 = vunpack.i.l.bf16 %v6596_v27  ;;  %v6624_v28 = vpack.i.bf16 %v8290_v56, %v8235_v59  ;;  %v8313_v59 = vsel %vm390_vm3, %v8062_v41, %v8173_v31  ;;  %v4797_v41 = vpop.permute.xlu2 %4796  ;;  %v6598_v22 = vunpack.i.h.bf16 %v6596_v27  ;;  %v5107_v27 = vld [vmem:[%s332_s10 + $0x8] sm:$0xff]  ;;  %s5789_s10 = sshll.u32 %s8294_s23, 4  ;;  %s5790_s10 = int_to_ptr.vmem [resolvable:$true] %s5789_s10 }
 0x320   : > { %v4795_v51 = vpop.permute.xlu1 %4794  ;;  %v6629_v58 = vpack.i.bf16 %v4367_v26, %v8313_v59 }
 0x321   : > { %6625 = vrot.lane.b32.xlu1 %v6624_v28, %s6989_s28  ;;  %6615 = vrot.lane.b32.xlu2 %v6624_v28, %s6991_s15  ;;  %v3897_v1 = vsel %vm535_vm8, %v6593_v43, %v6597_v61  ;;  %v8341_v23 = vsel %vm386_vm0, %v4795_v51, %v4797_v41  ;;  %v5110_v61 = vmul.f32 %v5108_v50, %v5107_v27 }
 0x322   : > { %3938 = vmatpush.msra.mxu3 %v3897_v1 }
 0x323   : > { %6126 = vmatmul.msk.f32.vlgmr.msra.gmra.mxu3 %vm440_vm6, %v8106_v16 }
 0x324   : > { %4061 = vmatpush.msrb.mxu3 %v4020_v3  ;;  %v8385_v3 = vperm.slane %v8256_v30, 1 }
 0x326   : > { %4178 = vmatpush.msra.mxu3 %v8169_v25  ;;  %v8315_v2 = vld [vmem:[#allocation2] sm:$0xff]  ;;  %v4618_v43 = vpop.permute.xlu0 %4617  ;;  %v8325_v25 = vsel %vm386_vm0, %v4443_v37, %v8238_v46 }
 0x327   : > { %4802 = vst.msk [vmem:[#allocation2] sm:$0xff] %vm416_vm4, %v4795_v51  ;;  %v6634_v53 = vpack.i.bf16 %v4456_v40, %v8325_v25  ;;  %v8361_v44 = vsel %vm386_vm0, %v8287_v47, %v4618_v43  ;;  %v1268_v47 = vpop.f32.mrf.mxu3  ;;  %v1014_v51 = vmul.f32 %v8385_v3, %v8305_v55  ;;  %v8400_v40 = vperm.slane %v8276_v10, 1 }
 0x328   : > { %4625 = vst.msk [vmem:[#allocation2 + $0x10] sm:$0xff] %vm386_vm0, %v4618_v43  ;;  %v6654_v48 = vpack.i.bf16 %v8361_v44, %v8315_v2 }
 0x329   : > { %5115 = vrot.lane.b32.xlu1 %v7960_v13, %s6986_s3  ;;  %6630 = vrot.lane.b32.xlu2 %v6629_v58, %s6990_s30  ;;  %v1076_v58 = vpop.f32.mrf.mxu1 }
 0x32a   : > { %6129 = vmatmul.msk.f32.vlgmr.msrb.gmra.mxu1 %vm440_vm6, %v8081_v34 }
 0x32b   : > { %6132 = vmatmul.msk.f32.vlgmr.msrb.gmra.mxu3 %vm440_vm6, %v8143_v12 }
 0x32e   : > { %v6606_v31 = vpop.permute.xlu0 %6605  ;;  %v8327_v49 = vld [vmem:[#allocation2] sm:$0xff] }
 0x32f   : > { %v4676_v54 = vld [vmem:[#allocation2 + $0x10] sm:$0xff]  ;;  %v6608_v63 = vunpack.i.h.bf16 %v6606_v31  ;;  %v6607_v18 = vunpack.i.l.bf16 %v6606_v31  ;;  %v1391_v10 = vpop.f32.mrf.mxu3 }
 0x330   : > { %4804 = vst.msk [vmem:[#allocation2 + $0x10] sm:$0xff] %vm386_vm0, %v4797_v41  ;;  %v6649_v13 = vpack.i.bf16 %v8327_v49, %v4676_v54  ;;  %v6725_v41 = vld [vmem:[%s7254_s12 + $0x8] sm:$0xff] }
 0x331   : > { %6635 = vrot.lane.b32.xlu1 %v6634_v53, %s6989_s28  ;;  %4971 = vrot.lane.b32.xlu2 %v7975_v8, %s6987_s26  ;;  %v4075_v46 = vsel %vm535_vm8, %v6598_v22, %v6607_v18  ;;  %v4076_v24 = vsel %vm535_vm8, %v6607_v18, %v6608_v63  ;;  %v1214_v22 = vpop.f32.mrf.mxu1  ;;  %v1309_v63 = vpop.f32.mrf.mxu0 }
 0x332   : > { %6650 = vrot.lane.b32.xlu0 %v6649_v13, %s6991_s15  ;;  %4097 = vmatpush.msra.mxu0 %v4075_v46 }
 0x333   : > { %4117 = vmatpush.msra.mxu1 %v4076_v24  ;;  %6134 = vmatmul.msk.f32.vlgmr.msra.gmra.mxu0 %vm440_vm6, %v8116_v57 }
 0x334   : > { %6138 = vmatmul.msk.f32.vlgmr.msra.gmra.mxu3 %vm440_vm6, %v8164_v35  ;;  %6135 = vmatmul.msk.f32.vlgmr.msra.gmra.mxu1 %vm440_vm6, %v8116_v57 }
 0x336   : > { %v8343_v9 = vpop.permute.xlu0 %6620 }
 0x337   : > { %v6623_v8 = vunpack.i.h.bf16 %v8343_v9  ;;  %v6622_v38 = vunpack.i.l.bf16 %v8343_v9  ;;  %v4855_v37 = vld [vmem:[#allocation2 + $0x10] sm:$0xff]  ;;  %v1508_v24 = vpop.f32.mrf.mxu3 }
 0x338   : > { %v6664_v39 = vpack.i.bf16 %v4855_v37, %v8341_v23 }
 0x339   : > { %6640 = vrot.lane.b32.xlu1 %v6634_v53, %s6991_s15  ;;  %5286 = vrot.lane.b32.xlu2 %v8138_v4, %s6986_s3  ;;  %v4198_v62 = vsel %vm435_vm7, %v6622_v38, %v6623_v8  ;;  %v1329_v18 = vpop.f32.mrf.mxu1  ;;  %v1215_v53 = vadd.f32 %v1214_v22, %v1171_v17  ;;  %v1427_v38 = vpop.f32.mrf.mxu0 }
 0x33a   : > { %6665 = vrot.lane.b32.xlu0 %v6664_v39, %s6989_s28  ;;  %4220 = vmatpush.msrb.mxu0 %v4198_v62 }
 0x33b   : > { %6140 = vmatmul.msk.f32.vlgmr.msrb.gmra.mxu0 %vm440_vm6, %v8203_v60  ;;  %v1272_v29 = vadd.f32 %v1268_v47, %v1215_v53 }
 0x33c   : > { %4335 = vmatpush.msra.mxu0 %v8093_v6  ;;  %v1248_v6 = vpop.f32.mrf.mxu2  ;;  %6137 = vmatmul.msk.f32.vlgmr.msra.gmra.mxu2 %vm440_vm6, %v8164_v35 }
 0x33d   : > { %v1333_v52 = vadd.f32 %v1329_v18, %v1272_v29 }
 0x33e   : > { %v8395_v43 = vpop.permute.xlu0 %5113 }
 0x33f   : > { %5121 = vst.msk [vmem:[#allocation2] sm:$0xff] %vm416_vm4, %v8395_v43 }
 0x341   : > { %6655 = vrot.lane.b32.xlu1 %v6654_v48, %s6989_s28  ;;  %6645 = vrot.lane.b32.xlu2 %v6654_v48, %s6991_s15  ;;  %v1447_v37 = vpop.f32.mrf.mxu1  ;;  %v1550_v47 = vpop.f32.mrf.mxu0 }
 0x342   : > { %5642 = vrot.lane.b32.xlu0 %v8138_v4, %s6987_s26  ;;  %v6611_v4 = vpop.permute.xlu1 %6610 }
 0x343   : > { %v6613_v28 = vunpack.i.h.bf16 %v6611_v4  ;;  %v6612_v1 = vunpack.i.l.bf16 %v6611_v4  ;;  %6146 = vmatmul.msk.f32.vlgmr.msra.gmra.mxu0 %vm440_vm6, %v8215_v21 }
 0x344   : > { %v1371_v26 = vpop.f32.mrf.mxu2 }
 0x345   : > { %v4254_v35 = vsel %vm535_vm8, %v6612_v1, %v6613_v28  ;;  %v6588_v1 = vunpack.i.h.bf16 %v8242_v11 }
 0x346   : > { %4276 = vmatpush.msrb.mxu2 %v4254_v35  ;;  %v8409_v54 = vpop.permute.xlu0 %4973 }
 0x347   : > { %6143 = vmatmul.msk.f32.vlgmr.msrb.gmra.mxu2 %vm440_vm6, %v8190_v33  ;;  %4981 = vst.msk [vmem:[#allocation3 + $0x10] sm:$0xff] %vm390_vm3, %v8409_v54 }
 0x349   : > { %5465 = vrot.lane.b32.xlu1 %v5109_v32, %s6986_s3  ;;  %6660 = vrot.lane.b32.xlu2 %v6649_v13, %s6989_s28  ;;  %v1271_v13 = vadd.f32 %v1248_v6, %v1195_v15  ;;  %v1395_v15 = vadd.f32 %v1391_v10, %v1333_v52  ;;  %v1626_v6 = vpop.f32.mrf.mxu3  ;;  %v1570_v32 = vpop.f32.mrf.mxu1 }
 0x34b   : > { %v1332_v62 = vadd.f32 %v1309_v63, %v1271_v13  ;;  %v1451_v4 = vadd.f32 %v1447_v37, %v1395_v15  ;;  %v8443_v13 = vld [vmem:[#allocation2] sm:$0xff] }
 0x34c   : > { %v1488_v46 = vpop.f32.mrf.mxu2 }
 0x34d   : > { %v1394_v17 = vadd.f32 %v1371_v26, %v1332_v62 }
 0x351   : > { %5644 = vrot.lane.b32.xlu1 %v8178_v20, %s6987_s26  ;;  %5467 = vrot.lane.b32.xlu2 %v5110_v61, %s6986_s3  ;;  %v948_v20 = vadd.f32 %v8267_v19, %v8240_v5  ;;  %v1085_v5 = vmul.f32 %v8400_v40, %v1076_v58  ;;  %v1450_v61 = vadd.f32 %v1427_v38, %v1394_v17  ;;  %v6727_v17 = vld [vmem:[%s7254_s12 + $0x18] sm:$0xff]  ;;  %s5774_s26 = scalar_lea.sflag [#allocation6], %s7248_s9 }
 0x353   : > { %v1016_v30 = vadd.f32 %v1014_v51, %v948_v20  ;;  %v1511_v26 = vadd.f32 %v1488_v46, %v1450_v61 }
 0x354   : > { %v1606_v50 = vpop.f32.mrf.mxu2 }
 0x355   : > { %v1087_v19 = vadd.f32 %v1085_v5, %v1016_v30  ;;  %v1512_v30 = vadd.f32 %v1508_v24, %v1451_v4  ;;  %v1749_v5 = vpop.f32.mrf.mxu3 }
 0x357   : > { %v1089_v55 = vmax.f32 %v1087_v19, 0.0  ;;  %v1574_v11 = vadd.f32 %v1570_v32, %v1512_v30  ;;  %v8468_v32 = vpop.permute.xlu0 %5288 }
 0x359   : > { %6670 = vrot.lane.b32.xlu2 %v6664_v39, %s6991_s15  ;;  %v1091_v31 = vadd.f32 %v6725_v41, %v1089_v55  ;;  %v1665_v55 = vpop.f32.mrf.mxu0  ;;  %v1630_v22 = vadd.f32 %v1626_v6, %v1574_v11 }
 0x35a   : > { %v1688_v10 = vmul.f32 %v1665_v55, %v8263_v42 }
 0x35b   : > { %1093 = vst [vmem:[%s8294_s23 + $0x8] sm:$0xff] %v1091_v31 }
 0x35c   : > { %v1729_v58 = vpop.f32.mrf.mxu2 }
 0x35d   : > { %v1752_v19 = vmul.f32 %v1729_v58, %v8281_v36  ;;  %v1882_v38 = vpop.f32.mrf.mxu3 }
 0x361   : > { %v1819_v37 = vpop.f32.mrf.mxu0 }
 0x364   : > { %v1862_v29 = vpop.f32.mrf.mxu2 }
 0x365   : > { %v1863_v9 = vadd.f32 %v1862_v29, %v1819_v37  ;;  %v5035_v29 = vld [vmem:[#allocation3 + $0x10] sm:$0xff] }
 0x37b   : > { %v8417_v39 = vpop.permute.xlu2 %6615 }
 0x37c   : > { %v6617_v48 = vunpack.i.l.bf16 %v8417_v39 }
 0x37e   : > { %v4255_v0 = vsel %vm535_vm8, %v6613_v28, %v6617_v48 }
 0x37f   : > { %4296 = vmatpush.msrb.mxu3 %v4255_v0  ;;  %v6726_v0 = vld [vmem:[%s7254_s12 + $0x10] sm:$0xff] }
 0x380   : > { %6144 = vmatmul.msk.f32.vlgmr.msrb.gmra.mxu3 %vm440_vm6, %v8190_v33  ;;  %v1573_v33 = vadd.f32 %v1550_v47, %v1511_v26 }
 0x382   : > { %v1629_v31 = vadd.f32 %v1606_v50, %v1573_v33 }
 0x383   : > { %v6631_v27 = vpop.permute.xlu2 %6630 }
 0x384   : > { %v6633_v35 = vunpack.i.h.bf16 %v6631_v27  ;;  %v6632_v51 = vunpack.i.l.bf16 %v6631_v27  ;;  %v1690_v63 = vadd.f32 %v1688_v10, %v1629_v31 }
 0x386   : > { %v4377_v20 = vsel %vm1031_vm9, %v6588_v1, %v6632_v51  ;;  %v4378_v28 = vsel %vm1031_vm9, %v6632_v51, %v6633_v35  ;;  %v1977_v51 = vpop.f32.mrf.mxu2 }
 0x387   : > { %4399 = vmatpush.msra.mxu2 %v4377_v20  ;;  %4419 = vmatpush.msra.mxu3 %v4378_v28  ;;  %v1997_v20 = vpop.f32.mrf.mxu3 }
 0x388   : > { %6149 = vmatmul.msk.f32.vlgmr.msra.gmra.mxu2 %vm440_vm6, %v8230_v45  ;;  %6150 = vmatmul.msk.f32.vlgmr.msra.gmra.mxu3 %vm440_vm6, %v8230_v45 }
 0x389   : > { %4532 = vmatpush.msrb.mxu2 %v8290_v56  ;;  %4552 = vmatpush.msrb.mxu3 %v8325_v25  ;;  %v1753_v56 = vmul.f32 %v1749_v5, %v8400_v40  ;;  %v1685_v25 = vpop.f32.mrf.mxu1 }
 0x38a   : > { %v1689_v45 = vmul.f32 %v1685_v25, %v8385_v3 }
 0x38b   : > { %4647 = vmatpush.msra.mxu2 %v8315_v2  ;;  %4667 = vmatpush.msra.mxu3 %v8361_v44  ;;  %v4972_v41 = vpop.permute.xlu2 %4971  ;;  %v1754_v2 = vadd.f32 %v1752_v19, %v1690_v63 }
 0x38c   : > { %4979 = vst.msk [vmem:[#allocation3] sm:$0xff] %vm957_vm5, %v4972_v41  ;;  %v1691_v18 = vadd.f32 %v1689_v45, %v1630_v22  ;;  %v8441_v53 = vsel %vm390_vm3, %v4972_v41, %v8409_v54 }
 0x38d   : > { %v1756_v46 = vmax.f32 %v1754_v2, 0.0 }
 0x38e   : > { %v1755_v44 = vadd.f32 %v1753_v56, %v1691_v18 }
 0x38f   : > { %v1758_v50 = vadd.f32 %v6726_v0, %v1756_v46  ;;  %v2115_v63 = vpop.f32.mrf.mxu3 }
 0x390   : > { %6154 = vmatmul.msk.f32.vlgmr.msrb.gmra.mxu2 %vm440_vm6, %v8050_v14  ;;  %6155 = vmatmul.msk.f32.vlgmr.msrb.gmra.mxu3 %vm440_vm6, %v8050_v14  ;;  %v1757_v24 = vmax.f32 %v1755_v44, 0.0 }
 0x391   : > { %v1839_v62 = vpop.f32.mrf.mxu1  ;;  %1760 = vst [vmem:[%s8294_s23 + $0x10] sm:$0xff] %v1758_v50 }
 0x392   : > { %v1759_v15 = vadd.f32 %v6727_v17, %v1757_v24  ;;  %v1883_v27 = vadd.f32 %v1882_v38, %v1839_v62 }
 0x393   : > { %v6626_v52 = vpop.permute.xlu1 %6625  ;;  %v8449_v48 = vpop.permute.xlu2 %5286  ;;  %v8451_v54 = vld [vmem:[#allocation3] sm:$0xff] }
 0x394   : > { %v6627_v6 = vunpack.i.l.bf16 %v6626_v52  ;;  %5294 = vst.msk [vmem:[#allocation2] sm:$0xff] %vm416_vm4, %v8449_v48  ;;  %v6684_v14 = vpack.i.bf16 %v8441_v53, %v8451_v54  ;;  %v6628_v25 = vunpack.i.h.bf16 %v6626_v52 }
 0x395   : > { %1761 = vst [vmem:[%s8294_s23 + $0x18] sm:$0xff] %v1759_v15  ;;  %v6618_v15 = vunpack.i.h.bf16 %v8417_v39 }
 0x396   : > { %v4199_v47 = vsel %vm435_vm7, %v6623_v8, %v6627_v6  ;;  %6685 = vrot.lane.b32.xlu2 %v6684_v14, %s6990_s30  ;;  %v1916_v8 = vpop.f32.mrf.mxu0 }
 0x397   : > { %4240 = vmatpush.msrb.mxu1 %v4199_v47  ;;  %v1939_v26 = vadd.f32 %v1916_v8, %v1863_v9  ;;  %v8517_v9 = vsel %vm386_vm0, %v8449_v48, %v8468_v32 }
 0x398   : > { %6141 = vmatmul.msk.f32.vlgmr.msrb.gmra.mxu1 %vm440_vm6, %v8203_v60  ;;  %6160 = vmatmul.msk.f32.vlgmr.msra.gmra.mxu2 %vm440_vm6, %v8081_v34 }
 0x399   : > { %4355 = vmatpush.msra.mxu1 %v8313_v59  ;;  %6161 = vmatmul.msk.f32.vlgmr.msra.gmra.mxu3 %vm440_vm6, %v8081_v34  ;;  %v1936_v61 = vpop.f32.mrf.mxu1  ;;  %v2000_v33 = vadd.f32 %v1977_v51, %v1939_v26 }
 0x39a   : > { %v1940_v30 = vadd.f32 %v1936_v61, %v1883_v27 }
 0x39b   : > { %v5116_v4 = vpop.permute.xlu1 %5115  ;;  %v6646_v1 = vpop.permute.xlu2 %6645 }
 0x39c   : > { %v8476_v59 = vsel %vm386_vm0, %v8395_v43, %v5116_v4  ;;  %5123 = vst.msk [vmem:[#allocation2 + $0x10] sm:$0xff] %vm386_vm0, %v5116_v4  ;;  %v6648_v60 = vunpack.i.h.bf16 %v6646_v1  ;;  %v6647_v35 = vunpack.i.l.bf16 %v6646_v1  ;;  %v8487_v43 = vld [vmem:[#allocation2] sm:$0xff]  ;;  %v2001_v11 = vadd.f32 %v1997_v20, %v1940_v30  ;;  %v2238_v4 = vpop.f32.mrf.mxu3 }
 0x39d   : > { %v6674_v28 = vpack.i.bf16 %v8476_v59, %v8443_v13 }
 0x39e   : > { %v4743_v34 = vsel %vm535_vm8, %v6647_v35, %v6648_v60  ;;  %v2039_v58 = vpop.f32.mrf.mxu0 }
 0x39f   : > { %4765 = vmatpush.msrb.mxu2 %v4743_v34  ;;  %6675 = vrot.lane.b32.xlu0 %v6674_v28, %s6989_s28  ;;  %v2062_v44 = vadd.f32 %v2039_v58, %v2000_v33 }
 0x3a0   : > { %6147 = vmatmul.msk.f32.vlgmr.msra.gmra.mxu1 %vm440_vm6, %v8215_v21  ;;  %6166 = vmatmul.msk.f32.vlgmr.msrb.gmra.mxu2 %vm440_vm6, %v8116_v57  ;;  %v2095_v21 = vpop.f32.mrf.mxu2 }
 0x3a1   : > { %v2059_v5 = vpop.f32.mrf.mxu1  ;;  %v2118_v38 = vadd.f32 %v2095_v21, %v2062_v44 }
 0x3a2   : > { %v2063_v46 = vadd.f32 %v2059_v5, %v2001_v11 }
 0x3a3   : > { %v6636_v19 = vpop.permute.xlu1 %6635  ;;  %v8489_v56 = vpop.permute.xlu2 %6660  ;;  %v5127_v55 = vld [vmem:[#allocation2 + $0x10] sm:$0xff] }
 0x3a4   : > { %v6638_v41 = vunpack.i.h.bf16 %v6636_v19  ;;  %v6637_v31 = vunpack.i.l.bf16 %v6636_v19  ;;  %v8491_v22 = vpop.permute.xlu0 %6650  ;;  %5296 = vst.msk [vmem:[#allocation2 + $0x10] sm:$0xff] %vm386_vm0, %v8468_v32  ;;  %v6694_v45 = vpack.i.bf16 %v8487_v43, %v5127_v55  ;;  %v2119_v37 = vadd.f32 %v2115_v63, %v2063_v46 }
 0x3a5   : > { %v6652_v10 = vunpack.i.l.bf16 %v8491_v22  ;;  %v6663_v27 = vunpack.i.h.bf16 %v8489_v56  ;;  %v6662_v33 = vunpack.i.l.bf16 %v8489_v56 }
 0x3a6   : > { %v4468_v18 = vsel %vm435_vm7, %v6637_v31, %v6638_v41  ;;  %v4467_v2 = vsel %vm435_vm7, %v6628_v25, %v6637_v31  ;;  %6695 = vrot.lane.b32.xlu2 %v6694_v45, %s6991_s15  ;;  %6680 = vrot.lane.b32.xlu1 %v6694_v45, %s6989_s28  ;;  %v2156_v62 = vpop.f32.mrf.mxu0  ;;  %v2353_v31 = vpop.f32.mrf.mxu3 }
 0x3a7   : > { %v4744_v24 = vsel %vm535_vm8, %v6648_v60, %v6652_v10  ;;  %4509 = vmatpush.msrb.mxu1 %v4468_v18  ;;  %4489 = vmatpush.msrb.mxu0 %v4467_v2  ;;  %v2179_v1 = vadd.f32 %v2156_v62, %v2118_v38  ;;  %v2357_v56 = vmul.f32 %v2353_v31, %v8385_v3 }
 0x3a8   : > { %4785 = vmatpush.msrb.mxu3 %v4744_v24  ;;  %6153 = vmatmul.msk.f32.vlgmr.msrb.gmra.mxu1 %vm440_vm6, %v8073_v7  ;;  %v2218_v47 = vpop.f32.mrf.mxu2 }
 0x3a9   : > { %6152 = vmatmul.msk.f32.vlgmr.msrb.gmra.mxu0 %vm440_vm6, %v8073_v7  ;;  %5043 = vrot.lane.b32.xlu0 %v5035_v29, %s6990_s30  ;;  %v2176_v52 = vpop.f32.mrf.mxu1  ;;  %v2241_v32 = vadd.f32 %v2218_v47, %v2179_v1 }
 0x3aa   : > { %6167 = vmatmul.msk.f32.vlgmr.msrb.gmra.mxu3 %vm440_vm6, %v8116_v57  ;;  %v2180_v60 = vadd.f32 %v2176_v52, %v2119_v37 }
 0x3ab   : > { %v6641_v0 = vpop.permute.xlu1 %6640  ;;  %v5347_v50 = vld [vmem:[#allocation2 + $0x10] sm:$0xff]  ;;  %v8507_v17 = vpop.permute.xlu2 %5467 }
 0x3ac   : > { %v6643_v6 = vunpack.i.h.bf16 %v6641_v0  ;;  %v6642_v14 = vunpack.i.l.bf16 %v6641_v0  ;;  %5475 = vst.msk [vmem:[#allocation2 + $0x10] sm:$0xff] %vm386_vm0, %v8507_v17  ;;  %v6666_v7 = vpop.permute.xlu0 %6665  ;;  %v6704_v48 = vpack.i.bf16 %v5347_v50, %v8517_v9  ;;  %v2242_v20 = vadd.f32 %v2238_v4, %v2180_v60  ;;  %v8560_v50 = vld [vmem:[%s8875_s0 + $0x30] sm:$0xff] }
 0x3ad   : > { %v6668_v8 = vunpack.i.h.bf16 %v6666_v7  ;;  %v6667_v61 = vunpack.i.l.bf16 %v6666_v7 }
 0x3ae   : > { %v4565_v57 = vsel %vm535_vm8, %v6642_v14, %v6643_v6  ;;  %v4564_v39 = vsel %vm535_vm8, %v6618_v15, %v6642_v14  ;;  %6690 = vrot.lane.b32.xlu1 %v6674_v28, %s6991_s15  ;;  %v2274_v28 = vpop.f32.mrf.mxu0  ;;  %v2507_v62 = vpop.f32.mrf.mxu3  ;;  %v6728_v15 = vld [vmem:[%s7254_s12 + $0x20] sm:$0xff]  ;;  %v6729_v14 = vld [vmem:[%s7254_s12 + $0x28] sm:$0xff] }
 0x3af   : > { %4606 = vmatpush.msra.mxu1 %v4565_v57  ;;  %v4866_v35 = vsel %vm435_vm7, %v6663_v27, %v6667_v61  ;;  %v4867_v51 = vsel %vm435_vm7, %v6667_v61, %v6668_v8  ;;  %4586 = vmatpush.msra.mxu0 %v4564_v39  ;;  %v2297_v19 = vadd.f32 %v2274_v28, %v2241_v32 }
 0x3b0   : > { %4888 = vmatpush.msra.mxu2 %v4866_v35  ;;  %4908 = vmatpush.msra.mxu3 %v4867_v51  ;;  %v2333_v55 = vpop.f32.mrf.mxu2  ;;  %v8588_v51 = vld [vmem:[%s8875_s0 + $0x40] sm:$0xff] }
 0x3b1   : > { %6158 = vmatmul.msk.f32.vlgmr.msra.gmra.mxu1 %vm440_vm6, %v8106_v16  ;;  %6157 = vmatmul.msk.f32.vlgmr.msra.gmra.mxu0 %vm440_vm6, %v8106_v16  ;;  %v2294_v34 = vpop.f32.mrf.mxu1 }
 0x3b2   : > { %5003 = vmatpush.msrb.mxu2 %v8451_v54  ;;  %5023 = vmatpush.msrb.mxu3 %v8441_v53  ;;  %v2298_v16 = vadd.f32 %v2294_v34, %v2242_v20  ;;  %v2356_v54 = vmul.f32 %v2333_v55, %v8263_v42  ;;  %v6653_v53 = vunpack.i.h.bf16 %v8491_v22 }
 0x3b3   : > { %v6656_v26 = vpop.permute.xlu1 %6655  ;;  %v6671_v30 = vpop.permute.xlu2 %6670  ;;  %6700 = vrot.lane.b32.xlu0 %v6704_v48, %s6989_s28  ;;  %v5526_v45 = vld [vmem:[#allocation2 + $0x10] sm:$0xff] }
 0x3b4   : > { %v6658_v11 = vunpack.i.h.bf16 %v6656_v26  ;;  %v6657_v58 = vunpack.i.l.bf16 %v6656_v26  ;;  %v5643_v5 = vpop.permute.xlu0 %5642  ;;  %v6673_v25 = vunpack.i.h.bf16 %v6671_v30  ;;  %v6672_v41 = vunpack.i.l.bf16 %v6671_v30 }
 0x3b5   : > { %5650 = vst.msk [vmem:[#allocation3] sm:$0xff] %vm957_vm5, %v5643_v5  ;;  %v2358_v63 = vadd.f32 %v2356_v54, %v2297_v19  ;;  %v2359_v18 = vadd.f32 %v2357_v56, %v2298_v16 }
 0x3b6   : > { %v4688_v21 = vsel %vm435_vm7, %v6658_v11, %v6662_v33  ;;  %v4687_v10 = vsel %vm435_vm7, %v6657_v58, %v6658_v11  ;;  %6705 = vrot.lane.b32.xlu1 %v6704_v48, %s6991_s15  ;;  %v4923_v22 = vsel %vm535_vm8, %v6672_v41, %v6673_v25  ;;  %v4922_v2 = vsel %vm535_vm8, %v6653_v53, %v6672_v41  ;;  %v2397_v44 = vpop.f32.mrf.mxu0  ;;  %v2604_v60 = vpop.f32.mrf.mxu3 }
 0x3b7   : > { %4729 = vmatpush.msrb.mxu1 %v4688_v21  ;;  %4709 = vmatpush.msrb.mxu0 %v4687_v10 }
 0x3b9   : > { %4846 = vmatpush.msra.mxu1 %v8341_v23  ;;  %4826 = vmatpush.msra.mxu0 %v8327_v49  ;;  %v2417_v46 = vpop.f32.mrf.mxu1  ;;  %v2420_v49 = vmul.f32 %v2397_v44, %v8281_v36 }
 0x3ba   : > { %6164 = vmatmul.msk.f32.vlgmr.msrb.gmra.mxu1 %vm440_vm6, %v8143_v12  ;;  %6163 = vmatmul.msk.f32.vlgmr.msrb.gmra.mxu0 %vm440_vm6, %v8143_v12  ;;  %v2421_v24 = vmul.f32 %v2417_v46, %v8400_v40  ;;  %v2487_v12 = vpop.f32.mrf.mxu2 }
 0x3bb   : > { %4964 = vmatpush.msrb.mxu1 %v4923_v22  ;;  %4944 = vmatpush.msrb.mxu0 %v4922_v2  ;;  %v5466_v23 = vpop.permute.xlu1 %5465  ;;  %v2422_v38 = vadd.f32 %v2420_v49, %v2358_v63  ;;  %v8599_v22 = vld [vmem:[%s8875_s0 + $0x38] sm:$0xff]  ;;  %v8608_v49 = vld [vmem:[%s8875_s0 + $0x48] sm:$0xff] }
 0x3bc   : > { %5591 = vrot.lane.b32.xlu0 %v5526_v45, %s6991_s15  ;;  %v8554_v29 = vsel %vm386_vm0, %v5466_v23, %v8507_v17  ;;  %5473 = vst.msk [vmem:[#allocation2] sm:$0xff] %vm416_vm4, %v5466_v23  ;;  %v2423_v37 = vadd.f32 %v2421_v24, %v2359_v18  ;;  %v8565_v17 = vld [vmem:[#allocation3] sm:$0xff]  ;;  %6172 = vmatmul.msk.f32.vlgmr.msra.gmra.mxu2 %vm440_vm6, %v8599_v22 }
 0x3bd   : > { %v2424_v52 = vmax.f32 %v2422_v38, 0.0  ;;  %6173 = vmatmul.msk.f32.vlgmr.msra.gmra.mxu3 %vm440_vm6, %v8599_v22 }
 0x3be   : > { %v2425_v0 = vmax.f32 %v2423_v37, 0.0  ;;  %v2530_v47 = vpop.f32.mrf.mxu0  ;;  %v2727_v33 = vpop.f32.mrf.mxu3 }
 0x3bf   : > { %v2426_v6 = vadd.f32 %v6728_v15, %v2424_v52  ;;  %v2531_v48 = vadd.f32 %v2530_v47, %v2487_v12 }
 0x3c0   : > { %v2427_v7 = vadd.f32 %v6729_v14, %v2425_v0 }
 0x3c1   : > { %v2550_v27 = vpop.f32.mrf.mxu1  ;;  %2428 = vst [vmem:[%s8294_s23 + $0x20] sm:$0xff] %v2426_v6 }
 0x3c2   : > { %6170 = vmatmul.msk.f32.vlgmr.msra.gmra.mxu1 %vm440_vm6, %v8560_v50  ;;  %6169 = vmatmul.msk.f32.vlgmr.msra.gmra.mxu0 %vm440_vm6, %v8560_v50  ;;  %v2584_v39 = vpop.f32.mrf.mxu2  ;;  %2429 = vst [vmem:[%s8294_s23 + $0x28] sm:$0xff] %v2427_v7  ;;  %v2551_v35 = vadd.f32 %v2550_v27, %v2507_v62 }
 0x3c3   : > { %v5645_v8 = vpop.permute.xlu1 %5644  ;;  %v8570_v61 = vld [vmem:[#allocation2] sm:$0xff]  ;;  %v2607_v30 = vadd.f32 %v2584_v39, %v2531_v48 }
 0x3c4   : > { %5652 = vst.msk [vmem:[#allocation3 + $0x10] sm:$0xff] %vm390_vm3, %v5645_v8  ;;  %v8575_v4 = vsel %vm390_vm3, %v5643_v5, %v5645_v8  ;;  %v6714_v57 = vpack.i.bf16 %v8554_v29, %v8570_v61  ;;  %v2608_v34 = vadd.f32 %v2604_v60, %v2551_v35  ;;  %6178 = vmatmul.msk.f32.vlgmr.msrb.gmra.mxu2 %vm440_vm6, %v8608_v49  ;;  %v6730_v39 = vld [vmem:[%s7254_s12 + $0x30] sm:$0xff]  ;;  %v6731_v60 = vld [vmem:[%s7254_s12 + $0x38] sm:$0xff] }
 0x3c5   : > { %v6719_v1 = vpack.i.bf16 %v8575_v4, %v8565_v17  ;;  %6179 = vmatmul.msk.f32.vlgmr.msrb.gmra.mxu3 %vm440_vm6, %v8608_v49 }
 0x3c6   : > { %6715 = vrot.lane.b32.xlu1 %v6714_v57, %s6989_s28  ;;  %6710 = vrot.lane.b32.xlu2 %v6714_v57, %s6991_s15  ;;  %v2645_v32 = vpop.f32.mrf.mxu0  ;;  %v2844_v16 = vpop.f32.mrf.mxu3 }
 0x3c7   : > { %6720 = vrot.lane.b32.xlu0 %v6719_v1, %s6990_s30  ;;  %v2668_v58 = vadd.f32 %v2645_v32, %v2607_v30 }
 0x3c9   : > { %v2665_v20 = vpop.f32.mrf.mxu1 }
 0x3ca   : > { %6176 = vmatmul.msk.f32.vlgmr.msrb.gmra.mxu1 %vm440_vm6, %v8588_v51  ;;  %6175 = vmatmul.msk.f32.vlgmr.msrb.gmra.mxu0 %vm440_vm6, %v8588_v51  ;;  %v2707_v26 = vpop.f32.mrf.mxu2  ;;  %v2669_v11 = vadd.f32 %v2665_v20, %v2608_v34 }
 0x3cb   : > { %v5706_v28 = vld [vmem:[#allocation3 + $0x10] sm:$0xff]  ;;  %v2730_v41 = vadd.f32 %v2707_v26, %v2668_v58 }
 0x3cc   : > { %v2731_v55 = vadd.f32 %v2727_v33, %v2669_v11  ;;  %v8632_v11 = vld [vmem:[%s8875_s0 + $0x50] sm:$0xff] }
 0x3ce   : > { %5714 = vrot.lane.b32.xlu1 %v5706_v28, %s6990_s30  ;;  %5535 = vrot.lane.b32.xlu2 %v5526_v45, %s6989_s28  ;;  %v2763_v5 = vpop.f32.mrf.mxu0  ;;  %v2962_v63 = vpop.f32.mrf.mxu3  ;;  %s8877_s30 = sld [smem:[#allocation18_spill]] }
 0x3cf   : > { %v2786_v31 = vadd.f32 %v2763_v5, %v2730_v41 }
 0x3d1   : > { %v2783_v19 = vpop.f32.mrf.mxu1 }
 0x3d2   : > { %v2824_v25 = vpop.f32.mrf.mxu2  ;;  %v2787_v54 = vadd.f32 %v2783_v19, %v2731_v55 }
 0x3d3   : > { %v2847_v45 = vadd.f32 %v2824_v25, %v2786_v31 }
 0x3d4   : > { %v2848_v53 = vadd.f32 %v2844_v16, %v2787_v54  ;;  %s6217_s18 = sshll.u32 %s8877_s30, 5 }
 0x3d5   : > { %s5785_s21 = sadd.s32 %s6217_s18, %s6216_s5  ;;  %s6850_s5 = scalar_lea.hbm %s8879_s8, 512 }
 0x3d6   : > { %v2886_v10 = vpop.f32.mrf.mxu0  ;;  %v3085_v15 = vpop.f32.mrf.mxu3  ;;  %s6218_s1 = sshll.u32 %s5785_s21, 3 }
 0x3d7   : > { %v2909_v2 = vadd.f32 %v2886_v10, %v2847_v45  ;;  %v3089_v6 = vmul.f32 %v3085_v15, %v8400_v40  ;;  %s5787_s14 = scalar_lea.hbm %s8878_s27, %s6218_s1 }
 0x3d8   : > { %s5791_s3 = sshll.u32 %s5787_s14, 4  ;;  %s5792_s3 = int_to_ptr.hbm [resolvable:$true] %s5791_s3 }
 0x3d9   : > { %v2906_v21 = vpop.f32.mrf.mxu1  ;;  %s6844_s15 = sshra.s32 %s5792_s3, 4  ;;  %s6845_s15 = int_to_ptr.hbm [resolvable:$true] %s6844_s15 }
 0x3da   : > { %v2942_v56 = vpop.f32.mrf.mxu2  ;;  %v2910_v18 = vadd.f32 %v2906_v21, %v2848_v53  ;;  %s6846_s11 = scalar_lea.hbm %s6845_s15, 128  ;;  %p6851_p8 = scmp.lt.s32.totalorder %s6845_s15, %s8879_s8 }
 0x3db   : > { %v2965_v24 = vadd.f32 %v2942_v56, %v2909_v2  ;;  %p6847_p7 = scmp.ne.s32.totalorder %s6845_s15, %s6846_s11  ;;  %p6852_p9 = scmp.lt.s32.totalorder %s6850_s5, %s6846_s11 }
 0x3dc   : > { %v2966_v44 = vadd.f32 %v2962_v63, %v2910_v18 }
 0x3dd   : > { %p6848_p3 = pnand %p6847_p7, %p7190_p4  ;;  %p6853_p10 = por %p6852_p9, %p6851_p8 }
 0x3de   : > { %v3001_v46 = vpop.f32.mrf.mxu0  ;;  %v3218_v32 = vpop.f32.mrf.mxu3 }
 0x3df   : > { %v3024_v12 = vmul.f32 %v3001_v46, %v8263_v42  ;;  %p6849_p5 = pneg %p6848_p3 }
 0x3e1   : > { %v3021_v23 = vpop.f32.mrf.mxu1  ;;  %v3026_v62 = vadd.f32 %v3024_v12, %v2965_v24  ;;  %p6854_p12 = pnand %p6853_p10, %p6849_p5 }
 0x3e2   : > { %v3025_v38 = vmul.f32 %v3021_v23, %v8385_v3  ;;  %v3065_v37 = vpop.f32.mrf.mxu2 }
 0x3e3   : > { %v3088_v0 = vmul.f32 %v3065_v37, %v8281_v36 }
 0x3e4   : > { %v3027_v52 = vadd.f32 %v3025_v38, %v2966_v44  ;;  %v8641_v44 = vld [vmem:[%s8875_s0] sm:$0xff] }
 0x3e5   : > { %v3090_v14 = vadd.f32 %v3088_v0, %v3026_v62  ;;  %v8648_v0 = vld [vmem:[%s8875_s0 + $0x18] sm:$0xff] }
 0x3e6   : > { %v3091_v7 = vadd.f32 %v3089_v6, %v3027_v52  ;;  %v3155_v8 = vpop.f32.mrf.mxu0  ;;  %v3333_v19 = vpop.f32.mrf.mxu3 }
 0x3e7   : > { %v3092_v47 = vmax.f32 %v3090_v14, 0.0 }
 0x3e8   : > { %v3093_v27 = vmax.f32 %v3091_v7, 0.0 }
 0x3e9   : > { %v3175_v57 = vpop.f32.mrf.mxu1  ;;  %v3094_v1 = vadd.f32 %v6730_v39, %v3092_v47 }
 0x3ea   : > { %v3095_v35 = vadd.f32 %v6731_v60, %v3093_v27  ;;  %v3198_v48 = vpop.f32.mrf.mxu2  ;;  %v3219_v58 = vadd.f32 %v3218_v32, %v3175_v57 }
 0x3eb   : > { %3096 = vst [vmem:[%s8294_s23 + $0x30] sm:$0xff] %v3094_v1  ;;  %v3199_v55 = vadd.f32 %v3198_v48, %v3155_v8  ;;  %v6183_v48 = vld [vmem:[%s8875_s0 + $0x8] sm:$0xff] }
 0x3ec   : > { %3097 = vst [vmem:[%s8294_s23 + $0x38] sm:$0xff] %v3095_v35 }
 0x3ee   : > { %v3252_v30 = vpop.f32.mrf.mxu0  ;;  %v3451_v21 = vpop.f32.mrf.mxu3 }
 0x3ef   : > { %v3275_v41 = vadd.f32 %v3252_v30, %v3199_v55 }
 0x3f0   : > { %v8622_v20 = vpop.permute.xlu2 %6685 }
 0x3f1   : > { %v6688_v28 = vunpack.i.h.bf16 %v8622_v20  ;;  %v6687_v34 = vunpack.i.l.bf16 %v8622_v20  ;;  %v3272_v26 = vpop.f32.mrf.mxu1 }
 0x3f2   : > { %v3313_v5 = vpop.f32.mrf.mxu2  ;;  %v3276_v25 = vadd.f32 %v3272_v26, %v3219_v58 }
 0x3f3   : > { %v5045_v33 = vsel %vm1031_vm9, %v6687_v34, %v6688_v28  ;;  %v3336_v10 = vadd.f32 %v3313_v5, %v3275_v41  ;;  %v6732_v41 = vld [vmem:[%s7254_s12 + $0x40] sm:$0xff] }
 0x3f4   : > { %5067 = vmatpush.msra.mxu0 %v5045_v33  ;;  %v3337_v31 = vadd.f32 %v3333_v19, %v3276_v25 }
 0x3f5   : > { %6181 = vmatmul.msk.f32.vlgmr.msra.gmra.mxu0 %vm440_vm6, %v8632_v11 }
 0x3f6   : > { %5203 = vmatpush.msrb.mxu0 %v8443_v13  ;;  %v3375_v54 = vpop.f32.mrf.mxu0 }
 0x3f7   : > { %v3398_v45 = vadd.f32 %v3375_v54, %v3336_v10  ;;  %v6733_v54 = vld [vmem:[%s7254_s12 + $0x48] sm:$0xff] }
 0x3f8   : > { %5318 = vmatpush.msra.mxu0 %v8487_v43  ;;  %v3574_v43 = vpop.f32.mrf.mxu3 }
 0x3f9   : > { %v3395_v16 = vpop.f32.mrf.mxu1 }
 0x3fa   : > { %v3431_v53 = vpop.f32.mrf.mxu2  ;;  %v3399_v56 = vadd.f32 %v3395_v16, %v3337_v31 }
 0x3fb   : > { %v3454_v46 = vadd.f32 %v3431_v53, %v3398_v45 }
 0x3fc   : > { %v3455_v13 = vadd.f32 %v3451_v21, %v3399_v56 }
 0x3fd   : > { %6186 = vmatmul.msk.f32.vlgmr.msrb.gmra.mxu0 %vm440_vm6, %v8641_v44 }
 0x3fe   : > { %v3492_v18 = vpop.f32.mrf.mxu0 }
 0x3ff   : > { %v3515_v24 = vadd.f32 %v3492_v18, %v3454_v46 }
 0x400   : > { %v3689_v15 = vpop.f32.mrf.mxu3 }
 0x401   : > { %v3512_v63 = vpop.f32.mrf.mxu1  ;;  %v3693_v47 = vmul.f32 %v3689_v15, %v8385_v3 }
 0x402   : > { %v3554_v2 = vpop.f32.mrf.mxu2  ;;  %v3516_v23 = vadd.f32 %v3512_v63, %v3455_v13 }
 0x403   : > { %v3577_v62 = vadd.f32 %v3554_v2, %v3515_v24  ;;  %v6696_v2 = vpop.permute.xlu2 %6695 }
 0x404   : > { %v3578_v37 = vadd.f32 %v3574_v43, %v3516_v23  ;;  %v6697_v23 = vunpack.i.l.bf16 %v6696_v2 }
 0x405   : > { %6192 = vmatmul.msk.f32.vlgmr.msra.gmra.mxu0 %vm440_vm6, %v8648_v0 }
 0x406   : > { %v3610_v12 = vpop.f32.mrf.mxu0 }
 0x407   : > { %v3633_v6 = vadd.f32 %v3610_v12, %v3577_v62 }
 0x408   : > { %v3843_v5 = vpop.f32.mrf.mxu3 }
 0x409   : > { %v3630_v38 = vpop.f32.mrf.mxu1 }
 0x40a   : > { %v3669_v52 = vpop.f32.mrf.mxu2  ;;  %v3634_v14 = vadd.f32 %v3630_v38, %v3578_v37 }
 0x40b   : > { %v3692_v7 = vmul.f32 %v3669_v52, %v8263_v42  ;;  %v6188_v52 = vld [vmem:[%s8875_s0 + $0x10] sm:$0xff] }
 0x40c   : > { %v3695_v57 = vadd.f32 %v3693_v47, %v3634_v14 }
 0x40d   : > { %v3694_v8 = vadd.f32 %v3692_v7, %v3633_v6 }
 0x40e   : > { %v3733_v60 = vpop.f32.mrf.mxu0 }
 0x40f   : > { %v3756_v32 = vmul.f32 %v3733_v60, %v8281_v36 }
 0x410   : > { %v3940_v13 = vpop.f32.mrf.mxu3 }
 0x411   : > { %v6676_v27 = vpop.permute.xlu0 %6675  ;;  %v3753_v35 = vpop.f32.mrf.mxu1  ;;  %v3758_v33 = vadd.f32 %v3756_v32, %v3694_v8 }
 0x412   : > { %v6678_v39 = vunpack.i.h.bf16 %v6676_v27  ;;  %v6677_v1 = vunpack.i.l.bf16 %v6676_v27  ;;  %v3757_v34 = vmul.f32 %v3753_v35, %v8400_v40  ;;  %v3823_v30 = vpop.f32.mrf.mxu2  ;;  %v6698_v35 = vunpack.i.h.bf16 %v6696_v2 }
 0x413   : > { %v3760_v19 = vmax.f32 %v3758_v33, 0.0 }
 0x414   : > { %v5138_v26 = vsel %vm435_vm7, %v6677_v1, %v6678_v39  ;;  %v3759_v58 = vadd.f32 %v3757_v34, %v3695_v57 }
 0x415   : > { %5160 = vmatpush.msra.mxu2 %v5138_v26  ;;  %v3762_v16 = vadd.f32 %v6732_v41, %v3760_v19  ;;  %v6194_v19 = vld [vmem:[%s8875_s0 + $0x20] sm:$0xff] }
 0x416   : > { %6184 = vmatmul.msk.f32.vlgmr.msra.gmra.mxu2 %vm440_vm6, %v6183_v48  ;;  %v3761_v55 = vmax.f32 %v3759_v58, 0.0  ;;  %v3866_v21 = vpop.f32.mrf.mxu0 }
 0x417   : > { %3764 = vst [vmem:[%s8294_s23 + $0x40] sm:$0xff] %v3762_v16  ;;  %v3867_v43 = vadd.f32 %v3866_v21, %v3823_v30 }
 0x418   : > { %v6681_v25 = vpop.permute.xlu1 %6680  ;;  %v3763_v31 = vadd.f32 %v6733_v54, %v3761_v55 }
 0x419   : > { %v6682_v53 = vunpack.i.l.bf16 %v6681_v25  ;;  %v3886_v10 = vpop.f32.mrf.mxu1 }
 0x41a   : > { %3765 = vst [vmem:[%s8294_s23 + $0x48] sm:$0xff] %v3763_v31  ;;  %v3920_v63 = vpop.f32.mrf.mxu2  ;;  %v3887_v46 = vadd.f32 %v3886_v10, %v3843_v5 }
 0x41b   : > { %v5139_v56 = vsel %vm435_vm7, %v6678_v39, %v6682_v53  ;;  %v5044_v45 = vpop.permute.xlu0 %5043  ;;  %v3943_v38 = vadd.f32 %v3920_v63, %v3867_v43 }
 0x41c   : > { %5180 = vmatpush.msra.mxu3 %v5139_v56  ;;  %v5046_v18 = vsel %vm1031_vm9, %v6688_v28, %v5044_v45  ;;  %v3944_v28 = vadd.f32 %v3940_v13, %v3887_v46 }
 0x41d   : > { %6185 = vmatmul.msk.f32.vlgmr.msra.gmra.mxu3 %vm440_vm6, %v6183_v48  ;;  %5087 = vmatpush.msra.mxu1 %v5046_v18 }
 0x41e   : > { %6182 = vmatmul.msk.f32.vlgmr.msra.gmra.mxu1 %vm440_vm6, %v8632_v11  ;;  %v3981_v37 = vpop.f32.mrf.mxu0 }
 0x41f   : > { %5223 = vmatpush.msrb.mxu1 %v8476_v59  ;;  %v6683_v59 = vunpack.i.h.bf16 %v6681_v25  ;;  %v4004_v8 = vadd.f32 %v3981_v37, %v3943_v38 }
 0x420   : > { %v6691_v24 = vpop.permute.xlu1 %6690  ;;  %v6711_v39 = vpop.permute.xlu2 %6710 }
 0x421   : > { %5338 = vmatpush.msra.mxu1 %v8517_v9  ;;  %v6693_v12 = vunpack.i.h.bf16 %v6691_v24  ;;  %v6692_v20 = vunpack.i.l.bf16 %v6691_v24  ;;  %v4001_v62 = vpop.f32.mrf.mxu1  ;;  %v4063_v9 = vpop.f32.mrf.mxu3  ;;  %v6713_v26 = vunpack.i.h.bf16 %v6711_v39  ;;  %v6712_v30 = vunpack.i.l.bf16 %v6711_v39 }
 0x422   : > { %v4043_v14 = vpop.f32.mrf.mxu2  ;;  %v4005_v57 = vadd.f32 %v4001_v62, %v3944_v28 }
 0x423   : > { %v5235_v15 = vsel %vm535_vm8, %v6692_v20, %v6693_v12  ;;  %v5236_v6 = vsel %vm535_vm8, %v6693_v12, %v6697_v23  ;;  %v4066_v32 = vadd.f32 %v4043_v14, %v4004_v8  ;;  %v5593_v53 = vsel %vm535_vm8, %v6712_v30, %v6713_v26 }
 0x424   : > { %5257 = vmatpush.msrb.mxu2 %v5235_v15  ;;  %5277 = vmatpush.msrb.mxu3 %v5236_v6  ;;  %v4067_v34 = vadd.f32 %v4063_v9, %v4005_v57 }
 0x425   : > { %v6701_v7 = vpop.permute.xlu0 %6700  ;;  %6189 = vmatmul.msk.f32.vlgmr.msrb.gmra.mxu2 %vm440_vm6, %v6188_v52  ;;  %6190 = vmatmul.msk.f32.vlgmr.msrb.gmra.mxu3 %vm440_vm6, %v6188_v52 }
 0x426   : > { %v6703_v47 = vunpack.i.h.bf16 %v6701_v7  ;;  %v6702_v27 = vunpack.i.l.bf16 %v6701_v7  ;;  %6187 = vmatmul.msk.f32.vlgmr.msrb.gmra.mxu1 %vm440_vm6, %v8641_v44  ;;  %v4099_v5 = vpop.f32.mrf.mxu0 }
 0x427   : > { %v4122_v54 = vadd.f32 %v4099_v5, %v4066_v32  ;;  %v6734_v32 = vld [vmem:[%s7254_s12 + $0x50] sm:$0xff] }
 0x428   : > { %v5358_v1 = vsel %vm435_vm7, %v6683_v59, %v6702_v27  ;;  %v5359_v60 = vsel %vm435_vm7, %v6702_v27, %v6703_v47  ;;  %v6706_v48 = vpop.permute.xlu1 %6705 }
 0x429   : > { %5380 = vmatpush.msra.mxu2 %v5358_v1  ;;  %5400 = vmatpush.msra.mxu3 %v5359_v60  ;;  %v6708_v33 = vunpack.i.h.bf16 %v6706_v48  ;;  %v6707_v58 = vunpack.i.l.bf16 %v6706_v48  ;;  %v4119_v44 = vpop.f32.mrf.mxu1  ;;  %v4180_v31 = vpop.f32.mrf.mxu3 }
 0x42a   : > { %v4160_v41 = vpop.f32.mrf.mxu2 }
 0x42b   : > { %5497 = vmatpush.msrb.mxu2 %v8570_v61  ;;  %5517 = vmatpush.msrb.mxu3 %v8554_v29  ;;  %v5414_v55 = vsel %vm535_vm8, %v6698_v35, %v6707_v58  ;;  %v5415_v25 = vsel %vm535_vm8, %v6707_v58, %v6708_v33  ;;  %v6197_v61 = vld [vmem:[%s8875_s0 + $0x28] sm:$0xff]  ;;  %v4123_v29 = vadd.f32 %v4119_v44, %v4067_v34 }
 0x42c   : > { %5436 = vmatpush.msrb.mxu0 %v5414_v55  ;;  %5456 = vmatpush.msrb.mxu1 %v5415_v25  ;;  %v4183_v10 = vadd.f32 %v4160_v41, %v4122_v54 }
 0x42d   : > { %6195 = vmatmul.msk.f32.vlgmr.msra.gmra.mxu2 %vm440_vm6, %v6194_v19  ;;  %6196 = vmatmul.msk.f32.vlgmr.msra.gmra.mxu3 %vm440_vm6, %v6194_v19  ;;  %v4184_v56 = vadd.f32 %v4180_v31, %v4123_v29 }
 0x42e   : > { %v5592_v16 = vpop.permute.xlu0 %5591  ;;  %5615 = vmatpush.msra.mxu2 %v5593_v53  ;;  %6193 = vmatmul.msk.f32.vlgmr.msra.gmra.mxu1 %vm440_vm6, %v8648_v0  ;;  %v4222_v45 = vpop.f32.mrf.mxu0 }
 0x42f   : > { %v5594_v21 = vsel %vm535_vm8, %v6713_v26, %v5592_v16  ;;  %6198 = vmatmul.msk.f32.vlgmr.msrb.gmra.mxu0 %vm440_vm6, %v6197_v61  ;;  %v4245_v13 = vadd.f32 %v4222_v45, %v4183_v10  ;;  %v5536_v0 = vpop.permute.xlu2 %5535  ;;  %v6735_v26 = vld [vmem:[%s7254_s12 + $0x58] sm:$0xff] }
 0x430   : > { %5635 = vmatpush.msra.mxu3 %v5594_v21 }
 0x431   : > { %v4242_v63 = vpop.f32.mrf.mxu1  ;;  %v4298_v43 = vpop.f32.mrf.mxu3 }
 0x432   : > { %v4278_v18 = vpop.f32.mrf.mxu2  ;;  %v4246_v2 = vadd.f32 %v4242_v63, %v4184_v56 }
 0x433   : > { %v4301_v20 = vadd.f32 %v4278_v18, %v4245_v13 }
 0x434   : > { %v4302_v38 = vadd.f32 %v4298_v43, %v4246_v2 }
 0x435   : > { %6201 = vmatmul.msk.f32.vlgmr.msrb.gmra.mxu2 %vm440_vm6, %v8560_v50  ;;  %6202 = vmatmul.msk.f32.vlgmr.msrb.gmra.mxu3 %vm440_vm6, %v8560_v50 }
 0x436   : > { %6199 = vmatmul.msk.f32.vlgmr.msrb.gmra.mxu1 %vm440_vm6, %v6197_v61  ;;  %v4337_v62 = vpop.f32.mrf.mxu0 }
 0x437   : > { %v4360_v14 = vmul.f32 %v4337_v62, %v8263_v42 }
 0x438   : > { %v6716_v46 = vpop.permute.xlu1 %6715 }
 0x439   : > { %v6718_v23 = vunpack.i.h.bf16 %v6716_v46  ;;  %v6717_v24 = vunpack.i.l.bf16 %v6716_v46  ;;  %v6721_v12 = vpop.permute.xlu0 %6720  ;;  %v4357_v52 = vpop.f32.mrf.mxu1  ;;  %v4362_v9 = vadd.f32 %v4360_v14, %v4301_v20  ;;  %v6736_v46 = vld [vmem:[%s7254_s12 + $0x60] sm:$0xff] }
 0x43a   : > { %v6723_v28 = vunpack.i.h.bf16 %v6721_v12  ;;  %v6722_v37 = vunpack.i.l.bf16 %v6721_v12  ;;  %v4361_v50 = vmul.f32 %v4357_v52, %v8385_v3  ;;  %v4401_v7 = vpop.f32.mrf.mxu2  ;;  %v4421_v8 = vpop.f32.mrf.mxu3 }
 0x43b   : > { %v5537_v15 = vsel %vm435_vm7, %v6717_v24, %v6718_v23  ;;  %v5538_v6 = vsel %vm435_vm7, %v6718_v23, %v5536_v0  ;;  %v4424_v27 = vmul.f32 %v4401_v7, %v8281_v36  ;;  %v4425_v57 = vmul.f32 %v4421_v8, %v8400_v40 }
 0x43c   : > { %5559 = vmatpush.msra.mxu0 %v5537_v15  ;;  %5579 = vmatpush.msra.mxu1 %v5538_v6  ;;  %v5716_v59 = vsel %vm1031_vm9, %v6722_v37, %v6723_v28  ;;  %v4363_v47 = vadd.f32 %v4361_v50, %v4302_v38 }
 0x43d   : > { %6204 = vmatmul.msk.f32.vlgmr.msra.gmra.mxu0 %vm440_vm6, %v8599_v22  ;;  %6207 = vmatmul.msk.f32.vlgmr.msra.gmra.mxu2 %vm440_vm6, %v8588_v51 }
 0x43e   : > { %5694 = vmatpush.msrb.mxu1 %v8575_v4  ;;  %5674 = vmatpush.msrb.mxu0 %v8565_v17  ;;  %v4426_v4 = vadd.f32 %v4424_v27, %v4362_v9  ;;  %v4427_v1 = vadd.f32 %v4425_v57, %v4363_v47  ;;  %v4491_v17 = vpop.f32.mrf.mxu0 }
 0x43f   : > { %6208 = vmatmul.msk.f32.vlgmr.msra.gmra.mxu3 %vm440_vm6, %v8588_v51  ;;  %5738 = vmatpush.msrb.mxu2 %v5716_v59 }
 0x440   : > { %v5715_v39 = vpop.permute.xlu1 %5714  ;;  %6205 = vmatmul.msk.f32.vlgmr.msra.gmra.mxu1 %vm440_vm6, %v8599_v22  ;;  %v4428_v35 = vmax.f32 %v4426_v4, 0.0  ;;  %v4429_v48 = vmax.f32 %v4427_v1, 0.0 }
 0x441   : > { %v5717_v60 = vsel %vm1031_vm9, %v6723_v28, %v5715_v39  ;;  %v4511_v53 = vpop.f32.mrf.mxu1 }
 0x442   : > { %5758 = vmatpush.msrb.mxu3 %v5717_v60  ;;  %v4430_v34 = vadd.f32 %v6734_v32, %v4428_v35  ;;  %v4431_v30 = vadd.f32 %v6735_v26, %v4429_v48  ;;  %v4534_v51 = vpop.f32.mrf.mxu2  ;;  %v4554_v21 = vpop.f32.mrf.mxu3  ;;  %v6737_v60 = vld [vmem:[%s7254_s12 + $0x68] sm:$0xff] }
 0x443   : > { %v4535_v58 = vadd.f32 %v4534_v51, %v4491_v17  ;;  %v4555_v23 = vadd.f32 %v4554_v21, %v4511_v53 }
 0x444   : > { %4432 = vst [vmem:[%s8294_s23 + $0x50] sm:$0xff] %v4430_v34 }
 0x445   : > { %6210 = vmatmul.msk.f32.vlgmr.msrb.gmra.mxu0 %vm440_vm6, %v8608_v49  ;;  %6213 = vmatmul.msk.f32.vlgmr.msrb.gmra.mxu2 %vm440_vm6, %v8632_v11  ;;  %4433 = vst [vmem:[%s8294_s23 + $0x58] sm:$0xff] %v4431_v30 }
 0x446   : > { %v4588_v22 = vpop.f32.mrf.mxu0 }
 0x447   : > { %6214 = vmatmul.msk.f32.vlgmr.msrb.gmra.mxu3 %vm440_vm6, %v8632_v11  ;;  %v4611_v44 = vadd.f32 %v4588_v22, %v4535_v58 }
 0x448   : > { %6211 = vmatmul.msk.f32.vlgmr.msrb.gmra.mxu1 %vm440_vm6, %v8608_v49 }
 0x449   : > { %v4608_v18 = vpop.f32.mrf.mxu1 }
 0x44a   : > { %v4649_v33 = vpop.f32.mrf.mxu2  ;;  %v4669_v2 = vpop.f32.mrf.mxu3  ;;  %v4612_v12 = vadd.f32 %v4608_v18, %v4555_v23 }
 0x44b   : > { %v4672_v55 = vadd.f32 %v4649_v33, %v4611_v44 }
 0x44c   : > { %v4673_v38 = vadd.f32 %v4669_v2, %v4612_v12 }
 0x44e   : > { %v4711_v5 = vpop.f32.mrf.mxu0 }
 0x44f   : > { %v4734_v25 = vadd.f32 %v4711_v5, %v4672_v55 }
 0x451   : > { %v4731_v24 = vpop.f32.mrf.mxu1 }
 0x452   : > { %v4767_v19 = vpop.f32.mrf.mxu2  ;;  %v4787_v20 = vpop.f32.mrf.mxu3  ;;  %v4735_v28 = vadd.f32 %v4731_v24, %v4673_v38 }
 0x453   : > { %v4790_v61 = vadd.f32 %v4767_v19, %v4734_v25 }
 0x454   : > { %v4791_v52 = vadd.f32 %v4787_v20, %v4735_v28 }
 0x456   : > { %v4828_v41 = vpop.f32.mrf.mxu0 }
 0x457   : > { %v4851_v54 = vadd.f32 %v4828_v41, %v4790_v61 }
 0x459   : > { %v4848_v37 = vpop.f32.mrf.mxu1 }
 0x45a   : > { %v4890_v16 = vpop.f32.mrf.mxu2  ;;  %v4910_v62 = vpop.f32.mrf.mxu3  ;;  %v4852_v15 = vadd.f32 %v4848_v37, %v4791_v52  ;;  %v6738_v52 = vld [vmem:[%s7254_s12 + $0x70] sm:$0xff] }
 0x45b   : > { %v4913_v31 = vadd.f32 %v4890_v16, %v4851_v54 }
 0x45c   : > { %v4914_v14 = vadd.f32 %v4910_v62, %v4852_v15  ;;  %v6739_v15 = vld [vmem:[%s7254_s12 + $0x78] sm:$0xff] }
 0x45e   : > { %v4946_v29 = vpop.f32.mrf.mxu0 }
 0x45f   : > { %v4969_v49 = vadd.f32 %v4946_v29, %v4913_v31 }
 0x461   : > { %v4966_v6 = vpop.f32.mrf.mxu1 }
 0x462   : > { %v5005_v11 = vpop.f32.mrf.mxu2  ;;  %v5025_v50 = vpop.f32.mrf.mxu3  ;;  %v4970_v59 = vadd.f32 %v4966_v6, %v4914_v14 }
 0x463   : > { %v5028_v10 = vmul.f32 %v5005_v11, %v8263_v42  ;;  %v5029_v7 = vmul.f32 %v5025_v50, %v8385_v3 }
 0x465   : > { %v5030_v56 = vadd.f32 %v5028_v10, %v4969_v49  ;;  %v5031_v47 = vadd.f32 %v5029_v7, %v4970_v59 }
 0x472   : > { %v5069_v45 = vpop.f32.mrf.mxu0 }
 0x473   : > { %v5092_v63 = vmul.f32 %v5069_v45, %v8281_v36 }
 0x475   : > { %v5094_v13 = vadd.f32 %v5092_v63, %v5030_v56 }
 0x477   : > { %v5096_v43 = vmax.f32 %v5094_v13, 0.0 }
 0x479   : > { %v5098_v0 = vadd.f32 %v6736_v46, %v5096_v43 }
 0x47a   : > { %v5205_v8 = vpop.f32.mrf.mxu0 }
 0x47b   : > { %5100 = vst [vmem:[%s8294_s23 + $0x60] sm:$0xff] %v5098_v0 }
 0x482   : > { %v5320_v17 = vpop.f32.mrf.mxu0 }
 0x499   : > { %v5162_v4 = vpop.f32.mrf.mxu2 }
 0x49a   : > { %v5206_v33 = vadd.f32 %v5205_v8, %v5162_v4 }
 0x49b   : > { %v5089_v9 = vpop.f32.mrf.mxu1 }
 0x49c   : > { %v5093_v27 = vmul.f32 %v5089_v9, %v8400_v40 }
 0x49e   : > { %v5095_v57 = vadd.f32 %v5093_v27, %v5031_v47 }
 0x4a0   : > { %v5097_v39 = vmax.f32 %v5095_v57, 0.0  ;;  %v5182_v1 = vpop.f32.mrf.mxu3 }
 0x4a2   : > { %v5099_v35 = vadd.f32 %v6737_v60, %v5097_v39 }
 0x4a3   : > { %v5225_v48 = vpop.f32.mrf.mxu1 }
 0x4a4   : > { %5101 = vst [vmem:[%s8294_s23 + $0x68] sm:$0xff] %v5099_v35  ;;  %v5226_v58 = vadd.f32 %v5225_v48, %v5182_v1 }
 0x4a8   : > { %v5259_v32 = vpop.f32.mrf.mxu2  ;;  %v5279_v34 = vpop.f32.mrf.mxu3 }
 0x4a9   : > { %v5282_v44 = vadd.f32 %v5259_v32, %v5206_v33  ;;  %v5283_v19 = vadd.f32 %v5279_v34, %v5226_v58 }
 0x4ab   : > { %v5340_v26 = vpop.f32.mrf.mxu1  ;;  %v5343_v41 = vadd.f32 %v5320_v17, %v5282_v44 }
 0x4ac   : > { %v5438_v30 = vpop.f32.mrf.mxu0  ;;  %v5344_v61 = vadd.f32 %v5340_v26, %v5283_v19 }
 0x4b0   : > { %v5382_v51 = vpop.f32.mrf.mxu2  ;;  %v5402_v22 = vpop.f32.mrf.mxu3 }
 0x4b1   : > { %v5405_v54 = vadd.f32 %v5382_v51, %v5343_v41  ;;  %v5406_v29 = vadd.f32 %v5402_v22, %v5344_v61 }
 0x4b3   : > { %v5458_v5 = vpop.f32.mrf.mxu1  ;;  %v5461_v11 = vadd.f32 %v5438_v30, %v5405_v54 }
 0x4b4   : > { %v5462_v53 = vadd.f32 %v5458_v5, %v5406_v29 }
 0x4b8   : > { %v5499_v55 = vpop.f32.mrf.mxu2  ;;  %v5519_v25 = vpop.f32.mrf.mxu3 }
 0x4b9   : > { %v5522_v49 = vadd.f32 %v5499_v55, %v5461_v11  ;;  %v5523_v56 = vadd.f32 %v5519_v25, %v5462_v53 }
 0x4ba   : > { %v5561_v16 = vpop.f32.mrf.mxu0 }
 0x4bb   : > { %v5584_v18 = vadd.f32 %v5561_v16, %v5522_v49 }
 0x4bd   : > { %v5581_v31 = vpop.f32.mrf.mxu1 }
 0x4be   : > { %v5585_v2 = vadd.f32 %v5581_v31, %v5523_v56 }
 0x4c0   : > { %v5617_v21 = vpop.f32.mrf.mxu2 }
 0x4c1   : > { %v5640_v46 = vadd.f32 %v5617_v21, %v5584_v18 }
 0x4c2   : > { %v5637_v10 = vpop.f32.mrf.mxu3  ;;  %v5676_v45 = vpop.f32.mrf.mxu0 }
 0x4c3   : > { %v5699_v13 = vmul.f32 %v5676_v45, %v8263_v42  ;;  %v5641_v0 = vadd.f32 %v5637_v10, %v5585_v2 }
 0x4c5   : > { %v5696_v63 = vpop.f32.mrf.mxu1  ;;  %v5701_v24 = vadd.f32 %v5699_v13, %v5640_v46 }
 0x4c6   : > { %v5700_v43 = vmul.f32 %v5696_v63, %v8385_v3 }
 0x4c8   : > { %v5740_v23 = vpop.f32.mrf.mxu2  ;;  %v5702_v38 = vadd.f32 %v5700_v43, %v5641_v0 }
 0x4c9   : > { %v5763_v12 = vmul.f32 %v5740_v23, %v8281_v36 }
 0x4ca   : > { %v5760_v20 = vpop.f32.mrf.mxu3 }
 0x4cb   : > { %v5764_v28 = vmul.f32 %v5760_v20, %v8400_v40  ;;  %v5765_v42 = vadd.f32 %v5763_v12, %v5701_v24 }
 0x4cd   : > { %v5766_v3 = vadd.f32 %v5764_v28, %v5702_v38  ;;  %v5767_v37 = vmax.f32 %v5765_v42, 0.0 }
 0x4cf   : > { %v5768_v62 = vmax.f32 %v5766_v3, 0.0  ;;  %v5769_v36 = vadd.f32 %v6738_v52, %v5767_v37 }
 0x4d1   : > { %v5770_v6 = vadd.f32 %v6739_v15, %v5768_v62  ;;  %5771 = vst [vmem:[%s8294_s23 + $0x70] sm:$0xff] %v5769_v36 }
 0x4d3   : > { %5772 = vst [vmem:[%s8294_s23 + $0x78] sm:$0xff] %v5770_v6 }
 0x4d4   : > { %6857 = shalt.err (!%p6854_p12)
}
 0x4d5   : > { %6233 = dma.vmem_to_hbm [thread:$0]  (%p7190_p4), %s5790_s10, 2048, %s5792_s3, %s5774_s26  }
 0x4d6 PF: > { %p6250_p13 = scmp.ge.s32.totalorder %s6984_s6, 2  ;;  %s5803_s12 = sand.u32 1, %s6956_s24  }
 0x4d7   : > { %s5804_s23 = scalar_lea.sflag [#allocation6], %s5803_s12 }
 0x4d8   : > { %p6246_p1 = pnand %p6250_p13, %p7194_p6 }
 0x4da   : > { %p6247_p0 = pneg %p6246_p1 }
 0x4dc   : > { %6927 = dma.done.wait (%p6247_p0), %s5804_s23, 2048  }
 0x4dd   : > { %6929 = vsyncadd (%p6247_p0), %s5804_s23, 4294965248  ;;  %s24_s6 = sadd.s32 1, %s6984_s6   ;;  %s8882_s16 = sld [smem:[#allocation15_spill]] }
 0x4de   : > { %p8775_p2 = scmp.ge.s32.totalorder %s24_s6, 6   ;;  %s8883_s23 = sld [smem:[#allocation23_spill]] }
 0x4df   : > { %s8884_s7 = sld [smem:[#allocation16_spill]]  ;;  %s8889_s18 = smov %s6936_s19 }
 0x4e0   : > { %s8885_s26 = sld [smem:[#allocation24_spill]]  ;;  %s8890_s19 = smov %s6940_s20 }
 0x4e1   : > { %s8886_s28 = sld [smem:[#allocation19_spill]]  ;;  %s8891_s20 = smov %s7234_s17 }
 0x4e2   : > { %s8887_s4 = sld [smem:[#allocation20_spill]]  ;;  %s8892_s21 = smov %s6948_s22 }
 0x4e3   : > { %s8888_s30 = sld [smem:[#allocation21_spill]]  ;;  %s8893_s22 = smov %s8882_s16 }
 0x4e4   : > { %s8894_s24 = smov %s6960_s25  ;;  %s8896_s27 = smov %s6976_s29 }
 0x4e5   : > { %s8895_s25 = smov %s8884_s7  ;;  %23 = sbr.rel (!%p8775_p2) target bundleno = 18 (0x12), region = 120 }
 0x4e8   : > { %s8897_s29 = smov %s8887_s4 }
 0x4ea   :  { %5810 = vsyncpa [#allocation5], 1 }
 0x4eb   :  { %5812 = vsyncpa [#allocation5 + $0x1], 1 }
 0x4ec   :  { %5813 = vsyncpa [#allocation8], 1 }
 0x4ed   :  { %5815 = vsyncpa [#allocation8 + $0x1], 1 }
 0x4ee   :  { %5816 = vsyncpa [#allocation6], 1 }
 0x4ef   :  { %5818 = vsyncpa [#allocation6 + $0x1], 1 }

</bundles_post_ra>
